<compile_context>
chip_gen: v6e
topology: v6e:2x2x1
jax: 0.10.0
libtpu: 0.0.40
codegen_flags: <defaults>
</compile_context>

<pallas_src>
import functools

import jax
import jax.numpy as jnp
from jax.experimental import pallas as pl
from jax.experimental.pallas import tpu as pltpu

_LANE = 128   # channel padding granularity (lane width)
_WPAD = 8     # physical W-halo padding in the VMEM scratch (sublane-aligned)


def _ceil_to(v, m):
    return ((v + m - 1) // m) * m


def _pick_block_h(H, block_h):
    if block_h is not None and block_h <= H and H % block_h == 0:
        return block_h
    for cand in (128, 64, 32, 16, 8, 4, 2, 1):
        if cand <= H and H % cand == 0:
            return cand
    return H


# -----------------------------------------------------------------------------
# Kernel 1: fused [optional BN-apply + LeakyReLU of the previous layer]
#           + 3x3 "same" conv (one im2col bf16 MXU matmul)
#           + per-(batch, H-tile) partial BatchNorm statistics.
# -----------------------------------------------------------------------------
def _conv3x3_kernel(*refs, apply_input_act, h_tile, height, width):
    if apply_input_act:
        (x_hbm, w_ref, b_ref, sc_ref, sh_ref, y_ref, st_ref, xs, sem) = refs
    else:
        (x_hbm, w_ref, b_ref, y_ref, st_ref, xs, sem) = refs
        sc_ref = sh_ref = None

    TH, H, W = h_tile, height, width
    cin_p = xs.shape[-1]
    cout_p = y_ref.shape[-1]

    n = pl.program_id(0)
    t = pl.program_id(1)
    nt = pl.num_programs(1)
    row0 = t * TH

    # ---- manual DMA: H-tile + (clamped) halo rows, straight from HBM -------
    top = jnp.maximum(row0 - 1, 0)         # clamped; zeroed below when t == 0
    bot = jnp.minimum(row0 + TH, H - 1)    # clamped; zeroed below on last tile
    cp_mid = pltpu.make_async_copy(x_hbm.at[n, pl.ds(row0, TH)],
                                   xs.at[pl.ds(1, TH), pl.ds(_WPAD, W)],
                                   sem.at[0])
    cp_top = pltpu.make_async_copy(x_hbm.at[n, pl.ds(top, 1)],
                                   xs.at[pl.ds(0, 1), pl.ds(_WPAD, W)],
                                   sem.at[1])
    cp_bot = pltpu.make_async_copy(x_hbm.at[n, pl.ds(bot, 1)],
                                   xs.at[pl.ds(TH + 1, 1), pl.ds(_WPAD, W)],
                                   sem.at[2])
    cp_mid.start(); cp_top.start(); cp_bot.start()
    cp_mid.wait(); cp_top.wait(); cp_bot.wait()

    # ---- fused BN-apply + LeakyReLU(0.2) of the *previous* layer -----------
    if apply_input_act:
        v = (xs[...].astype(jnp.float32) * sc_ref[...].reshape(1, 1, cin_p)
             + sh_ref[...].reshape(1, 1, cin_p))
        xs[...] = jnp.where(v >= 0, v, 0.2 * v).astype(xs.dtype)

    # ---- zero the spatial padding (after the activation, as torch pads the
    #      activated conv input) ---------------------------------------------
    zpad = jnp.zeros((TH + 2, _WPAD, cin_p), xs.dtype)
    xs[:, 0:_WPAD, :] = zpad
    xs[:, W + _WPAD:W + 2 * _WPAD, :] = zpad

    @pl.when(t == 0)
    def _():
        xs[0:1, :, :] = jnp.zeros((1, W + 2 * _WPAD, cin_p), xs.dtype)

    @pl.when(t == nt - 1)
    def _():
        xs[TH + 1:TH + 2, :, :] = jnp.zeros((1, W + 2 * _WPAD, cin_p), xs.dtype)

    # ---- im2col: fold the 9 taps into K -> one bf16 MXU matmul -------------
    xv = xs[...].astype(jnp.bfloat16)                 # (TH+2, W+2*_WPAD, cin_p)
    cols = []
    for kh in range(3):
        for kw in range(3):
            tap = xv[kh:kh + TH, _WPAD - 1 + kw:_WPAD - 1 + kw + W, :]
            cols.append(tap.reshape(TH * W, cin_p))
    patch = jnp.concatenate(cols, axis=1)             # (TH*W, 9*cin_p) bf16

    acc = jnp.dot(patch, w_ref[...], preferred_element_type=jnp.float32)
    acc = acc + b_ref[...].astype(jnp.float32)        # (1, cout_p) broadcasts

    y_ref[...] = acc.reshape(1, TH, W, cout_p).astype(y_ref.dtype)

    # per-(batch, tile) partial stats; reduced in the wrapper (race-free with
    # "parallel" grid axes / megacore).
    st_ref[...] = jnp.concatenate(
        [jnp.sum(acc, axis=0, keepdims=True),
         jnp.sum(acc * acc, axis=0, keepdims=True)],
        axis=0,
    ).reshape(1, 1, 2, cout_p)


def conv3x3_bn_stats(x, wmat, bias, in_scale=None, in_shift=None, *,
                     block_h=None, out_dtype=jnp.bfloat16):
    """x: (N,H,W,cin_p) channel-padded NHWC (f32 or bf16, stays in HBM).
    wmat: (9*cin_p, cout_p) bf16.  bias: (1, cout_p) f32.
    in_scale/in_shift: (1, cin_p) f32 BN-apply of the previous layer, or None.
    Returns y: (N,H,W,cout_p) out_dtype, stats: (N, nt, 2, cout_p) f32 partials."""
    N, H, W, cin_p = x.shape
    cout_p = wmat.shape[-1]
    TH = _pick_block_h(H, block_h)
    nt = H // TH
    apply_act = in_scale is not None

    kernel = functools.partial(_conv3x3_kernel, apply_input_act=apply_act,
                               h_tile=TH, height=H, width=W)

    in_specs = [
        pl.BlockSpec(memory_space=pl.ANY),                     # x: raw HBM ref
        pl.BlockSpec((9 * cin_p, cout_p), lambda n, t: (0, 0)),
        pl.BlockSpec((1, cout_p), lambda n, t: (0, 0)),
    ]
    args = [x, wmat, bias]
    if apply_act:
        in_specs += [pl.BlockSpec((1, cin_p), lambda n, t: (0, 0)),
                     pl.BlockSpec((1, cin_p), lambda n, t: (0, 0))]
        args += [in_scale, in_shift]

    # explicit scoped-VMEM budget: double-buffered blocks + scratch + temporaries
    blk_bytes = (9 * cin_p * cout_p * 2 + 6 * cout_p * 4
                 + TH * W * cout_p * jnp.dtype(out_dtype).itemsize)
    scratch_bytes = (TH + 2) * (W + 2 * _WPAD) * cin_p * x.dtype.itemsize
    tmp_bytes = 20 * TH * W * cin_p * 2 + 2 * TH * W * cout_p * 4
    vmem_limit = int(min(max(2 * blk_bytes + scratch_bytes + tmp_bytes + (8 << 20),
                             32 << 20), 48 << 20))

    y, stats = pl.pallas_call(
        kernel,
        out_shape=(jax.ShapeDtypeStruct((N, H, W, cout_p), out_dtype),
                   jax.ShapeDtypeStruct((N, nt, 2, cout_p), jnp.float32)),
        grid_spec=pltpu.PrefetchScalarGridSpec(
            num_scalar_prefetch=0,
            grid=(N, nt),
            in_specs=in_specs,
            out_specs=(
                pl.BlockSpec((1, TH, W, cout_p), lambda n, t: (n, t, 0, 0)),
                pl.BlockSpec((1, 1, 2, cout_p), lambda n, t: (n, t, 0, 0)),
            ),
            scratch_shapes=[
                pltpu.VMEM((TH + 2, W + 2 * _WPAD, cin_p), x.dtype),
                pltpu.SemaphoreType.DMA((3,)),
            ],
        ),
        compiler_params=pltpu.CompilerParams(
            dimension_semantics=("parallel", "parallel"),
            vmem_limit_bytes=vmem_limit),
    )(*args)
    return y, stats


# -----------------------------------------------------------------------------
# Kernel 2: final BatchNorm-apply + LeakyReLU(0.2) (only for the last layer;
# earlier layers are fused into the next conv's input read).
# -----------------------------------------------------------------------------
def _bn_lrelu_kernel(x_ref, scale_ref, shift_ref, o_ref):
    c = x_ref.shape[-1]
    v = (x_ref[...].astype(jnp.float32) * scale_ref[...].reshape(1, 1, 1, c)
         + shift_ref[...].reshape(1, 1, 1, c))
    o_ref[...] = jnp.where(v >= 0, v, 0.2 * v).astype(o_ref.dtype)


def bn_lrelu(y, scale, shift, out_dtype=jnp.float32):
    N, H, W, C = y.shape
    return pl.pallas_call(
        _bn_lrelu_kernel,
        out_shape=jax.ShapeDtypeStruct((N, H, W, C), out_dtype),
        grid_spec=pltpu.PrefetchScalarGridSpec(
            num_scalar_prefetch=0,
            grid=(N,),
            in_specs=[
                pl.BlockSpec((1, H, W, C), lambda n: (n, 0, 0, 0)),
                pl.BlockSpec((1, C), lambda n: (0, 0)),
                pl.BlockSpec((1, C), lambda n: (0, 0)),
            ],
            out_specs=pl.BlockSpec((1, H, W, C), lambda n: (n, 0, 0, 0)),
        ),
        compiler_params=pltpu.CompilerParams(
            dimension_semantics=("parallel",)),
    )(y, scale, shift)


# -----------------------------------------------------------------------------
# DoubleConv forward (training-mode BatchNorm: batch stats over N,H,W, biased
# variance, eps=1e-5; LeakyReLU slope 0.2).  NCHW in / NCHW out.
# -----------------------------------------------------------------------------
def _pad_params(w, b, gamma, beta):
    cin, cout = w.shape[2], w.shape[3]
    cin_p, cout_p = _ceil_to(cin, _LANE), _ceil_to(cout, _LANE)
    wp = jnp.zeros((3, 3, cin_p, cout_p), jnp.float32).at[:, :, :cin, :cout].set(w)
    wmat = wp.reshape(9 * cin_p, cout_p).astype(jnp.bfloat16)
    bp = jnp.zeros((cout_p,), jnp.float32).at[:cout].set(b).reshape(1, cout_p)
    gp = jnp.zeros((cout_p,), jnp.float32).at[:cout].set(gamma)
    betp = jnp.zeros((cout_p,), jnp.float32).at[:cout].set(beta)
    return wmat, bp, gp, betp


def double_conv(x_nchw, params, eps=1e-5, block_h=None):
    x = jnp.transpose(x_nchw, (0, 2, 3, 1))                   # NCHW -> NHWC
    N, H, W, cin0 = x.shape
    # lane-dense channel layout: pad channels once at entry; all intermediates
    # keep C as a multiple of 128 so every store is an unmasked full-lane vst.
    x = jnp.pad(x, ((0, 0), (0, 0), (0, 0), (0, _ceil_to(cin0, _LANE) - cin0)))

    scale = shift = None
    cout_last = None
    count = N * H * W
    for (w, b, gamma, beta) in params:
        wmat, bp, gp, betp = _pad_params(w, b, gamma, beta)
        cout_p = wmat.shape[-1]
        y, stats = conv3x3_bn_stats(x, wmat, bp, scale, shift, block_h=block_h)
        s = jnp.sum(stats, axis=(0, 1))                       # (2, cout_p) f32
        mean = s[0] / count
        # TODO(synk): E[x^2]-E[x]^2 can cancel for very large activations;
        # switch to centered per-tile partial sums if image sizes grow a lot.
        var = jnp.maximum(s[1] / count - mean * mean, 0.0)    # biased variance
        inv_std = jax.lax.rsqrt(var + eps)
        scale = (gp * inv_std).reshape(1, cout_p)
        shift = (betp - mean * gp * inv_std).reshape(1, cout_p)
        x = y                                                 # bf16 intermediate
        cout_last = w.shape[3]
    out = bn_lrelu(x, scale, shift)                           # final BN + LReLU
    out = out[..., :cout_last]                                # drop channel pad
    return jnp.transpose(out, (0, 3, 1, 2))                   # NHWC -> NCHW


# -----------------------------------------------------------------------------
# Deterministic parameter init (Conv2d-style uniform; BN gamma=1, beta=0).
# -----------------------------------------------------------------------------
def init_params(key, in_channels, out_channels, mid_channels=None):
    if mid_channels is None:
        mid_channels = out_channels
    params = []
    for cin, cout in [(in_channels, mid_channels), (mid_channels, out_channels)]:
        key, kw, kb = jax.random.split(key, 3)
        fan_in = cin * 3 * 3
        bound = 1.0 / float(fan_in) ** 0.5
        w = jax.random.uniform(kw, (3, 3, cin, cout), jnp.float32, -bound, bound)
        b = jax.random.uniform(kb, (cout,), jnp.float32, -bound, bound)
        gamma = jnp.ones((cout,), jnp.float32)
        beta = jnp.zeros((cout,), jnp.float32)
        params.append((w, b, gamma, beta))
    return params


# Pure-JAX f32 reference (torch semantics) for the sanity check.
def ref_double_conv(x_nchw, params, eps=1e-5):
    x = jnp.transpose(x_nchw, (0, 2, 3, 1))
    for (w, b, gamma, beta) in params:
        y = jax.lax.conv_general_dilated(
            x, w, window_strides=(1, 1), padding="SAME",
            dimension_numbers=("NHWC", "HWIO", "NHWC"),
            precision=jax.lax.Precision.HIGHEST) + b
        mean = jnp.mean(y, axis=(0, 1, 2))
        var = jnp.var(y, axis=(0, 1, 2))
        yn = (y - mean) * jax.lax.rsqrt(var + eps) * gamma + beta
        x = jnp.where(yn >= 0, yn, 0.2 * yn)
    return jnp.transpose(x, (0, 3, 1, 2))


if __name__ == "__main__":
    key = jax.random.PRNGKey(0)
    k_x, k_p = jax.random.split(key)

    N, C_in, Hs, Ws = 2, 4, 16, 16
    C_out = 8

    x = jax.random.normal(k_x, (N, C_in, Hs, Ws), jnp.float32)
    params = init_params(k_p, C_in, C_out)

    # block_h=8 -> 2 H-tiles per image, exercising the halo-DMA / edge-zero path.
    fwd = jax.jit(functools.partial(double_conv, params=params, block_h=8))
    out = jax.block_until_ready(fwd(x))

    ref = ref_double_conv(x, params)
    assert out.shape == (N, C_out, Hs, Ws)
    assert bool(jnp.all(jnp.isfinite(out)))
    # bf16 MXU operands + bf16 intermediates vs. an f32 reference.
    assert bool(jnp.allclose(out, ref, rtol=5e-2, atol=5e-2)), "mismatch vs reference"

    print("KERNEL_OK")
</pallas_src>

<mosaic_0001>
module attributes {stable_mosaic.version = 11 : i64} {
  func.func @_conv3x3_kernel(%arg0: i32, %arg1: i32, %arg2: memref<2x16x16x128xf32, #tpu.memory_space<any>>, %arg3: memref<1152x128xbf16, #tpu.memory_space<vmem>>, %arg4: memref<1x128xf32, #tpu.memory_space<vmem>>, %arg5: memref<1x8x16x128xbf16, #tpu.memory_space<vmem>>, %arg6: memref<1x1x2x128xf32, #tpu.memory_space<vmem>>, %arg7: memref<10x32x128xf32, #tpu.memory_space<vmem>>, %arg8: memref<3x!tpu.dma_semaphore, #tpu.memory_space<semaphore_mem>>) attributes {dimension_semantics = [#tpu.dimension_semantics<parallel>, #tpu.dimension_semantics<parallel>], iteration_bounds = array<i64: 2, 2>, scalar_prefetch = 0 : i64, scratch_operands = 2 : i64, tpu.core_type = #tpu.core_type<tc>, window_params = [{}, {pipeline_mode = #tpu.pipeline_mode<synchronous>, transform_indices = @transform_1, window_bounds = array<i64: 1152, 128>}, {pipeline_mode = #tpu.pipeline_mode<synchronous>, transform_indices = @transform_2, window_bounds = array<i64: 1, 128>}, {transform_indices = @transform_3, window_bounds = array<i64: 1, 8, 16, 128>}, {transform_indices = @transform_4, window_bounds = array<i64: 1, 1, 2, 128>}]} {
    %c8_i32 = arith.constant 8 : i32
    %0 = arith.muli %arg1, %c8_i32 : i32
    %c1_i32 = arith.constant 1 : i32
    %1 = arith.subi %0, %c1_i32 : i32
    %c0_i32 = arith.constant 0 : i32
    %2 = arith.maxsi %1, %c0_i32 : i32
    %c8_i32_0 = arith.constant 8 : i32
    %3 = arith.addi %0, %c8_i32_0 : i32
    %c15_i32 = arith.constant 15 : i32
    %4 = arith.minsi %3, %c15_i32 : i32
    %c0_i32_1 = arith.constant 0 : i32
    %c0_i32_2 = arith.constant 0 : i32
    %c0_i32_3 = arith.constant 0 : i32
    %5 = tpu.memref_slice %arg2[%arg0, %0, %c0_i32_2, %c0_i32_3] : memref<2x16x16x128xf32, #tpu.memory_space<any>> -> memref<1x8x16x128xf32, #tpu.memory_space<any>>
    %6 = tpu.memref_squeeze %5 : memref<1x8x16x128xf32, #tpu.memory_space<any>> -> memref<8x16x128xf32, #tpu.memory_space<any>>
    %c1_i32_4 = arith.constant 1 : i32
    %c8_i32_5 = arith.constant 8 : i32
    %c0_i32_6 = arith.constant 0 : i32
    %7 = tpu.memref_slice %arg7[%c1_i32_4, %c8_i32_5, %c0_i32_6] : memref<10x32x128xf32, #tpu.memory_space<vmem>> -> memref<8x16x128xf32, #tpu.memory_space<vmem>>
    %8 = tpu.memref_slice %arg8[%c0_i32_1] : memref<3x!tpu.dma_semaphore, #tpu.memory_space<semaphore_mem>> -> memref<1x!tpu.dma_semaphore, #tpu.memory_space<semaphore_mem>>
    %9 = tpu.memref_squeeze %8 : memref<1x!tpu.dma_semaphore, #tpu.memory_space<semaphore_mem>> -> memref<!tpu.dma_semaphore, #tpu.memory_space<semaphore_mem>>
    tpu.enqueue_dma source(%6 : memref<8x16x128xf32, #tpu.memory_space<any>>) target(%7 : memref<8x16x128xf32, #tpu.memory_space<vmem>>) target_semaphore(%9 : memref<!tpu.dma_semaphore, #tpu.memory_space<semaphore_mem>>)
    %c1_i32_7 = arith.constant 1 : i32
    %c0_i32_8 = arith.constant 0 : i32
    %c0_i32_9 = arith.constant 0 : i32
    %10 = tpu.memref_slice %arg2[%arg0, %2, %c0_i32_8, %c0_i32_9] : memref<2x16x16x128xf32, #tpu.memory_space<any>> -> memref<1x1x16x128xf32, #tpu.memory_space<any>>
    %11 = tpu.memref_squeeze %10 : memref<1x1x16x128xf32, #tpu.memory_space<any>> -> memref<1x16x128xf32, #tpu.memory_space<any>>
    %c0_i32_10 = arith.constant 0 : i32
    %c8_i32_11 = arith.constant 8 : i32
    %c0_i32_12 = arith.constant 0 : i32
    %12 = tpu.memref_slice %arg7[%c0_i32_10, %c8_i32_11, %c0_i32_12] : memref<10x32x128xf32, #tpu.memory_space<vmem>> -> memref<1x16x128xf32, #tpu.memory_space<vmem>>
    %13 = tpu.memref_slice %arg8[%c1_i32_7] : memref<3x!tpu.dma_semaphore, #tpu.memory_space<semaphore_mem>> -> memref<1x!tpu.dma_semaphore, #tpu.memory_space<semaphore_mem>>
    %14 = tpu.memref_squeeze %13 : memref<1x!tpu.dma_semaphore, #tpu.memory_space<semaphore_mem>> -> memref<!tpu.dma_semaphore, #tpu.memory_space<semaphore_mem>>
    tpu.enqueue_dma source(%11 : memref<1x16x128xf32, #tpu.memory_space<any>>) target(%12 : memref<1x16x128xf32, #tpu.memory_space<vmem>>) target_semaphore(%14 : memref<!tpu.dma_semaphore, #tpu.memory_space<semaphore_mem>>)
    %c2_i32 = arith.constant 2 : i32
    %c0_i32_13 = arith.constant 0 : i32
    %c0_i32_14 = arith.constant 0 : i32
    %15 = tpu.memref_slice %arg2[%arg0, %4, %c0_i32_13, %c0_i32_14] : memref<2x16x16x128xf32, #tpu.memory_space<any>> -> memref<1x1x16x128xf32, #tpu.memory_space<any>>
    %16 = tpu.memref_squeeze %15 : memref<1x1x16x128xf32, #tpu.memory_space<any>> -> memref<1x16x128xf32, #tpu.memory_space<any>>
    %c9_i32 = arith.constant 9 : i32
    %c8_i32_15 = arith.constant 8 : i32
    %c0_i32_16 = arith.constant 0 : i32
    %17 = tpu.memref_slice %arg7[%c9_i32, %c8_i32_15, %c0_i32_16] : memref<10x32x128xf32, #tpu.memory_space<vmem>> -> memref<1x16x128xf32, #tpu.memory_space<vmem>>
    %18 = tpu.memref_slice %arg8[%c2_i32] : memref<3x!tpu.dma_semaphore, #tpu.memory_space<semaphore_mem>> -> memref<1x!tpu.dma_semaphore, #tpu.memory_space<semaphore_mem>>
    %19 = tpu.memref_squeeze %18 : memref<1x!tpu.dma_semaphore, #tpu.memory_space<semaphore_mem>> -> memref<!tpu.dma_semaphore, #tpu.memory_space<semaphore_mem>>
    tpu.enqueue_dma source(%16 : memref<1x16x128xf32, #tpu.memory_space<any>>) target(%17 : memref<1x16x128xf32, #tpu.memory_space<vmem>>) target_semaphore(%19 : memref<!tpu.dma_semaphore, #tpu.memory_space<semaphore_mem>>)
    %c0_i32_17 = arith.constant 0 : i32
    %c0_i32_18 = arith.constant 0 : i32
    %c0_i32_19 = arith.constant 0 : i32
    %20 = tpu.memref_slice %arg2[%arg0, %0, %c0_i32_18, %c0_i32_19] : memref<2x16x16x128xf32, #tpu.memory_space<any>> -> memref<1x8x16x128xf32, #tpu.memory_space<any>>
    %21 = tpu.memref_squeeze %20 : memref<1x8x16x128xf32, #tpu.memory_space<any>> -> memref<8x16x128xf32, #tpu.memory_space<any>>
    %c1_i32_20 = arith.constant 1 : i32
    %c8_i32_21 = arith.constant 8 : i32
    %c0_i32_22 = arith.constant 0 : i32
    %22 = tpu.memref_slice %arg7[%c1_i32_20, %c8_i32_21, %c0_i32_22] : memref<10x32x128xf32, #tpu.memory_space<vmem>> -> memref<8x16x128xf32, #tpu.memory_space<vmem>>
    %23 = tpu.memref_slice %arg8[%c0_i32_17] : memref<3x!tpu.dma_semaphore, #tpu.memory_space<semaphore_mem>> -> memref<1x!tpu.dma_semaphore, #tpu.memory_space<semaphore_mem>>
    %24 = tpu.memref_squeeze %23 : memref<1x!tpu.dma_semaphore, #tpu.memory_space<semaphore_mem>> -> memref<!tpu.dma_semaphore, #tpu.memory_space<semaphore_mem>>
    tpu.wait_dma2 semaphore(%24 : memref<!tpu.dma_semaphore, #tpu.memory_space<semaphore_mem>>) src(%21 : memref<8x16x128xf32, #tpu.memory_space<any>>) dst(%22 : memref<8x16x128xf32, #tpu.memory_space<vmem>>)
    %c1_i32_23 = arith.constant 1 : i32
    %c0_i32_24 = arith.constant 0 : i32
    %c0_i32_25 = arith.constant 0 : i32
    %25 = tpu.memref_slice %arg2[%arg0, %2, %c0_i32_24, %c0_i32_25] : memref<2x16x16x128xf32, #tpu.memory_space<any>> -> memref<1x1x16x128xf32, #tpu.memory_space<any>>
    %26 = tpu.memref_squeeze %25 : memref<1x1x16x128xf32, #tpu.memory_space<any>> -> memref<1x16x128xf32, #tpu.memory_space<any>>
    %c0_i32_26 = arith.constant 0 : i32
    %c8_i32_27 = arith.constant 8 : i32
    %c0_i32_28 = arith.constant 0 : i32
    %27 = tpu.memref_slice %arg7[%c0_i32_26, %c8_i32_27, %c0_i32_28] : memref<10x32x128xf32, #tpu.memory_space<vmem>> -> memref<1x16x128xf32, #tpu.memory_space<vmem>>
    %28 = tpu.memref_slice %arg8[%c1_i32_23] : memref<3x!tpu.dma_semaphore, #tpu.memory_space<semaphore_mem>> -> memref<1x!tpu.dma_semaphore, #tpu.memory_space<semaphore_mem>>
    %29 = tpu.memref_squeeze %28 : memref<1x!tpu.dma_semaphore, #tpu.memory_space<semaphore_mem>> -> memref<!tpu.dma_semaphore, #tpu.memory_space<semaphore_mem>>
    tpu.wait_dma2 semaphore(%29 : memref<!tpu.dma_semaphore, #tpu.memory_space<semaphore_mem>>) src(%26 : memref<1x16x128xf32, #tpu.memory_space<any>>) dst(%27 : memref<1x16x128xf32, #tpu.memory_space<vmem>>)
    %c2_i32_29 = arith.constant 2 : i32
    %c0_i32_30 = arith.constant 0 : i32
    %c0_i32_31 = arith.constant 0 : i32
    %30 = tpu.memref_slice %arg2[%arg0, %4, %c0_i32_30, %c0_i32_31] : memref<2x16x16x128xf32, #tpu.memory_space<any>> -> memref<1x1x16x128xf32, #tpu.memory_space<any>>
    %31 = tpu.memref_squeeze %30 : memref<1x1x16x128xf32, #tpu.memory_space<any>> -> memref<1x16x128xf32, #tpu.memory_space<any>>
    %c9_i32_32 = arith.constant 9 : i32
    %c8_i32_33 = arith.constant 8 : i32
    %c0_i32_34 = arith.constant 0 : i32
    %32 = tpu.memref_slice %arg7[%c9_i32_32, %c8_i32_33, %c0_i32_34] : memref<10x32x128xf32, #tpu.memory_space<vmem>> -> memref<1x16x128xf32, #tpu.memory_space<vmem>>
    %33 = tpu.memref_slice %arg8[%c2_i32_29] : memref<3x!tpu.dma_semaphore, #tpu.memory_space<semaphore_mem>> -> memref<1x!tpu.dma_semaphore, #tpu.memory_space<semaphore_mem>>
    %34 = tpu.memref_squeeze %33 : memref<1x!tpu.dma_semaphore, #tpu.memory_space<semaphore_mem>> -> memref<!tpu.dma_semaphore, #tpu.memory_space<semaphore_mem>>
    tpu.wait_dma2 semaphore(%34 : memref<!tpu.dma_semaphore, #tpu.memory_space<semaphore_mem>>) src(%31 : memref<1x16x128xf32, #tpu.memory_space<any>>) dst(%32 : memref<1x16x128xf32, #tpu.memory_space<vmem>>)
    %cst = arith.constant 0.000000e+00 : f32
    %35 = vector.broadcast %cst : f32 to vector<10x8x128xf32>
    %c0 = arith.constant 0 : index
    %c0_35 = arith.constant 0 : index
    %c0_36 = arith.constant 0 : index
    %36 = vector.load %arg7[%c0, %c0_35, %c0_36] : memref<10x32x128xf32, #tpu.memory_space<vmem>>, vector<10x8x128xf32>
    tpu.vector_store %arg7[%c0, %c0_35, %c0_36], %35 {strides = array<i32>} : memref<10x32x128xf32, #tpu.memory_space<vmem>>, vector<10x8x128xf32>,
    %c0_37 = arith.constant 0 : index
    %c24 = arith.constant 24 : index
    %c0_38 = arith.constant 0 : index
    %37 = vector.load %arg7[%c0_37, %c24, %c0_38] : memref<10x32x128xf32, #tpu.memory_space<vmem>>, vector<10x8x128xf32>
    tpu.vector_store %arg7[%c0_37, %c24, %c0_38], %35 {strides = array<i32>} : memref<10x32x128xf32, #tpu.memory_space<vmem>>, vector<10x8x128xf32>,
    %c0_i32_39 = arith.constant 0 : i32
    %38 = arith.cmpi eq, %arg1, %c0_i32_39 : i32
    %39 = arith.extui %38 : i1 to i32
    %c0_i32_40 = arith.constant 0 : i32
    %40 = arith.cmpi ne, %39, %c0_i32_40 : i32
    scf.if %40 {
      %cst_61 = arith.constant 0.000000e+00 : f32
      %81 = vector.broadcast %cst_61 : f32 to vector<1x32x128xf32>
      %c0_62 = arith.constant 0 : index
      %c0_63 = arith.constant 0 : index
      %c0_64 = arith.constant 0 : index
      %82 = vector.load %arg7[%c0_62, %c0_63, %c0_64] : memref<10x32x128xf32, #tpu.memory_space<vmem>>, vector<1x32x128xf32>
      tpu.vector_store %arg7[%c0_62, %c0_63, %c0_64], %81 {strides = array<i32>} : memref<10x32x128xf32, #tpu.memory_space<vmem>>, vector<1x32x128xf32>,
    } else {
    }
    %c1_i32_41 = arith.constant 1 : i32
    %41 = arith.cmpi eq, %arg1, %c1_i32_41 : i32
    %42 = arith.extui %41 : i1 to i32
    %c0_i32_42 = arith.constant 0 : i32
    %43 = arith.cmpi ne, %42, %c0_i32_42 : i32
    scf.if %43 {
      %cst_61 = arith.constant 0.000000e+00 : f32
      %81 = vector.broadcast %cst_61 : f32 to vector<1x32x128xf32>
      %c9 = arith.constant 9 : index
      %c0_62 = arith.constant 0 : index
      %c0_63 = arith.constant 0 : index
      %82 = vector.load %arg7[%c9, %c0_62, %c0_63] : memref<10x32x128xf32, #tpu.memory_space<vmem>>, vector<1x32x128xf32>
      tpu.vector_store %arg7[%c9, %c0_62, %c0_63], %81 {strides = array<i32>} : memref<10x32x128xf32, #tpu.memory_space<vmem>>, vector<1x32x128xf32>,
    } else {
    }
    %c0_43 = arith.constant 0 : index
    %c0_44 = arith.constant 0 : index
    %c0_45 = arith.constant 0 : index
    %44 = vector.load %arg7[%c0_43, %c0_44, %c0_45] : memref<10x32x128xf32, #tpu.memory_space<vmem>>, vector<10x32x128xf32>
    %45 = arith.truncf %44 : vector<10x32x128xf32> to vector<10x32x128xbf16>
    %46 = vector.extract_strided_slice %45 {offsets = [0, 7, 0], sizes = [8, 16, 128], strides = [1, 1, 1]} : vector<10x32x128xbf16> to vector<8x16x128xbf16>
    %47 = vector.shape_cast %46 : vector<8x16x128xbf16> to vector<128x128xbf16>
    %48 = vector.extract_strided_slice %45 {offsets = [0, 8, 0], sizes = [8, 16, 128], strides = [1, 1, 1]} : vector<10x32x128xbf16> to vector<8x16x128xbf16>
    %49 = vector.shape_cast %48 : vector<8x16x128xbf16> to vector<128x128xbf16>
    %50 = vector.extract_strided_slice %45 {offsets = [0, 9, 0], sizes = [8, 16, 128], strides = [1, 1, 1]} : vector<10x32x128xbf16> to vector<8x16x128xbf16>
    %51 = vector.shape_cast %50 : vector<8x16x128xbf16> to vector<128x128xbf16>
    %52 = vector.extract_strided_slice %45 {offsets = [1, 7, 0], sizes = [8, 16, 128], strides = [1, 1, 1]} : vector<10x32x128xbf16> to vector<8x16x128xbf16>
    %53 = vector.shape_cast %52 : vector<8x16x128xbf16> to vector<128x128xbf16>
    %54 = vector.extract_strided_slice %45 {offsets = [1, 8, 0], sizes = [8, 16, 128], strides = [1, 1, 1]} : vector<10x32x128xbf16> to vector<8x16x128xbf16>
    %55 = vector.shape_cast %54 : vector<8x16x128xbf16> to vector<128x128xbf16>
    %56 = vector.extract_strided_slice %45 {offsets = [1, 9, 0], sizes = [8, 16, 128], strides = [1, 1, 1]} : vector<10x32x128xbf16> to vector<8x16x128xbf16>
    %57 = vector.shape_cast %56 : vector<8x16x128xbf16> to vector<128x128xbf16>
    %58 = vector.extract_strided_slice %45 {offsets = [2, 7, 0], sizes = [8, 16, 128], strides = [1, 1, 1]} : vector<10x32x128xbf16> to vector<8x16x128xbf16>
    %59 = vector.shape_cast %58 : vector<8x16x128xbf16> to vector<128x128xbf16>
    %60 = vector.extract_strided_slice %45 {offsets = [2, 8, 0], sizes = [8, 16, 128], strides = [1, 1, 1]} : vector<10x32x128xbf16> to vector<8x16x128xbf16>
    %61 = vector.shape_cast %60 : vector<8x16x128xbf16> to vector<128x128xbf16>
    %62 = vector.extract_strided_slice %45 {offsets = [2, 9, 0], sizes = [8, 16, 128], strides = [1, 1, 1]} : vector<10x32x128xbf16> to vector<8x16x128xbf16>
    %63 = vector.shape_cast %62 : vector<8x16x128xbf16> to vector<128x128xbf16>
    %64 = tpu.concatenate %47, %49, %51, %53, %55, %57, %59, %61, %63 in 1 : vector<128x128xbf16>, vector<128x128xbf16>, vector<128x128xbf16>, vector<128x128xbf16>, vector<128x128xbf16>, vector<128x128xbf16>, vector<128x128xbf16>, vector<128x128xbf16>, vector<128x128xbf16> -> vector<128x1152xbf16>
    %c0_46 = arith.constant 0 : index
    %c0_47 = arith.constant 0 : index
    %65 = vector.load %arg3[%c0_46, %c0_47] : memref<1152x128xbf16, #tpu.memory_space<vmem>>, vector<1152x128xbf16>
    %cst_48 = arith.constant dense<0.000000e+00> : vector<128x128xf32>
    %66 = tpu.matmul %64, %65, %cst_48 {dimension_numbers = #tpu.dot_dimension_numbers<[1], [0], [0], [1], [0, 0, 1, 1], [], []>} : vector<128x1152xbf16>, vector<1152x128xbf16>, vector<128x128xf32> -> vector<128x128xf32>
    %c0_49 = arith.constant 0 : index
    %c0_50 = arith.constant 0 : index
    %67 = vector.load %arg4[%c0_49, %c0_50] : memref<1x128xf32, #tpu.memory_space<vmem>>, vector<1x128xf32>
    %68 = vector.broadcast %67 : vector<1x128xf32> to vector<128x128xf32>
    %69 = arith.addf %66, %68 : vector<128x128xf32>
    %70 = vector.shape_cast %69 : vector<128x128xf32> to vector<1x8x16x128xf32>
    %71 = arith.truncf %70 : vector<1x8x16x128xf32> to vector<1x8x16x128xbf16>
    %c0_51 = arith.constant 0 : index
    %c0_52 = arith.constant 0 : index
    %c0_53 = arith.constant 0 : index
    %c0_54 = arith.constant 0 : index
    %72 = vector.load %arg5[%c0_51, %c0_52, %c0_53, %c0_54] : memref<1x8x16x128xbf16, #tpu.memory_space<vmem>>, vector<1x8x16x128xbf16>
    tpu.vector_store %arg5[%c0_51, %c0_52, %c0_53, %c0_54], %71 {strides = array<i32>} : memref<1x8x16x128xbf16, #tpu.memory_space<vmem>>, vector<1x8x16x128xbf16>,
    %cst_55 = arith.constant dense<0.000000e+00> : vector<128xf32>
    %73 = vector.multi_reduction <add>, %69, %cst_55 [0] : vector<128x128xf32> to vector<128xf32>
    %74 = vector.shape_cast %73 : vector<128xf32> to vector<1x128xf32>
    %75 = arith.mulf %69, %69 : vector<128x128xf32>
    %cst_56 = arith.constant dense<0.000000e+00> : vector<128xf32>
    %76 = vector.multi_reduction <add>, %75, %cst_56 [0] : vector<128x128xf32> to vector<128xf32>
    %77 = vector.shape_cast %76 : vector<128xf32> to vector<1x128xf32>
    %78 = tpu.concatenate %74, %77 in 0 : vector<1x128xf32>, vector<1x128xf32> -> vector<2x128xf32>
    %79 = vector.shape_cast %78 : vector<2x128xf32> to vector<1x1x2x128xf32>
    %c0_57 = arith.constant 0 : index
    %c0_58 = arith.constant 0 : index
    %c0_59 = arith.constant 0 : index
    %c0_60 = arith.constant 0 : index
    %80 = vector.load %arg6[%c0_57, %c0_58, %c0_59, %c0_60] : memref<1x1x2x128xf32, #tpu.memory_space<vmem>>, vector<1x1x2x128xf32>
    tpu.vector_store %arg6[%c0_57, %c0_58, %c0_59, %c0_60], %79 {strides = array<i32>} : memref<1x1x2x128xf32, #tpu.memory_space<vmem>>, vector<1x1x2x128xf32>,
    return
  }
  func.func @transform_1(%arg0: i32, %arg1: i32) -> (i32, i32) {
    %c0_i32 = arith.constant 0 : i32
    %c0_i32_0 = arith.constant 0 : i32
    %c0_i32_1 = arith.constant 0 : i32
    return %c0_i32, %c0_i32_0 : i32, i32
  }
  func.func @transform_2(%arg0: i32, %arg1: i32) -> (i32, i32) {
    %c0_i32 = arith.constant 0 : i32
    %c0_i32_0 = arith.constant 0 : i32
    %c0_i32_1 = arith.constant 0 : i32
    return %c0_i32, %c0_i32_0 : i32, i32
  }
  func.func @transform_3(%arg0: i32, %arg1: i32) -> (i32, i32, i32, i32) {
    %c0_i32 = arith.constant 0 : i32
    %c0_i32_0 = arith.constant 0 : i32
    %c0_i32_1 = arith.constant 0 : i32
    return %arg0, %arg1, %c0_i32, %c0_i32_0 : i32, i32, i32, i32
  }
  func.func @transform_4(%arg0: i32, %arg1: i32) -> (i32, i32, i32, i32) {
    %c0_i32 = arith.constant 0 : i32
    %c0_i32_0 = arith.constant 0 : i32
    %c0_i32_1 = arith.constant 0 : i32
    return %arg0, %arg1, %c0_i32, %c0_i32_0 : i32, i32, i32, i32
  }
}

module attributes {stable_mosaic.version = 11 : i64} {
  func.func @_bn_lrelu_kernel(%arg0: i32, %arg1: memref<1x16x16x128xbf16, #tpu.memory_space<vmem>>, %arg2: memref<1x128xf32, #tpu.memory_space<vmem>>, %arg3: memref<1x128xf32, #tpu.memory_space<vmem>>, %arg4: memref<1x16x16x128xf32, #tpu.memory_space<vmem>>) attributes {dimension_semantics = [#tpu.dimension_semantics<parallel>], iteration_bounds = array<i64: 2>, scalar_prefetch = 0 : i64, scratch_operands = 0 : i64, tpu.core_type = #tpu.core_type<tc>, window_params = [{transform_indices = @transform_0, window_bounds = array<i64: 1, 16, 16, 128>}, {pipeline_mode = #tpu.pipeline_mode<synchronous>, transform_indices = @transform_1, window_bounds = array<i64: 1, 128>}, {pipeline_mode = #tpu.pipeline_mode<synchronous>, transform_indices = @transform_2, window_bounds = array<i64: 1, 128>}, {transform_indices = @transform_3, window_bounds = array<i64: 1, 16, 16, 128>}]} {
    %c0 = arith.constant 0 : index
    %c0_0 = arith.constant 0 : index
    %c0_1 = arith.constant 0 : index
    %c0_2 = arith.constant 0 : index
    %0 = vector.load %arg1[%c0, %c0_0, %c0_1, %c0_2] : memref<1x16x16x128xbf16, #tpu.memory_space<vmem>>, vector<1x16x16x128xbf16>
    %1 = arith.extf %0 : vector<1x16x16x128xbf16> to vector<1x16x16x128xf32>
    %c0_3 = arith.constant 0 : index
    %c0_4 = arith.constant 0 : index
    %2 = vector.load %arg2[%c0_3, %c0_4] : memref<1x128xf32, #tpu.memory_space<vmem>>, vector<1x128xf32>
    %3 = vector.shape_cast %2 : vector<1x128xf32> to vector<1x1x1x128xf32>
    %4 = vector.broadcast %3 : vector<1x1x1x128xf32> to vector<1x16x16x128xf32>
    %5 = arith.mulf %1, %4 : vector<1x16x16x128xf32>
    %c0_5 = arith.constant 0 : index
    %c0_6 = arith.constant 0 : index
    %6 = vector.load %arg3[%c0_5, %c0_6] : memref<1x128xf32, #tpu.memory_space<vmem>>, vector<1x128xf32>
    %7 = vector.shape_cast %6 : vector<1x128xf32> to vector<1x1x1x128xf32>
    %8 = vector.broadcast %7 : vector<1x1x1x128xf32> to vector<1x16x16x128xf32>
    %9 = arith.addf %5, %8 : vector<1x16x16x128xf32>
    %cst = arith.constant 0.000000e+00 : f32
    %10 = vector.broadcast %cst : f32 to vector<1x16x16x128xf32>
    %11 = arith.cmpf oge, %9, %10 : vector<1x16x16x128xf32>
    %cst_7 = arith.constant 2.000000e-01 : f32
    %12 = vector.broadcast %cst_7 : f32 to vector<1x16x16x128xf32>
    %13 = arith.mulf %12, %9 : vector<1x16x16x128xf32>
    %14 = arith.select %11, %9, %13 : vector<1x16x16x128xi1>, vector<1x16x16x128xf32>
    %c0_8 = arith.constant 0 : index
    %c0_9 = arith.constant 0 : index
    %c0_10 = arith.constant 0 : index
    %c0_11 = arith.constant 0 : index
    %15 = vector.load %arg4[%c0_8, %c0_9, %c0_10, %c0_11] : memref<1x16x16x128xf32, #tpu.memory_space<vmem>>, vector<1x16x16x128xf32>
    tpu.vector_store %arg4[%c0_8, %c0_9, %c0_10, %c0_11], %14 {strides = array<i32>} : memref<1x16x16x128xf32, #tpu.memory_space<vmem>>, vector<1x16x16x128xf32>,
    return
  }
  func.func @transform_0(%arg0: i32) -> (i32, i32, i32, i32) {
    %c0_i32 = arith.constant 0 : i32
    %c0_i32_0 = arith.constant 0 : i32
    %c0_i32_1 = arith.constant 0 : i32
    %c0_i32_2 = arith.constant 0 : i32
    return %arg0, %c0_i32, %c0_i32_0, %c0_i32_1 : i32, i32, i32, i32
  }
  func.func @transform_1(%arg0: i32) -> (i32, i32) {
    %c0_i32 = arith.constant 0 : i32
    %c0_i32_0 = arith.constant 0 : i32
    %c0_i32_1 = arith.constant 0 : i32
    return %c0_i32, %c0_i32_0 : i32, i32
  }
  func.func @transform_2(%arg0: i32) -> (i32, i32) {
    %c0_i32 = arith.constant 0 : i32
    %c0_i32_0 = arith.constant 0 : i32
    %c0_i32_1 = arith.constant 0 : i32
    return %c0_i32, %c0_i32_0 : i32, i32
  }
  func.func @transform_3(%arg0: i32) -> (i32, i32, i32, i32) {
    %c0_i32 = arith.constant 0 : i32
    %c0_i32_0 = arith.constant 0 : i32
    %c0_i32_1 = arith.constant 0 : i32
    %c0_i32_2 = arith.constant 0 : i32
    return %arg0, %c0_i32, %c0_i32_0, %c0_i32_1 : i32, i32, i32, i32
  }
}

module attributes {stable_mosaic.version = 11 : i64} {
  func.func @_conv3x3_kernel(%arg0: i32, %arg1: i32, %arg2: memref<2x16x16x128xbf16, #tpu.memory_space<any>>, %arg3: memref<1152x128xbf16, #tpu.memory_space<vmem>>, %arg4: memref<1x128xf32, #tpu.memory_space<vmem>>, %arg5: memref<1x128xf32, #tpu.memory_space<vmem>>, %arg6: memref<1x128xf32, #tpu.memory_space<vmem>>, %arg7: memref<1x8x16x128xbf16, #tpu.memory_space<vmem>>, %arg8: memref<1x1x2x128xf32, #tpu.memory_space<vmem>>, %arg9: memref<10x32x128xbf16, #tpu.memory_space<vmem>>, %arg10: memref<3x!tpu.dma_semaphore, #tpu.memory_space<semaphore_mem>>) attributes {dimension_semantics = [#tpu.dimension_semantics<parallel>, #tpu.dimension_semantics<parallel>], iteration_bounds = array<i64: 2, 2>, scalar_prefetch = 0 : i64, scratch_operands = 2 : i64, tpu.core_type = #tpu.core_type<tc>, window_params = [{}, {pipeline_mode = #tpu.pipeline_mode<synchronous>, transform_indices = @transform_1, window_bounds = array<i64: 1152, 128>}, {pipeline_mode = #tpu.pipeline_mode<synchronous>, transform_indices = @transform_2, window_bounds = array<i64: 1, 128>}, {pipeline_mode = #tpu.pipeline_mode<synchronous>, transform_indices = @transform_3, window_bounds = array<i64: 1, 128>}, {pipeline_mode = #tpu.pipeline_mode<synchronous>, transform_indices = @transform_4, window_bounds = array<i64: 1, 128>}, {transform_indices = @transform_5, window_bounds = array<i64: 1, 8, 16, 128>}, {transform_indices = @transform_6, window_bounds = array<i64: 1, 1, 2, 128>}]} {
    %c8_i32 = arith.constant 8 : i32
    %0 = arith.muli %arg1, %c8_i32 : i32
    %c1_i32 = arith.constant 1 : i32
    %1 = arith.subi %0, %c1_i32 : i32
    %c0_i32 = arith.constant 0 : i32
    %2 = arith.maxsi %1, %c0_i32 : i32
    %c8_i32_0 = arith.constant 8 : i32
    %3 = arith.addi %0, %c8_i32_0 : i32
    %c15_i32 = arith.constant 15 : i32
    %4 = arith.minsi %3, %c15_i32 : i32
    %c0_i32_1 = arith.constant 0 : i32
    %c0_i32_2 = arith.constant 0 : i32
    %c0_i32_3 = arith.constant 0 : i32
    %5 = tpu.memref_slice %arg2[%arg0, %0, %c0_i32_2, %c0_i32_3] : memref<2x16x16x128xbf16, #tpu.memory_space<any>> -> memref<1x8x16x128xbf16, #tpu.memory_space<any>>
    %6 = tpu.memref_squeeze %5 : memref<1x8x16x128xbf16, #tpu.memory_space<any>> -> memref<8x16x128xbf16, #tpu.memory_space<any>>
    %c1_i32_4 = arith.constant 1 : i32
    %c8_i32_5 = arith.constant 8 : i32
    %c0_i32_6 = arith.constant 0 : i32
    %7 = tpu.memref_slice %arg9[%c1_i32_4, %c8_i32_5, %c0_i32_6] : memref<10x32x128xbf16, #tpu.memory_space<vmem>> -> memref<8x16x128xbf16, #tpu.memory_space<vmem>>
    %8 = tpu.memref_slice %arg10[%c0_i32_1] : memref<3x!tpu.dma_semaphore, #tpu.memory_space<semaphore_mem>> -> memref<1x!tpu.dma_semaphore, #tpu.memory_space<semaphore_mem>>
    %9 = tpu.memref_squeeze %8 : memref<1x!tpu.dma_semaphore, #tpu.memory_space<semaphore_mem>> -> memref<!tpu.dma_semaphore, #tpu.memory_space<semaphore_mem>>
    tpu.enqueue_dma source(%6 : memref<8x16x128xbf16, #tpu.memory_space<any>>) target(%7 : memref<8x16x128xbf16, #tpu.memory_space<vmem>>) target_semaphore(%9 : memref<!tpu.dma_semaphore, #tpu.memory_space<semaphore_mem>>)
    %c1_i32_7 = arith.constant 1 : i32
    %c0_i32_8 = arith.constant 0 : i32
    %c0_i32_9 = arith.constant 0 : i32
    %10 = tpu.memref_slice %arg2[%arg0, %2, %c0_i32_8, %c0_i32_9] : memref<2x16x16x128xbf16, #tpu.memory_space<any>> -> memref<1x1x16x128xbf16, #tpu.memory_space<any>>
    %11 = tpu.memref_squeeze %10 : memref<1x1x16x128xbf16, #tpu.memory_space<any>> -> memref<1x16x128xbf16, #tpu.memory_space<any>>
    %c0_i32_10 = arith.constant 0 : i32
    %c8_i32_11 = arith.constant 8 : i32
    %c0_i32_12 = arith.constant 0 : i32
    %12 = tpu.memref_slice %arg9[%c0_i32_10, %c8_i32_11, %c0_i32_12] : memref<10x32x128xbf16, #tpu.memory_space<vmem>> -> memref<1x16x128xbf16, #tpu.memory_space<vmem>>
    %13 = tpu.memref_slice %arg10[%c1_i32_7] : memref<3x!tpu.dma_semaphore, #tpu.memory_space<semaphore_mem>> -> memref<1x!tpu.dma_semaphore, #tpu.memory_space<semaphore_mem>>
    %14 = tpu.memref_squeeze %13 : memref<1x!tpu.dma_semaphore, #tpu.memory_space<semaphore_mem>> -> memref<!tpu.dma_semaphore, #tpu.memory_space<semaphore_mem>>
    tpu.enqueue_dma source(%11 : memref<1x16x128xbf16, #tpu.memory_space<any>>) target(%12 : memref<1x16x128xbf16, #tpu.memory_space<vmem>>) target_semaphore(%14 : memref<!tpu.dma_semaphore, #tpu.memory_space<semaphore_mem>>)
    %c2_i32 = arith.constant 2 : i32
    %c0_i32_13 = arith.constant 0 : i32
    %c0_i32_14 = arith.constant 0 : i32
    %15 = tpu.memref_slice %arg2[%arg0, %4, %c0_i32_13, %c0_i32_14] : memref<2x16x16x128xbf16, #tpu.memory_space<any>> -> memref<1x1x16x128xbf16, #tpu.memory_space<any>>
    %16 = tpu.memref_squeeze %15 : memref<1x1x16x128xbf16, #tpu.memory_space<any>> -> memref<1x16x128xbf16, #tpu.memory_space<any>>
    %c9_i32 = arith.constant 9 : i32
    %c8_i32_15 = arith.constant 8 : i32
    %c0_i32_16 = arith.constant 0 : i32
    %17 = tpu.memref_slice %arg9[%c9_i32, %c8_i32_15, %c0_i32_16] : memref<10x32x128xbf16, #tpu.memory_space<vmem>> -> memref<1x16x128xbf16, #tpu.memory_space<vmem>>
    %18 = tpu.memref_slice %arg10[%c2_i32] : memref<3x!tpu.dma_semaphore, #tpu.memory_space<semaphore_mem>> -> memref<1x!tpu.dma_semaphore, #tpu.memory_space<semaphore_mem>>
    %19 = tpu.memref_squeeze %18 : memref<1x!tpu.dma_semaphore, #tpu.memory_space<semaphore_mem>> -> memref<!tpu.dma_semaphore, #tpu.memory_space<semaphore_mem>>
    tpu.enqueue_dma source(%16 : memref<1x16x128xbf16, #tpu.memory_space<any>>) target(%17 : memref<1x16x128xbf16, #tpu.memory_space<vmem>>) target_semaphore(%19 : memref<!tpu.dma_semaphore, #tpu.memory_space<semaphore_mem>>)
    %c0_i32_17 = arith.constant 0 : i32
    %c0_i32_18 = arith.constant 0 : i32
    %c0_i32_19 = arith.constant 0 : i32
    %20 = tpu.memref_slice %arg2[%arg0, %0, %c0_i32_18, %c0_i32_19] : memref<2x16x16x128xbf16, #tpu.memory_space<any>> -> memref<1x8x16x128xbf16, #tpu.memory_space<any>>
    %21 = tpu.memref_squeeze %20 : memref<1x8x16x128xbf16, #tpu.memory_space<any>> -> memref<8x16x128xbf16, #tpu.memory_space<any>>
    %c1_i32_20 = arith.constant 1 : i32
    %c8_i32_21 = arith.constant 8 : i32
    %c0_i32_22 = arith.constant 0 : i32
    %22 = tpu.memref_slice %arg9[%c1_i32_20, %c8_i32_21, %c0_i32_22] : memref<10x32x128xbf16, #tpu.memory_space<vmem>> -> memref<8x16x128xbf16, #tpu.memory_space<vmem>>
    %23 = tpu.memref_slice %arg10[%c0_i32_17] : memref<3x!tpu.dma_semaphore, #tpu.memory_space<semaphore_mem>> -> memref<1x!tpu.dma_semaphore, #tpu.memory_space<semaphore_mem>>
    %24 = tpu.memref_squeeze %23 : memref<1x!tpu.dma_semaphore, #tpu.memory_space<semaphore_mem>> -> memref<!tpu.dma_semaphore, #tpu.memory_space<semaphore_mem>>
    tpu.wait_dma2 semaphore(%24 : memref<!tpu.dma_semaphore, #tpu.memory_space<semaphore_mem>>) src(%21 : memref<8x16x128xbf16, #tpu.memory_space<any>>) dst(%22 : memref<8x16x128xbf16, #tpu.memory_space<vmem>>)
    %c1_i32_23 = arith.constant 1 : i32
    %c0_i32_24 = arith.constant 0 : i32
    %c0_i32_25 = arith.constant 0 : i32
    %25 = tpu.memref_slice %arg2[%arg0, %2, %c0_i32_24, %c0_i32_25] : memref<2x16x16x128xbf16, #tpu.memory_space<any>> -> memref<1x1x16x128xbf16, #tpu.memory_space<any>>
    %26 = tpu.memref_squeeze %25 : memref<1x1x16x128xbf16, #tpu.memory_space<any>> -> memref<1x16x128xbf16, #tpu.memory_space<any>>
    %c0_i32_26 = arith.constant 0 : i32
    %c8_i32_27 = arith.constant 8 : i32
    %c0_i32_28 = arith.constant 0 : i32
    %27 = tpu.memref_slice %arg9[%c0_i32_26, %c8_i32_27, %c0_i32_28] : memref<10x32x128xbf16, #tpu.memory_space<vmem>> -> memref<1x16x128xbf16, #tpu.memory_space<vmem>>
    %28 = tpu.memref_slice %arg10[%c1_i32_23] : memref<3x!tpu.dma_semaphore, #tpu.memory_space<semaphore_mem>> -> memref<1x!tpu.dma_semaphore, #tpu.memory_space<semaphore_mem>>
    %29 = tpu.memref_squeeze %28 : memref<1x!tpu.dma_semaphore, #tpu.memory_space<semaphore_mem>> -> memref<!tpu.dma_semaphore, #tpu.memory_space<semaphore_mem>>
    tpu.wait_dma2 semaphore(%29 : memref<!tpu.dma_semaphore, #tpu.memory_space<semaphore_mem>>) src(%26 : memref<1x16x128xbf16, #tpu.memory_space<any>>) dst(%27 : memref<1x16x128xbf16, #tpu.memory_space<vmem>>)
    %c2_i32_29 = arith.constant 2 : i32
    %c0_i32_30 = arith.constant 0 : i32
    %c0_i32_31 = arith.constant 0 : i32
    %30 = tpu.memref_slice %arg2[%arg0, %4, %c0_i32_30, %c0_i32_31] : memref<2x16x16x128xbf16, #tpu.memory_space<any>> -> memref<1x1x16x128xbf16, #tpu.memory_space<any>>
    %31 = tpu.memref_squeeze %30 : memref<1x1x16x128xbf16, #tpu.memory_space<any>> -> memref<1x16x128xbf16, #tpu.memory_space<any>>
    %c9_i32_32 = arith.constant 9 : i32
    %c8_i32_33 = arith.constant 8 : i32
    %c0_i32_34 = arith.constant 0 : i32
    %32 = tpu.memref_slice %arg9[%c9_i32_32, %c8_i32_33, %c0_i32_34] : memref<10x32x128xbf16, #tpu.memory_space<vmem>> -> memref<1x16x128xbf16, #tpu.memory_space<vmem>>
    %33 = tpu.memref_slice %arg10[%c2_i32_29] : memref<3x!tpu.dma_semaphore, #tpu.memory_space<semaphore_mem>> -> memref<1x!tpu.dma_semaphore, #tpu.memory_space<semaphore_mem>>
    %34 = tpu.memref_squeeze %33 : memref<1x!tpu.dma_semaphore, #tpu.memory_space<semaphore_mem>> -> memref<!tpu.dma_semaphore, #tpu.memory_space<semaphore_mem>>
    tpu.wait_dma2 semaphore(%34 : memref<!tpu.dma_semaphore, #tpu.memory_space<semaphore_mem>>) src(%31 : memref<1x16x128xbf16, #tpu.memory_space<any>>) dst(%32 : memref<1x16x128xbf16, #tpu.memory_space<vmem>>)
    %c0 = arith.constant 0 : index
    %c0_35 = arith.constant 0 : index
    %c0_36 = arith.constant 0 : index
    %35 = vector.load %arg9[%c0, %c0_35, %c0_36] : memref<10x32x128xbf16, #tpu.memory_space<vmem>>, vector<10x32x128xbf16>
    %36 = arith.extf %35 : vector<10x32x128xbf16> to vector<10x32x128xf32>
    %c0_37 = arith.constant 0 : index
    %c0_38 = arith.constant 0 : index
    %37 = vector.load %arg5[%c0_37, %c0_38] : memref<1x128xf32, #tpu.memory_space<vmem>>, vector<1x128xf32>
    %38 = vector.shape_cast %37 : vector<1x128xf32> to vector<1x1x128xf32>
    %39 = vector.broadcast %38 : vector<1x1x128xf32> to vector<10x32x128xf32>
    %40 = arith.mulf %36, %39 : vector<10x32x128xf32>
    %c0_39 = arith.constant 0 : index
    %c0_40 = arith.constant 0 : index
    %41 = vector.load %arg6[%c0_39, %c0_40] : memref<1x128xf32, #tpu.memory_space<vmem>>, vector<1x128xf32>
    %42 = vector.shape_cast %41 : vector<1x128xf32> to vector<1x1x128xf32>
    %43 = vector.broadcast %42 : vector<1x1x128xf32> to vector<10x32x128xf32>
    %44 = arith.addf %40, %43 : vector<10x32x128xf32>
    %cst = arith.constant 0.000000e+00 : f32
    %45 = vector.broadcast %cst : f32 to vector<10x32x128xf32>
    %46 = arith.cmpf oge, %44, %45 : vector<10x32x128xf32>
    %cst_41 = arith.constant 2.000000e-01 : f32
    %47 = vector.broadcast %cst_41 : f32 to vector<10x32x128xf32>
    %48 = arith.mulf %47, %44 : vector<10x32x128xf32>
    %49 = arith.select %46, %44, %48 : vector<10x32x128xi1>, vector<10x32x128xf32>
    %50 = arith.truncf %49 : vector<10x32x128xf32> to vector<10x32x128xbf16>
    %c0_42 = arith.constant 0 : index
    %c0_43 = arith.constant 0 : index
    %c0_44 = arith.constant 0 : index
    %51 = vector.load %arg9[%c0_42, %c0_43, %c0_44] : memref<10x32x128xbf16, #tpu.memory_space<vmem>>, vector<10x32x128xbf16>
    tpu.vector_store %arg9[%c0_42, %c0_43, %c0_44], %50 {strides = array<i32>} : memref<10x32x128xbf16, #tpu.memory_space<vmem>>, vector<10x32x128xbf16>,
    %cst_45 = arith.constant 0.000000e+00 : bf16
    %52 = vector.broadcast %cst_45 : bf16 to vector<10x8x128xbf16>
    %c0_46 = arith.constant 0 : index
    %c0_47 = arith.constant 0 : index
    %c0_48 = arith.constant 0 : index
    %53 = vector.load %arg9[%c0_46, %c0_47, %c0_48] : memref<10x32x128xbf16, #tpu.memory_space<vmem>>, vector<10x8x128xbf16>
    tpu.vector_store %arg9[%c0_46, %c0_47, %c0_48], %52 {strides = array<i32>} : memref<10x32x128xbf16, #tpu.memory_space<vmem>>, vector<10x8x128xbf16>,
    %c0_49 = arith.constant 0 : index
    %c24 = arith.constant 24 : index
    %c0_50 = arith.constant 0 : index
    %54 = vector.load %arg9[%c0_49, %c24, %c0_50] : memref<10x32x128xbf16, #tpu.memory_space<vmem>>, vector<10x8x128xbf16>
    tpu.vector_store %arg9[%c0_49, %c24, %c0_50], %52 {strides = array<i32>} : memref<10x32x128xbf16, #tpu.memory_space<vmem>>, vector<10x8x128xbf16>,
    %c0_i32_51 = arith.constant 0 : i32
    %55 = arith.cmpi eq, %arg1, %c0_i32_51 : i32
    %56 = arith.extui %55 : i1 to i32
    %c0_i32_52 = arith.constant 0 : i32
    %57 = arith.cmpi ne, %56, %c0_i32_52 : i32
    scf.if %57 {
      %cst_73 = arith.constant 0.000000e+00 : bf16
      %97 = vector.broadcast %cst_73 : bf16 to vector<1x32x128xbf16>
      %c0_74 = arith.constant 0 : index
      %c0_75 = arith.constant 0 : index
      %c0_76 = arith.constant 0 : index
      %98 = vector.load %arg9[%c0_74, %c0_75, %c0_76] : memref<10x32x128xbf16, #tpu.memory_space<vmem>>, vector<1x32x128xbf16>
      tpu.vector_store %arg9[%c0_74, %c0_75, %c0_76], %97 {strides = array<i32>} : memref<10x32x128xbf16, #tpu.memory_space<vmem>>, vector<1x32x128xbf16>,
    } else {
    }
    %c1_i32_53 = arith.constant 1 : i32
    %58 = arith.cmpi eq, %arg1, %c1_i32_53 : i32
    %59 = arith.extui %58 : i1 to i32
    %c0_i32_54 = arith.constant 0 : i32
    %60 = arith.cmpi ne, %59, %c0_i32_54 : i32
    scf.if %60 {
      %cst_73 = arith.constant 0.000000e+00 : bf16
      %97 = vector.broadcast %cst_73 : bf16 to vector<1x32x128xbf16>
      %c9 = arith.constant 9 : index
      %c0_74 = arith.constant 0 : index
      %c0_75 = arith.constant 0 : index
      %98 = vector.load %arg9[%c9, %c0_74, %c0_75] : memref<10x32x128xbf16, #tpu.memory_space<vmem>>, vector<1x32x128xbf16>
      tpu.vector_store %arg9[%c9, %c0_74, %c0_75], %97 {strides = array<i32>} : memref<10x32x128xbf16, #tpu.memory_space<vmem>>, vector<1x32x128xbf16>,
    } else {
    }
    %c0_55 = arith.constant 0 : index
    %c0_56 = arith.constant 0 : index
    %c0_57 = arith.constant 0 : index
    %61 = vector.load %arg9[%c0_55, %c0_56, %c0_57] : memref<10x32x128xbf16, #tpu.memory_space<vmem>>, vector<10x32x128xbf16>
    %62 = vector.extract_strided_slice %61 {offsets = [0, 7, 0], sizes = [8, 16, 128], strides = [1, 1, 1]} : vector<10x32x128xbf16> to vector<8x16x128xbf16>
    %63 = vector.shape_cast %62 : vector<8x16x128xbf16> to vector<128x128xbf16>
    %64 = vector.extract_strided_slice %61 {offsets = [0, 8, 0], sizes = [8, 16, 128], strides = [1, 1, 1]} : vector<10x32x128xbf16> to vector<8x16x128xbf16>
    %65 = vector.shape_cast %64 : vector<8x16x128xbf16> to vector<128x128xbf16>
    %66 = vector.extract_strided_slice %61 {offsets = [0, 9, 0], sizes = [8, 16, 128], strides = [1, 1, 1]} : vector<10x32x128xbf16> to vector<8x16x128xbf16>
    %67 = vector.shape_cast %66 : vector<8x16x128xbf16> to vector<128x128xbf16>
    %68 = vector.extract_strided_slice %61 {offsets = [1, 7, 0], sizes = [8, 16, 128], strides = [1, 1, 1]} : vector<10x32x128xbf16> to vector<8x16x128xbf16>
    %69 = vector.shape_cast %68 : vector<8x16x128xbf16> to vector<128x128xbf16>
    %70 = vector.extract_strided_slice %61 {offsets = [1, 8, 0], sizes = [8, 16, 128], strides = [1, 1, 1]} : vector<10x32x128xbf16> to vector<8x16x128xbf16>
    %71 = vector.shape_cast %70 : vector<8x16x128xbf16> to vector<128x128xbf16>
    %72 = vector.extract_strided_slice %61 {offsets = [1, 9, 0], sizes = [8, 16, 128], strides = [1, 1, 1]} : vector<10x32x128xbf16> to vector<8x16x128xbf16>
    %73 = vector.shape_cast %72 : vector<8x16x128xbf16> to vector<128x128xbf16>
    %74 = vector.extract_strided_slice %61 {offsets = [2, 7, 0], sizes = [8, 16, 128], strides = [1, 1, 1]} : vector<10x32x128xbf16> to vector<8x16x128xbf16>
    %75 = vector.shape_cast %74 : vector<8x16x128xbf16> to vector<128x128xbf16>
    %76 = vector.extract_strided_slice %61 {offsets = [2, 8, 0], sizes = [8, 16, 128], strides = [1, 1, 1]} : vector<10x32x128xbf16> to vector<8x16x128xbf16>
    %77 = vector.shape_cast %76 : vector<8x16x128xbf16> to vector<128x128xbf16>
    %78 = vector.extract_strided_slice %61 {offsets = [2, 9, 0], sizes = [8, 16, 128], strides = [1, 1, 1]} : vector<10x32x128xbf16> to vector<8x16x128xbf16>
    %79 = vector.shape_cast %78 : vector<8x16x128xbf16> to vector<128x128xbf16>
    %80 = tpu.concatenate %63, %65, %67, %69, %71, %73, %75, %77, %79 in 1 : vector<128x128xbf16>, vector<128x128xbf16>, vector<128x128xbf16>, vector<128x128xbf16>, vector<128x128xbf16>, vector<128x128xbf16>, vector<128x128xbf16>, vector<128x128xbf16>, vector<128x128xbf16> -> vector<128x1152xbf16>
    %c0_58 = arith.constant 0 : index
    %c0_59 = arith.constant 0 : index
    %81 = vector.load %arg3[%c0_58, %c0_59] : memref<1152x128xbf16, #tpu.memory_space<vmem>>, vector<1152x128xbf16>
    %cst_60 = arith.constant dense<0.000000e+00> : vector<128x128xf32>
    %82 = tpu.matmul %80, %81, %cst_60 {dimension_numbers = #tpu.dot_dimension_numbers<[1], [0], [0], [1], [0, 0, 1, 1], [], []>} : vector<128x1152xbf16>, vector<1152x128xbf16>, vector<128x128xf32> -> vector<128x128xf32>
    %c0_61 = arith.constant 0 : index
    %c0_62 = arith.constant 0 : index
    %83 = vector.load %arg4[%c0_61, %c0_62] : memref<1x128xf32, #tpu.memory_space<vmem>>, vector<1x128xf32>
    %84 = vector.broadcast %83 : vector<1x128xf32> to vector<128x128xf32>
    %85 = arith.addf %82, %84 : vector<128x128xf32>
    %86 = vector.shape_cast %85 : vector<128x128xf32> to vector<1x8x16x128xf32>
    %87 = arith.truncf %86 : vector<1x8x16x128xf32> to vector<1x8x16x128xbf16>
    %c0_63 = arith.constant 0 : index
    %c0_64 = arith.constant 0 : index
    %c0_65 = arith.constant 0 : index
    %c0_66 = arith.constant 0 : index
    %88 = vector.load %arg7[%c0_63, %c0_64, %c0_65, %c0_66] : memref<1x8x16x128xbf16, #tpu.memory_space<vmem>>, vector<1x8x16x128xbf16>
    tpu.vector_store %arg7[%c0_63, %c0_64, %c0_65, %c0_66], %87 {strides = array<i32>} : memref<1x8x16x128xbf16, #tpu.memory_space<vmem>>, vector<1x8x16x128xbf16>,
    %cst_67 = arith.constant dense<0.000000e+00> : vector<128xf32>
    %89 = vector.multi_reduction <add>, %85, %cst_67 [0] : vector<128x128xf32> to vector<128xf32>
    %90 = vector.shape_cast %89 : vector<128xf32> to vector<1x128xf32>
    %91 = arith.mulf %85, %85 : vector<128x128xf32>
    %cst_68 = arith.constant dense<0.000000e+00> : vector<128xf32>
    %92 = vector.multi_reduction <add>, %91, %cst_68 [0] : vector<128x128xf32> to vector<128xf32>
    %93 = vector.shape_cast %92 : vector<128xf32> to vector<1x128xf32>
    %94 = tpu.concatenate %90, %93 in 0 : vector<1x128xf32>, vector<1x128xf32> -> vector<2x128xf32>
    %95 = vector.shape_cast %94 : vector<2x128xf32> to vector<1x1x2x128xf32>
    %c0_69 = arith.constant 0 : index
    %c0_70 = arith.constant 0 : index
    %c0_71 = arith.constant 0 : index
    %c0_72 = arith.constant 0 : index
    %96 = vector.load %arg8[%c0_69, %c0_70, %c0_71, %c0_72] : memref<1x1x2x128xf32, #tpu.memory_space<vmem>>, vector<1x1x2x128xf32>
    tpu.vector_store %arg8[%c0_69, %c0_70, %c0_71, %c0_72], %95 {strides = array<i32>} : memref<1x1x2x128xf32, #tpu.memory_space<vmem>>, vector<1x1x2x128xf32>,
    return
  }
  func.func @transform_1(%arg0: i32, %arg1: i32) -> (i32, i32) {
    %c0_i32 = arith.constant 0 : i32
    %c0_i32_0 = arith.constant 0 : i32
    %c0_i32_1 = arith.constant 0 : i32
    return %c0_i32, %c0_i32_0 : i32, i32
  }
  func.func @transform_2(%arg0: i32, %arg1: i32) -> (i32, i32) {
    %c0_i32 = arith.constant 0 : i32
    %c0_i32_0 = arith.constant 0 : i32
    %c0_i32_1 = arith.constant 0 : i32
    return %c0_i32, %c0_i32_0 : i32, i32
  }
  func.func @transform_3(%arg0: i32, %arg1: i32) -> (i32, i32) {
    %c0_i32 = arith.constant 0 : i32
    %c0_i32_0 = arith.constant 0 : i32
    %c0_i32_1 = arith.constant 0 : i32
    return %c0_i32, %c0_i32_0 : i32, i32
  }
  func.func @transform_4(%arg0: i32, %arg1: i32) -> (i32, i32) {
    %c0_i32 = arith.constant 0 : i32
    %c0_i32_0 = arith.constant 0 : i32
    %c0_i32_1 = arith.constant 0 : i32
    return %c0_i32, %c0_i32_0 : i32, i32
  }
  func.func @transform_5(%arg0: i32, %arg1: i32) -> (i32, i32, i32, i32) {
    %c0_i32 = arith.constant 0 : i32
    %c0_i32_0 = arith.constant 0 : i32
    %c0_i32_1 = arith.constant 0 : i32
    return %arg0, %arg1, %c0_i32, %c0_i32_0 : i32, i32, i32, i32
  }
  func.func @transform_6(%arg0: i32, %arg1: i32) -> (i32, i32, i32, i32) {
    %c0_i32 = arith.constant 0 : i32
    %c0_i32_0 = arith.constant 0 : i32
    %c0_i32_1 = arith.constant 0 : i32
    return %arg0, %arg1, %c0_i32, %c0_i32_0 : i32, i32, i32, i32
  }
}

</mosaic_0001>

<bundles_post_ra>
// kernel: mul.1
= control target key start
LH: loop header
LB: loop body
LE: loop exit
PB: predicated region body
PF: predicated region fallthrough
CT: control target
= control target key end

     0   :  { %s34_s0 = inlined_call_operand.vmem [shape: f32[1,128], index: 0, kind: input, shape index: {}]   ;;  %s35_s1 = inlined_call_operand.vmem [shape: f32[1,128], index: 1, kind: input, shape index: {}]   ;;  %s36_s2 = inlined_call_operand.vmem [shape: f32[1,128], index: 2, kind: output, shape index: {}]  }
   0x1   :  { %v3_v0 = vld [vmem:[%s34_s0] sm:$0x1] }
   0x2   :  { %v4_v1 = vld [vmem:[%s35_s1] sm:$0x1] }
   0x3   :  { %v7_v2 = vmul.f32 %v4_v1, %v3_v0 }
   0x5   :  { %9 = vst [vmem:[%s36_s2] sm:$0x1] %v7_v2 }

// kernel: double_conv.5
= control target key start
LH: loop header
LB: loop body
LE: loop exit
PB: predicated region body
PF: predicated region fallthrough
CT: control target
= control target key end

     0   :  { %s626_s12 = smov 0   ;;  %s773_s0 = inlined_call_operand.vmem [shape: bf16[2,16,16,128], index: 0, kind: input, shape index: {}]   ;;  %s774_s1 = inlined_call_operand.vmem [shape: f32[1,128], index: 1, kind: input, shape index: {}]   ;;  %s775_s2 = inlined_call_operand.vmem [shape: f32[1,128], index: 2, kind: input, shape index: {}]   ;;  %s776_s3 = inlined_call_operand.vmem [shape: f32[2,16,16,128], index: 3, kind: output, shape index: {}]  }
   0x1 LB: > { %s496_s13 = sadd.s32 4294967295, %s604_s12   ;;  %p500_p0 = scmp.ge.s32.totalorder %s604_s12, 1  ;;  %s604_s12 = sphi %s626_s12, %s13_s12  }
   0x2   : > { %p137_p1 = scmp.lt.s32.totalorder %s604_s12, 3 }
   0x4   : > { %p138_p2 = pnand %p500_p0, %p137_p1 }
   0x5   : > { %p161_p3 = scmp.lt.s32.totalorder (!%p138_p2), %s496_s13, 1 }
   0x6   : > { %141 = sbr.rel (%p138_p2) target bundleno = 69 (0x45), region = 32 }
   0xb   : > { %s778_s13 = smov (!%p161_p3, %s496_s13), 1  ;;  %v645_v0 = vld [vmem:[%s774_s1] ss:$0 sm:$0xff] }
   0xc   : > { %s509_s14 = sshll.u32 %s778_s13, 7  ;;  %v654_v9 = vld [vmem:[%s775_s2] ss:$0 sm:$0xff]  ;;  %s510_s22 = sshll.u32 %s778_s13, 8 }
   0xd   : > { %s640_s17 = scalar_lea.vmem %s773_s0, %s509_s14  ;;  %s676_s25 = scalar_lea.vmem %s776_s3, %s510_s22 }
   0xe   : > { %v512_v1 = vld [vmem:[%s640_s17] sm:$0xff]   ;;  %v575_v2 = vld [vmem:[%s640_s17 + $0x8] sm:$0xff]   ;;  %v576_v3 = vld [vmem:[%s640_s17 + $0x10] sm:$0xff]  }
   0xf   : > { %v513_v4 = vunpack.c.l.bf16 %v512_v1  ;;  %v514_v5 = vunpack.c.h.bf16 %v512_v1  ;;  %v517_v6 = vunpack.c.l.bf16 %v575_v2  ;;  %v518_v7 = vunpack.c.h.bf16 %v575_v2  ;;  %v577_v8 = vld [vmem:[%s640_s17 + $0x18] sm:$0xff]   ;;  %v578_v37 = vld [vmem:[%s640_s17 + $0x20] sm:$0xff]   ;;  %v579_v41 = vld [vmem:[%s640_s17 + $0x28] sm:$0xff]  }
  0x10   : > { %v521_v10 = vunpack.c.l.bf16 %v576_v3  ;;  %v522_v11 = vunpack.c.h.bf16 %v576_v3  ;;  %v525_v12 = vunpack.c.l.bf16 %v577_v8  ;;  %v526_v13 = vunpack.c.h.bf16 %v577_v8  ;;  %v580_v42 = vld [vmem:[%s640_s17 + $0x30] sm:$0xff]   ;;  %v581_v49 = vld [vmem:[%s640_s17 + $0x38] sm:$0xff]  }
  0x11   : > { %v242_v14 = vmul.f32 %v513_v4, %v645_v0  ;;  %v243_v15 = vmul.f32 %v514_v5, %v645_v0  ;;  %v244_v16 = vmul.f32 %v517_v6, %v645_v0  ;;  %v245_v17 = vmul.f32 %v518_v7, %v645_v0  ;;  %v582_v7 = vld [vmem:[%s640_s17 + $0x40] sm:$0xff]  }
  0x12   : > { %v246_v18 = vmul.f32 %v521_v10, %v645_v0  ;;  %v247_v19 = vmul.f32 %v522_v11, %v645_v0  ;;  %v248_v20 = vmul.f32 %v525_v12, %v645_v0  ;;  %v249_v21 = vmul.f32 %v526_v13, %v645_v0 }
  0x13   : > { %v281_v22 = vadd.f32 %v654_v9, %v242_v14  ;;  %v282_v23 = vadd.f32 %v654_v9, %v243_v15  ;;  %v283_v24 = vadd.f32 %v654_v9, %v244_v16  ;;  %v284_v25 = vadd.f32 %v654_v9, %v245_v17 }
  0x14   : > { %v285_v26 = vadd.f32 %v654_v9, %v246_v18  ;;  %v286_v27 = vadd.f32 %v654_v9, %v247_v19  ;;  %v287_v28 = vadd.f32 %v654_v9, %v248_v20  ;;  %v288_v29 = vadd.f32 %v654_v9, %v249_v21  ;;  %v583_v20 = vld [vmem:[%s640_s17 + $0x48] sm:$0xff]  }
  0x15   : > { %vm313_vm0 = vcmp.ge.f32.partialorder %v281_v22, 0.0  ;;  %v345_v30 = vmul.f32 0.2, %v281_v22  ;;  %vm314_vm1 = vcmp.ge.f32.partialorder %v282_v23, 0.0  ;;  %v346_v31 = vmul.f32 0.2, %v282_v23 }
  0x16   : > { %vm315_vm2 = vcmp.ge.f32.partialorder %v283_v24, 0.0  ;;  %v347_v32 = vmul.f32 0.2, %v283_v24  ;;  %vm316_vm3 = vcmp.ge.f32.partialorder %v284_v25, 0.0  ;;  %v348_v33 = vmul.f32 0.2, %v284_v25 }
  0x17   : > { %v377_v34 = vsel %vm313_vm0, %v281_v22, %v345_v30  ;;  %v378_v35 = vsel %vm314_vm1, %v282_v23, %v346_v31  ;;  %vm317_vm4 = vcmp.ge.f32.partialorder %v285_v26, 0.0  ;;  %v349_v36 = vmul.f32 0.2, %v285_v26 }
  0x18   : > { %409 = vst [vmem:[%s676_s25] sm:$0xff] %v377_v34  ;;  %410 = vst [vmem:[%s676_s25 + $0x8] sm:$0xff] %v378_v35  ;;  %v379_v38 = vsel %vm315_vm2, %v283_v24, %v347_v32  ;;  %v380_v39 = vsel %vm316_vm3, %v284_v25, %v348_v33  ;;  %vm318_vm5 = vcmp.ge.f32.partialorder %v286_v27, 0.0  ;;  %v350_v40 = vmul.f32 0.2, %v286_v27  ;;  %v584_v25 = vld [vmem:[%s640_s17 + $0x50] sm:$0xff]  }
  0x19   : > { %411 = vst [vmem:[%s676_s25 + $0x10] sm:$0xff] %v379_v38  ;;  %412 = vst [vmem:[%s676_s25 + $0x18] sm:$0xff] %v380_v39  ;;  %v381_v43 = vsel %vm317_vm4, %v285_v26, %v349_v36  ;;  %vm319_vm6 = vcmp.ge.f32.partialorder %v287_v28, 0.0  ;;  %v351_v44 = vmul.f32 0.2, %v287_v28  ;;  %vm320_vm7 = vcmp.ge.f32.partialorder %v288_v29, 0.0 }
  0x1a   : > { %413 = vst [vmem:[%s676_s25 + $0x20] sm:$0xff] %v381_v43  ;;  %v382_v45 = vsel %vm318_vm5, %v286_v27, %v350_v40  ;;  %v352_v46 = vmul.f32 0.2, %v288_v29  ;;  %v529_v47 = vunpack.c.l.bf16 %v578_v37  ;;  %v530_v48 = vunpack.c.h.bf16 %v578_v37  ;;  %v585_v43 = vld [vmem:[%s640_s17 + $0x58] sm:$0xff]  }
  0x1b   : > { %414 = vst [vmem:[%s676_s25 + $0x28] sm:$0xff] %v382_v45  ;;  %v383_v50 = vsel %vm319_vm6, %v287_v28, %v351_v44  ;;  %v533_v51 = vunpack.c.l.bf16 %v579_v41  ;;  %v534_v52 = vunpack.c.h.bf16 %v579_v41  ;;  %v537_v53 = vunpack.c.l.bf16 %v580_v42 }
  0x1c   : > { %415 = vst [vmem:[%s676_s25 + $0x30] sm:$0xff] %v383_v50  ;;  %v384_v54 = vsel %vm320_vm7, %v288_v29, %v352_v46  ;;  %v250_v55 = vmul.f32 %v529_v47, %v645_v0  ;;  %v251_v56 = vmul.f32 %v530_v48, %v645_v0  ;;  %v538_v57 = vunpack.c.h.bf16 %v580_v42 }
  0x1d   : > { %416 = vst [vmem:[%s676_s25 + $0x38] sm:$0xff] %v384_v54  ;;  %v252_v58 = vmul.f32 %v533_v51, %v645_v0  ;;  %v253_v59 = vmul.f32 %v534_v52, %v645_v0  ;;  %v254_v60 = vmul.f32 %v537_v53, %v645_v0  ;;  %v541_v61 = vunpack.c.l.bf16 %v581_v49  ;;  %v586_v54 = vld [vmem:[%s640_s17 + $0x60] sm:$0xff]  }
  0x1e   : > { %v289_v62 = vadd.f32 %v654_v9, %v250_v55  ;;  %v290_v63 = vadd.f32 %v654_v9, %v251_v56  ;;  %v255_v1 = vmul.f32 %v538_v57, %v645_v0  ;;  %v542_v2 = vunpack.c.h.bf16 %v581_v49 }
  0x1f   : > { %v291_v3 = vadd.f32 %v654_v9, %v252_v58  ;;  %v292_v4 = vadd.f32 %v654_v9, %v253_v59  ;;  %v293_v5 = vadd.f32 %v654_v9, %v254_v60  ;;  %v256_v6 = vmul.f32 %v541_v61, %v645_v0 }
  0x20   : > { %vm321_vm8 = vcmp.ge.f32.partialorder %v289_v62, 0.0  ;;  %v353_v8 = vmul.f32 0.2, %v289_v62  ;;  %vm322_vm9 = vcmp.ge.f32.partialorder %v290_v63, 0.0  ;;  %v354_v10 = vmul.f32 0.2, %v290_v63 }
  0x21   : > { %vm323_vm10 = vcmp.ge.f32.partialorder %v291_v3, 0.0  ;;  %v355_v11 = vmul.f32 0.2, %v291_v3  ;;  %vm324_vm11 = vcmp.ge.f32.partialorder %v292_v4, 0.0  ;;  %v356_v12 = vmul.f32 0.2, %v292_v4 }
  0x22   : > { %v385_v13 = vsel %vm321_vm8, %v289_v62, %v353_v8  ;;  %v386_v14 = vsel %vm322_vm9, %v290_v63, %v354_v10  ;;  %vm325_vm12 = vcmp.ge.f32.partialorder %v293_v5, 0.0  ;;  %v357_v15 = vmul.f32 0.2, %v293_v5 }
  0x23   : > { %417 = vst [vmem:[%s676_s25 + $0x40] sm:$0xff] %v385_v13  ;;  %418 = vst [vmem:[%s676_s25 + $0x48] sm:$0xff] %v386_v14  ;;  %v387_v16 = vsel %vm323_vm10, %v291_v3, %v355_v11  ;;  %v388_v17 = vsel %vm324_vm11, %v292_v4, %v356_v12  ;;  %v294_v18 = vadd.f32 %v654_v9, %v255_v1  ;;  %v545_v23 = vunpack.c.l.bf16 %v582_v7  ;;  %v587_v1 = vld [vmem:[%s640_s17 + $0x68] sm:$0xff]  }
  0x24   : > { %v295_v19 = vadd.f32 %v654_v9, %v256_v6  ;;  %419 = vst [vmem:[%s676_s25 + $0x50] sm:$0xff] %v387_v16  ;;  %420 = vst [vmem:[%s676_s25 + $0x58] sm:$0xff] %v388_v17  ;;  %v389_v21 = vsel %vm325_vm12, %v293_v5, %v357_v15  ;;  %v257_v22 = vmul.f32 %v542_v2, %v645_v0  ;;  %v546_v24 = vunpack.c.h.bf16 %v582_v7  ;;  %v588_v2 = vld [vmem:[%s640_s17 + $0x70] sm:$0xff]  }
  0x25   : > { %421 = vst [vmem:[%s676_s25 + $0x60] sm:$0xff] %v389_v21  ;;  %vm326_vm13 = vcmp.ge.f32.partialorder %v294_v18, 0.0  ;;  %v358_v26 = vmul.f32 0.2, %v294_v18  ;;  %v258_v29 = vmul.f32 %v545_v23, %v645_v0  ;;  %v549_v31 = vunpack.c.l.bf16 %v583_v20  ;;  %v589_v21 = vld [vmem:[%s640_s17 + $0x78] sm:$0xff]  }
  0x26   : > { %vm327_vm14 = vcmp.ge.f32.partialorder %v295_v19, 0.0  ;;  %v359_v27 = vmul.f32 0.2, %v295_v19  ;;  %v296_v28 = vadd.f32 %v654_v9, %v257_v22  ;;  %v259_v30 = vmul.f32 %v546_v24, %v645_v0 }
  0x27   : > { %v390_v32 = vsel %vm326_vm13, %v294_v18, %v358_v26  ;;  %v550_v34 = vunpack.c.h.bf16 %v583_v20  ;;  %v553_v35 = vunpack.c.l.bf16 %v584_v25  ;;  %v297_v37 = vadd.f32 %v654_v9, %v258_v29 }
  0x28   : > { %v391_v33 = vsel %vm327_vm14, %v295_v19, %v359_v27  ;;  %422 = vst [vmem:[%s676_s25 + $0x68] sm:$0xff] %v390_v32  ;;  %vm328_vm15 = vcmp.ge.f32.partialorder %v296_v28, 0.0  ;;  %v360_v36 = vmul.f32 0.2, %v296_v28  ;;  %v298_v38 = vadd.f32 %v654_v9, %v259_v30 }
  0x29   : > { %423 = vst [vmem:[%s676_s25 + $0x70] sm:$0xff] %v391_v33  ;;  %v260_v39 = vmul.f32 %v549_v31, %v645_v0  ;;  %v261_v40 = vmul.f32 %v550_v34, %v645_v0  ;;  %v262_v41 = vmul.f32 %v553_v35, %v645_v0  ;;  %v554_v42 = vunpack.c.h.bf16 %v584_v25 }
  0x2a   : > { %v392_v44 = vsel %vm328_vm15, %v296_v28, %v360_v36  ;;  %vm329_vm0 = vcmp.ge.f32.partialorder %v297_v37, 0.0  ;;  %v361_v45 = vmul.f32 0.2, %v297_v37  ;;  %vm330_vm1 = vcmp.ge.f32.partialorder %v298_v38, 0.0 }
  0x2b   : > { %424 = vst [vmem:[%s676_s25 + $0x78] sm:$0xff] %v392_v44  ;;  %v362_v46 = vmul.f32 0.2, %v298_v38  ;;  %v299_v47 = vadd.f32 %v654_v9, %v260_v39  ;;  %v300_v48 = vadd.f32 %v654_v9, %v261_v40  ;;  %v301_v49 = vadd.f32 %v654_v9, %v262_v41 }
  0x2c   : > { %v393_v50 = vsel %vm329_vm0, %v297_v37, %v361_v45  ;;  %v263_v51 = vmul.f32 %v554_v42, %v645_v0  ;;  %v557_v52 = vunpack.c.l.bf16 %v585_v43  ;;  %v558_v53 = vunpack.c.h.bf16 %v585_v43 }
  0x2d   : > { %425 = vst [vmem:[%s676_s25 + $0x80] sm:$0xff] %v393_v50  ;;  %v394_v55 = vsel %vm330_vm1, %v298_v38, %v362_v46  ;;  %vm331_vm2 = vcmp.ge.f32.partialorder %v299_v47, 0.0  ;;  %v363_v56 = vmul.f32 0.2, %v299_v47  ;;  %vm332_vm3 = vcmp.ge.f32.partialorder %v300_v48, 0.0 }
  0x2e   : > { %426 = vst [vmem:[%s676_s25 + $0x88] sm:$0xff] %v394_v55  ;;  %v364_v57 = vmul.f32 0.2, %v300_v48  ;;  %vm333_vm4 = vcmp.ge.f32.partialorder %v301_v49, 0.0  ;;  %v365_v58 = vmul.f32 0.2, %v301_v49  ;;  %v302_v59 = vadd.f32 %v654_v9, %v263_v51 }
  0x2f   : > { %v395_v60 = vsel %vm331_vm2, %v299_v47, %v363_v56  ;;  %v264_v61 = vmul.f32 %v557_v52, %v645_v0  ;;  %v265_v62 = vmul.f32 %v558_v53, %v645_v0  ;;  %v561_v63 = vunpack.c.l.bf16 %v586_v54 }
  0x30   : > { %427 = vst [vmem:[%s676_s25 + $0x90] sm:$0xff] %v395_v60  ;;  %v396_v3 = vsel %vm332_vm3, %v300_v48, %v364_v57  ;;  %v397_v4 = vsel %vm333_vm4, %v301_v49, %v365_v58  ;;  %vm334_vm5 = vcmp.ge.f32.partialorder %v302_v59, 0.0  ;;  %v366_v5 = vmul.f32 0.2, %v302_v59 }
  0x31   : > { %428 = vst [vmem:[%s676_s25 + $0x98] sm:$0xff] %v396_v3  ;;  %429 = vst [vmem:[%s676_s25 + $0xa0] sm:$0xff] %v397_v4  ;;  %v303_v6 = vadd.f32 %v654_v9, %v264_v61  ;;  %v304_v7 = vadd.f32 %v654_v9, %v265_v62  ;;  %v266_v8 = vmul.f32 %v561_v63, %v645_v0  ;;  %v562_v10 = vunpack.c.h.bf16 %v586_v54 }
  0x32   : > { %v398_v11 = vsel %vm334_vm5, %v302_v59, %v366_v5  ;;  %v565_v12 = vunpack.c.l.bf16 %v587_v1  ;;  %v566_v13 = vunpack.c.h.bf16 %v587_v1  ;;  %v569_v14 = vunpack.c.l.bf16 %v588_v2 }
  0x33   : > { %430 = vst [vmem:[%s676_s25 + $0xa8] sm:$0xff] %v398_v11  ;;  %vm335_vm6 = vcmp.ge.f32.partialorder %v303_v6, 0.0  ;;  %v367_v15 = vmul.f32 0.2, %v303_v6  ;;  %vm336_vm7 = vcmp.ge.f32.partialorder %v304_v7, 0.0  ;;  %v305_v17 = vadd.f32 %v654_v9, %v266_v8 }
  0x34   : > { %v368_v16 = vmul.f32 0.2, %v304_v7  ;;  %v267_v18 = vmul.f32 %v562_v10, %v645_v0  ;;  %v268_v19 = vmul.f32 %v565_v12, %v645_v0  ;;  %v269_v20 = vmul.f32 %v566_v13, %v645_v0 }
  0x35   : > { %v399_v22 = vsel %vm335_vm6, %v303_v6, %v367_v15  ;;  %v270_v24 = vmul.f32 %v569_v14, %v645_v0  ;;  %v570_v25 = vunpack.c.h.bf16 %v588_v2  ;;  %vm337_vm8 = vcmp.ge.f32.partialorder %v305_v17, 0.0 }
  0x36   : > { %v400_v23 = vsel %vm336_vm7, %v304_v7, %v368_v16  ;;  %431 = vst [vmem:[%s676_s25 + $0xb0] sm:$0xff] %v399_v22  ;;  %v369_v26 = vmul.f32 0.2, %v305_v17  ;;  %v306_v27 = vadd.f32 %v654_v9, %v267_v18  ;;  %v307_v28 = vadd.f32 %v654_v9, %v268_v19 }
  0x37   : > { %432 = vst [vmem:[%s676_s25 + $0xb8] sm:$0xff] %v400_v23  ;;  %v308_v29 = vadd.f32 %v654_v9, %v269_v20  ;;  %v309_v30 = vadd.f32 %v654_v9, %v270_v24  ;;  %v271_v31 = vmul.f32 %v570_v25, %v645_v0  ;;  %v573_v32 = vunpack.c.l.bf16 %v589_v21 }
  0x38   : > { %v401_v33 = vsel %vm337_vm8, %v305_v17, %v369_v26  ;;  %vm338_vm9 = vcmp.ge.f32.partialorder %v306_v27, 0.0  ;;  %v370_v34 = vmul.f32 0.2, %v306_v27  ;;  %vm339_vm10 = vcmp.ge.f32.partialorder %v307_v28, 0.0 }
  0x39   : > { %433 = vst [vmem:[%s676_s25 + $0xc0] sm:$0xff] %v401_v33  ;;  %v371_v35 = vmul.f32 0.2, %v307_v28  ;;  %vm340_vm11 = vcmp.ge.f32.partialorder %v308_v29, 0.0  ;;  %v372_v36 = vmul.f32 0.2, %v308_v29  ;;  %v310_v39 = vadd.f32 %v654_v9, %v271_v31 }
  0x3a   : > { %vm341_vm12 = vcmp.ge.f32.partialorder %v309_v30, 0.0  ;;  %v402_v37 = vsel %vm338_vm9, %v306_v27, %v370_v34  ;;  %v373_v38 = vmul.f32 0.2, %v309_v30  ;;  %v272_v40 = vmul.f32 %v573_v32, %v645_v0 }
  0x3b   : > { %434 = vst [vmem:[%s676_s25 + $0xc8] sm:$0xff] %v402_v37  ;;  %v403_v41 = vsel %vm339_vm10, %v307_v28, %v371_v35  ;;  %v404_v42 = vsel %vm340_vm11, %v308_v29, %v372_v36  ;;  %v574_v43 = vunpack.c.h.bf16 %v589_v21  ;;  %vm342_vm13 = vcmp.ge.f32.partialorder %v310_v39, 0.0 }
  0x3c   : > { %435 = vst [vmem:[%s676_s25 + $0xd0] sm:$0xff] %v403_v41  ;;  %436 = vst [vmem:[%s676_s25 + $0xd8] sm:$0xff] %v404_v42  ;;  %v405_v44 = vsel %vm341_vm12, %v309_v30, %v373_v38  ;;  %v374_v45 = vmul.f32 0.2, %v310_v39  ;;  %v311_v46 = vadd.f32 %v654_v9, %v272_v40 }
  0x3d   : > { %437 = vst [vmem:[%s676_s25 + $0xe0] sm:$0xff] %v405_v44  ;;  %v273_v47 = vmul.f32 %v574_v43, %v645_v0 }
  0x3e   : > { %v406_v48 = vsel %vm342_vm13, %v310_v39, %v374_v45  ;;  %vm343_vm14 = vcmp.ge.f32.partialorder %v311_v46, 0.0  ;;  %v375_v49 = vmul.f32 0.2, %v311_v46 }
  0x3f   : > { %438 = vst [vmem:[%s676_s25 + $0xe8] sm:$0xff] %v406_v48  ;;  %v312_v50 = vadd.f32 %v654_v9, %v273_v47 }
  0x40   : > { %v407_v51 = vsel %vm343_vm14, %v311_v46, %v375_v49 }
  0x41   : > { %439 = vst [vmem:[%s676_s25 + $0xf0] sm:$0xff] %v407_v51  ;;  %vm344_vm15 = vcmp.ge.f32.partialorder %v312_v50, 0.0  ;;  %v376_v52 = vmul.f32 0.2, %v312_v50 }
  0x43   : > { %v408_v53 = vsel %vm344_vm15, %v312_v50, %v376_v52 }
  0x44   : > { %440 = vst [vmem:[%s676_s25 + $0xf8] sm:$0xff] %v408_v53 }
  0x45 PF: > { %s13_s12 = sadd.s32 1, %s604_s12  }
  0x46   : > { %p10_p4 = scmp.ge.s32.totalorder %s13_s12, 4  }
  0x48   :  { %12 = sbr.rel (!%p10_p4) target bundleno = 1 (0x1), region = 62 }

// kernel: double_conv.3
= control target key start
LH: loop header
LB: loop body
LE: loop exit
PB: predicated region body
PF: predicated region fallthrough
CT: control target
= control target key end

     0   :  { %s2903_s15 = smov 0   ;;  %s2905_s16 = smov 0   ;;  %s3615_s0 = inlined_call_operand.vmem [shape: f32[2,16,16,128], index: 0, kind: input, shape index: {}]   ;;  %s3616_s1 = inlined_call_operand.vmem [shape: bf16[1152,128], index: 1, kind: input, shape index: {}]   ;;  %s3617_s2 = inlined_call_operand.vmem [shape: f32[1,128], index: 2, kind: input, shape index: {}]   ;;  %s3618_s3 = inlined_call_operand.vmem [shape: bf16[2,16,16,128], index: 3, kind: output, shape index: {0}]   ;;  %s3619_s4 = inlined_call_operand.vmem [shape: f32[2,2,2,128], index: 4, kind: output, shape index: {1}]  }
   0x1   :  { %s2907_s17 = smov 0   ;;  %s2909_s18 = smov 0  }
   0x2   :  { %s2911_s19 = smov 0  }
   0x3 LB: > { %s24_s20 = sadd.s32 1, %s2865_s17  ;;  %s27_s21 = sadd.s32 1, %s2869_s18  ;;  %s2873_s19 = sphi %s2911_s19, %s15_s19   ;;  %s2869_s18 = sphi %s2909_s18, %s3665_s18   ;;  %s2865_s17 = sphi %s2907_s17, %s3664_s17   ;;  %s2861_s16 = sphi %s2905_s16, %s3663_s16   ;;  %s2857_s15 = sphi %s2903_s15, %s3662_s15  }
   0x4   : > { %p25_p0 = scmp.ge.s32.totalorder %s24_s20, 2  ;;  %p2221_p1 = scmp.ge.s32.totalorder %s2873_s19, 1 }
   0x5   : > { %p147_p2 = scmp.lt.s32.totalorder %s2873_s19, 5 }
   0x6   : > { %s3667_s20 = smov (%p25_p0, %s24_s20), 0  ;;  %s3669_s21 = smov (!%p25_p0, %s27_s21), %s2869_s18 }
   0x7   : > { %p148_p3 = pnand %p2221_p1, %p147_p2  ;;  %p29_p4 = scmp.ge.s32.totalorder %s3669_s21, 2 }
   0x9   : > { %s3671_s21 = smov (%p29_p4, %s3669_s21), 0  ;;  %151 = sbr.rel (%p148_p3) target bundleno = 487 (0x1e7), region = 28 }
   0xe   : > { %s2222_s22 = sshll.u32 %s2857_s15, 3  ;;  %p180_p5 = scmp.lt.s32.totalorder %s2861_s16, 1 }
   0xf   : > { %p182_p6 = scmp.lt.s32.totalorder %s2222_s22, 15  ;;  %p192_p7 = scmp.lt.s32.totalorder %s2857_s15, 1 }
  0x10   : > { %s181_s23 = scalar_select %p180_p5, %s2861_s16, 1 }
  0x11   : > { %s183_s24 = scalar_select %p182_p6, %s2222_s22, 15 }
  0x12   : > { %s2224_s25 = sshll.u32 %s181_s23, 5  ;;  %s2226_s26 = sshll.u32 %s181_s23, 1 }
  0x13   : > { %s2223_s27 = sshll.u32 %s183_s24, 1  ;;  %s2229_s28 = sadd.s32 4294967295, %s2222_s22 }
  0x14   : > { %s186_s29 = sadd.s32 %s2224_s25, %s2223_s27  ;;  %p201_p8 = scmp.gt.s32.totalorder %s2229_s28, 0 }
  0x15   : > { %s2225_s30 = sshll.u32 %s186_s29, 2  ;;  %s203_s5 = sadd.s32 8, %s2222_s22 }
  0x16   : > { %s2944_s8 = scalar_lea.vmem %s3618_s3, %s2225_s30  ;;  %p204_p9 = scmp.lt.s32.totalorder %s203_s5, 15 }
  0x17   : > { %s193_s9 = scalar_select %p192_p7, %s2857_s15, 1 }
  0x18   : > { %s3673_s28 = smov (!%p201_p8, %s2229_s28), 0  ;;  %s2330_s11 = sshll.u32 %s2857_s15, 7 }
  0x19   : > { %s195_s10 = sadd.s32 %s2226_s26, %s193_s9  ;;  %s2951_s13 = sshll.u32 %s2861_s16, 8 }
  0x1a   : > { %s2227_s12 = sshll.u32 %s195_s10, 1  ;;  %s208_s22 = sadd.s32 %s2330_s11, %s2951_s13 }
  0x1b   : > { %s2956_s24 = scalar_lea.vmem %s3619_s4, %s2227_s12  ;;  %s3675_s5 = smov (!%p204_p9, %s203_s5), 15 }
  0x1c   : > { %s2964_s29 = scalar_lea.vmem %s3615_s0, %s208_s22 }
  0x1d   : > { %v258_v0 = vld [vmem:[%s2964_s29] sm:$0xff]  ;;  %v260_v1 = vld [vmem:[%s2964_s29 + $0x8] sm:$0xff]  ;;  %v262_v2 = vld [vmem:[%s2964_s29 + $0x10] sm:$0xff] }
  0x1e   : > { %259 = vst [vmem:[#allocation2 + $0x40] sm:$0xff] %v258_v0  ;;  %261 = vst [vmem:[#allocation2 + $0xc0] sm:$0xff] %v260_v1  ;;  %v264_v3 = vld [vmem:[%s2964_s29 + $0x18] sm:$0xff]  ;;  %v266_v4 = vld [vmem:[%s2964_s29 + $0x20] sm:$0xff] }
  0x1f   : > { %263 = vst [vmem:[#allocation2 + $0x48] sm:$0xff] %v262_v2  ;;  %v268_v5 = vld [vmem:[%s2964_s29 + $0x28] sm:$0xff]  ;;  %265 = vst [vmem:[#allocation2 + $0xb0] sm:$0xff] %v264_v3  ;;  %v270_v6 = vld [vmem:[%s2964_s29 + $0x30] sm:$0xff] }
  0x20   : > { %267 = vst [vmem:[#allocation2 + $0xd8] sm:$0xff] %v266_v4  ;;  %269 = vst [vmem:[#allocation2 + $0x90] sm:$0xff] %v268_v5  ;;  %v272_v7 = vld [vmem:[%s2964_s29 + $0x38] sm:$0xff]  ;;  %v274_v8 = vld [vmem:[%s2964_s29 + $0x40] sm:$0xff] }
  0x21   : > { %271 = vst [vmem:[#allocation2 + $0x38] sm:$0xff] %v270_v6  ;;  %273 = vst [vmem:[#allocation2 + $0x58] sm:$0xff] %v272_v7  ;;  %v276_v9 = vld [vmem:[%s2964_s29 + $0x48] sm:$0xff]  ;;  %v278_v10 = vld [vmem:[%s2964_s29 + $0x50] sm:$0xff] }
  0x22   : > { %275 = vst [vmem:[#allocation2 + $0x8] sm:$0xff] %v274_v8  ;;  %v280_v11 = vld [vmem:[%s2964_s29 + $0x58] sm:$0xff]  ;;  %277 = vst [vmem:[#allocation2 + $0x78] sm:$0xff] %v276_v9  ;;  %v282_v12 = vld [vmem:[%s2964_s29 + $0x60] sm:$0xff] }
  0x23   : > { %279 = vst [vmem:[#allocation2 + $0x138] sm:$0xff] %v278_v10  ;;  %281 = vst [vmem:[#allocation2 + $0x18] sm:$0xff] %v280_v11  ;;  %v284_v13 = vld [vmem:[%s2964_s29 + $0x68] sm:$0xff]  ;;  %v286_v14 = vld [vmem:[%s2964_s29 + $0x70] sm:$0xff] }
  0x24   : > { %283 = vst [vmem:[#allocation2 + $0x50] sm:$0xff] %v282_v12  ;;  %285 = vst [vmem:[#allocation2 + $0xa0] sm:$0xff] %v284_v13  ;;  %v288_v15 = vld [vmem:[%s2964_s29 + $0x78] sm:$0xff] }
  0x25   : > { %287 = vst [vmem:[#allocation2 + $0x108] sm:$0xff] %v286_v14  ;;  %289 = vst [vmem:[#allocation2 + $0x68] sm:$0xff] %v288_v15 }
  0x26   : > { %297 = vsyncadd [#allocation3], 2048  ;;  %s2232_s16 = sshll.u32 %s3673_s28, 4 }
  0x27   : > { %s299_s26 = sadd.s32 %s2232_s16, %s2951_s13 }
  0x28   : > { %s300_s7 = scalar_lea.vmem %s3615_s0, %s299_s26 }
  0x29   : > { %v336_v16 = vld [vmem:[%s300_s7] sm:$0xff]  ;;  %v338_v17 = vld [vmem:[%s300_s7 + $0x8] sm:$0xff] }
  0x2a   : > { %337 = vst [vmem:[#allocation2 + $0xf8] sm:$0xff] %v336_v16  ;;  %339 = vst [vmem:[#allocation2 + $0x98] sm:$0xff] %v338_v17 }
  0x2b   : > { %347 = vsyncadd [#allocation3 + $0x1], 256  ;;  %s2233_s9 = sshll.u32 %s3675_s5, 4 }
  0x2c   : > { %s349_s10 = sadd.s32 %s2233_s9, %s2951_s13 }
  0x2d   : > { %s350_s14 = scalar_lea.vmem %s3615_s0, %s349_s10 }
  0x2e   : > { %v386_v18 = vld [vmem:[%s350_s14] sm:$0xff]  ;;  %v388_v19 = vld [vmem:[%s350_s14 + $0x8] sm:$0xff] }
  0x2f   : > { %387 = vst [vmem:[#allocation2 + $0x30] sm:$0xff] %v386_v18  ;;  %389 = vst [vmem:[#allocation2 + $0x130] sm:$0xff] %v388_v19 }
  0x30   : > { %397 = vsyncadd [#allocation3 + $0x2], 256 }
  0x31   : > { %2849 = dma.done.wait [#allocation3], 2048 }
  0x32   : > { %2850 = vsyncadd [#allocation3], 4294965248 }
  0x33   : > { %2851 = dma.done.wait [#allocation3 + $0x1], 256 }
  0x34   : > { %2852 = vsyncadd [#allocation3 + $0x1], 4294967040 }
  0x35   : > { %2853 = dma.done.wait [#allocation3 + $0x2], 256 }
  0x36   : > { %2854 = vsyncadd [#allocation3 + $0x2], 4294967040  ;;  %v2875_v20 = vmov 0.0   ;;  %p2234_p10 = scmp.ne.s32.totalorder %s2857_s15, 0 }
  0x37   : > { %408 = vst [vmem:[#allocation2 + $0x20] sm:$0xff] %v2875_v20  ;;  %409 = vst [vmem:[#allocation2 + $0x128] sm:$0xff] %v2875_v20 }
  0x38   : > { %410 = vst [vmem:[#allocation2 + $0x100] sm:$0xff] %v2875_v20  ;;  %411 = vst [vmem:[#allocation2 + $0x10] sm:$0xff] %v2875_v20 }
  0x39   : > { %412 = vst [vmem:[#allocation2 + $0x80] sm:$0xff] %v2875_v20  ;;  %413 = vst [vmem:[#allocation2 + $0xb8] sm:$0xff] %v2875_v20 }
  0x3a   : > { %414 = vst [vmem:[#allocation2 + $0xe0] sm:$0xff] %v2875_v20  ;;  %415 = vst [vmem:[#allocation2] sm:$0xff] %v2875_v20 }
  0x3b   : > { %416 = vst [vmem:[#allocation2 + $0xf0] sm:$0xff] %v2875_v20  ;;  %417 = vst [vmem:[#allocation2 + $0x118] sm:$0xff] %v2875_v20 }
  0x3c   : > { %418 = vst [vmem:[#allocation2 + $0xc8] sm:$0xff] %v2875_v20  ;;  %419 = vst [vmem:[#allocation2 + $0x120] sm:$0xff] %v2875_v20  ;;  %431 = sbr.rel (%p2234_p10) target bundleno = 68 (0x44), region = 134 }
  0x3d   : > { %420 = vst [vmem:[#allocation2 + $0xd0] sm:$0xff] %v2875_v20  ;;  %421 = vst [vmem:[#allocation2 + $0x110] sm:$0xff] %v2875_v20 }
  0x3e   : > { %422 = vst [vmem:[#allocation2 + $0x88] sm:$0xff] %v2875_v20  ;;  %423 = vst [vmem:[#allocation2 + $0xa8] sm:$0xff] %v2875_v20 }
  0x3f   : > { %424 = vst [vmem:[#allocation2 + $0x70] sm:$0xff] %v2875_v20  ;;  %425 = vst [vmem:[#allocation2 + $0x28] sm:$0xff] %v2875_v20 }
  0x40   : > { %426 = vst [vmem:[#allocation2 + $0x60] sm:$0xff] %v2875_v20  ;;  %427 = vst [vmem:[#allocation2 + $0xe8] sm:$0xff] %v2875_v20 }
  0x41   : > { %v2876_v21 = vmov 0.0  }
  0x42   : > { %432 = vst [vmem:[#allocation2 + $0x20] sm:$0xff] %v2876_v21  ;;  %433 = vst [vmem:[#allocation2 + $0xf8] sm:$0xff] %v2876_v21 }
  0x43   : > { %434 = vst [vmem:[#allocation2 + $0x98] sm:$0xff] %v2876_v21  ;;  %435 = vst [vmem:[#allocation2 + $0xc8] sm:$0xff] %v2876_v21 }
  0x44 PF: > { %p2235_p11 = scmp.ne.s32.totalorder %s2857_s15, 1 }
  0x46   : > { %439 = sbr.rel (%p2235_p11) target bundleno = 78 (0x4e), region = 138 }
  0x4b   : > { %v2877_v22 = vmov 0.0  }
  0x4c   : > { %441 = vst [vmem:[#allocation2 + $0x118] sm:$0xff] %v2877_v22  ;;  %442 = vst [vmem:[#allocation2 + $0x30] sm:$0xff] %v2877_v22 }
  0x4d   : > { %443 = vst [vmem:[#allocation2 + $0x130] sm:$0xff] %v2877_v22  ;;  %444 = vst [vmem:[#allocation2 + $0xe8] sm:$0xff] %v2877_v22 }
  0x4e PF: > { %v2757_v23 = vld [vmem:[%s3616_s1 + $0x78] sm:$0xff]   ;;  %v2761_v27 = vld [vmem:[%s3616_s1 + $0x70] sm:$0xff]   ;;  %v2765_v31 = vld [vmem:[%s3616_s1 + $0x68] sm:$0xff]   ;;  %vm666_vm0 = vcmask 1043456   ;;  %vm505_vm1 = vsmask.f32 4352 }
  0x4f   : > { %v2758_v24 = vld [vmem:[%s3616_s1 + $0xf8] sm:$0xff]   ;;  %2394 = vmatprep.subr.bf16.mxu0 %v2757_v23  ;;  %v2762_v28 = vld [vmem:[%s3616_s1 + $0xf0] sm:$0xff]   ;;  %v2766_v32 = vld [vmem:[%s3616_s1 + $0xe8] sm:$0xff]   ;;  %vm699_vm2 = vsmask.f32 3328  ;;  %vm2034_vm3 = vcmask 1040384  }
  0x50   : > { %v2759_v25 = vld [vmem:[%s3616_s1 + $0x38] sm:$0xff]   ;;  %2458 = vmatprep.subr.bf16.mxu1 %v2758_v24  ;;  %v2763_v29 = vld [vmem:[%s3616_s1 + $0x30] sm:$0xff]   ;;  %v2767_v33 = vld [vmem:[%s3616_s1 + $0x28] sm:$0xff]  }
  0x51   : > { %v2760_v26 = vld [vmem:[%s3616_s1 + $0xb8] sm:$0xff]   ;;  %2395 = vmatpush3.bf16.msra.mxu0 %v2759_v25  ;;  %v2764_v30 = vld [vmem:[%s3616_s1 + $0xb0] sm:$0xff]   ;;  %v2768_v34 = vld [vmem:[%s3616_s1 + $0xa8] sm:$0xff]  }
  0x52   : > { %2459 = vmatpush3.bf16.msra.mxu1 %v2760_v26  ;;  %2396 = vmatprep.subr.bf16.mxu0 %v2761_v27  ;;  %v2769_v35 = vld [vmem:[%s3616_s1 + $0x60] sm:$0xff]   ;;  %v2773_v39 = vld [vmem:[%s3616_s1 + $0x58] sm:$0xff]   ;;  %v2777_v43 = vld [vmem:[%s3616_s1 + $0x50] sm:$0xff]  }
  0x53   : > { %2460 = vmatprep.subr.bf16.mxu1 %v2762_v28  ;;  %v2770_v36 = vld [vmem:[%s3616_s1 + $0xe0] sm:$0xff]   ;;  %v2774_v40 = vld [vmem:[%s3616_s1 + $0xd8] sm:$0xff]   ;;  %v2778_v44 = vld [vmem:[%s3616_s1 + $0xd0] sm:$0xff]  }
  0x54   : > { %v2771_v37 = vld [vmem:[%s3616_s1 + $0x20] sm:$0xff]   ;;  %v2775_v41 = vld [vmem:[%s3616_s1 + $0x18] sm:$0xff]   ;;  %v2779_v45 = vld [vmem:[%s3616_s1 + $0x10] sm:$0xff]  }
  0x55   : > { %2397 = vmatpush3.bf16.msra.mxu0 %v2763_v29  ;;  %v2772_v38 = vld [vmem:[%s3616_s1 + $0xa0] sm:$0xff]   ;;  %v2776_v42 = vld [vmem:[%s3616_s1 + $0x98] sm:$0xff]   ;;  %v2780_v46 = vld [vmem:[%s3616_s1 + $0x90] sm:$0xff]  }
  0x56   : > { %2461 = vmatpush3.bf16.msra.mxu1 %v2764_v30  ;;  %2398 = vmatprep.subr.bf16.mxu0 %v2765_v31  ;;  %v2781_v47 = vld [vmem:[%s3616_s1 + $0x48] sm:$0xff]   ;;  %v2785_v51 = vld [vmem:[%s3616_s1 + $0x40] sm:$0xff]   ;;  %v446_v56 = vld [vmem:[#allocation2 + $0xf8] sm:$0xff] }
  0x57   : > { %2462 = vmatprep.subr.bf16.mxu1 %v2766_v32  ;;  %v2782_v48 = vld [vmem:[%s3616_s1 + $0xc8] sm:$0xff]   ;;  %v2786_v52 = vld [vmem:[%s3616_s1 + $0xc0] sm:$0xff]   ;;  %v447_v57 = vld [vmem:[#allocation2 + $0x98] sm:$0xff] }
  0x58   : > { %v2783_v49 = vld [vmem:[%s3616_s1 + $0x8] sm:$0xff]   ;;  %v2787_v53 = vld [vmem:[%s3616_s1] sm:$0xff]   ;;  %v2789_v6 = vld [vmem:[%s3616_s1 + $0x178] sm:$0xff]  }
  0x59   : > { %2399 = vmatpush3.bf16.msra.mxu0 %v2767_v33  ;;  %v2784_v50 = vld [vmem:[%s3616_s1 + $0x88] sm:$0xff]   ;;  %v2788_v54 = vld [vmem:[%s3616_s1 + $0x80] sm:$0xff]   ;;  %v455_v25 = vld [vmem:[#allocation2 + $0xb0] sm:$0xff] }
  0x5a   : > { %2463 = vmatpush3.bf16.msra.mxu1 %v2768_v34  ;;  %2400 = vmatprep.subr.bf16.mxu0 %v2769_v35  ;;  %v445_v55 = vld [vmem:[#allocation2 + $0x20] sm:$0xff]  ;;  %v448_v58 = vld [vmem:[#allocation2 + $0xc8] sm:$0xff]  ;;  %v456_v26 = vld [vmem:[#allocation2 + $0xd0] sm:$0xff] }
  0x5b   : > { %2464 = vmatprep.subr.bf16.mxu1 %v2770_v36  ;;  %v485_v59 = vpack.c.bf16 %v446_v56, %v445_v55  ;;  %v449_v60 = vld [vmem:[#allocation2 + $0x128] sm:$0xff]  ;;  %v450_v61 = vld [vmem:[#allocation2 + $0x40] sm:$0xff]  ;;  %v486_v62 = vpack.c.bf16 %v448_v58, %v447_v57  ;;  %v2790_v34 = vld [vmem:[%s3616_s1 + $0x138] sm:$0xff]  }
  0x5c   : > { %v451_v63 = vld [vmem:[#allocation2 + $0xc0] sm:$0xff]  ;;  %v487_v1 = vpack.c.bf16 %v450_v61, %v449_v60  ;;  %v454_v24 = vld [vmem:[#allocation2 + $0x48] sm:$0xff]  ;;  %v2792_v61 = vld [vmem:[%s3616_s1 + $0x130] sm:$0xff]  }
  0x5d   : > { %2401 = vmatpush3.bf16.msra.mxu0 %v2771_v37  ;;  %v452_v0 = vld [vmem:[#allocation2 + $0x120] sm:$0xff]  ;;  %v667_v2 = vrot.slane %v485_v59, 4  ;;  %v507_v4 = vshrl.u32 %v485_v59, 16  ;;  %v510_v5 = vshll.u32 %v485_v59, 16  ;;  %v668_v7 = vrot.slane %v486_v62, 4 }
  0x5e   : > { %2465 = vmatpush3.bf16.msra.mxu1 %v2772_v38  ;;  %2402 = vmatprep.subr.bf16.mxu0 %v2773_v39  ;;  %v3090_v3 = vpack.c.bf16 %v452_v0, %v451_v63  ;;  %v524_v8 = vshrl.u32 %v487_v1, 16  ;;  %v527_v9 = vshll.u32 %v487_v1, 16  ;;  %v515_v10 = vshrl.u32 %v486_v62, 16  ;;  %v453_v19 = vld [vmem:[#allocation2 + $0x100] sm:$0xff] }
  0x5f   : > { %2466 = vmatprep.subr.bf16.mxu1 %v2774_v40  ;;  %v509_v13 = vrot.slane %v507_v4, 3  ;;  %v512_v14 = vrot.slane %v510_v5, 4  ;;  %v669_v15 = vsel %vm666_vm0, %v667_v2, %v668_v7  ;;  %v518_v23 = vshll.u32 %v486_v62, 16  ;;  %v2791_v40 = vld [vmem:[%s3616_s1 + $0x170] sm:$0xff]   ;;  %v2794_v62 = vld [vmem:[%s3616_s1 + $0x1f8] sm:$0xff]  }
  0x60   : > { %v532_v11 = vshrl.u32 %v3090_v3, 16  ;;  %v535_v12 = vshll.u32 %v3090_v3, 16  ;;  %v526_v16 = vrot.slane %v524_v8, 3  ;;  %v529_v17 = vrot.slane %v527_v9, 4  ;;  %1443 = vmatprep.mubr.bf16.mxu0 %v669_v15  ;;  %v462_v15 = vld [vmem:[#allocation2 + $0x38] sm:$0xff] }
  0x61   : > { %2403 = vmatpush3.bf16.msra.mxu0 %v2775_v41  ;;  %v517_v18 = vrot.slane %v515_v10, 3  ;;  %v513_v22 = vor.u32 %v512_v14, %v509_v13  ;;  %v700_v28 = vrot.slane %v507_v4, 4  ;;  %v701_v29 = vrot.slane %v510_v5, 5  ;;  %v2795_v13 = vld [vmem:[%s3616_s1 + $0x128] sm:$0xff]   ;;  %v461_v14 = vld [vmem:[#allocation2 + $0x80] sm:$0xff] }
  0x62   : > { %2467 = vmatpush3.bf16.msra.mxu1 %v2776_v42  ;;  %2404 = vmatprep.subr.bf16.mxu0 %v2777_v43  ;;  %v534_v20 = vrot.slane %v532_v11, 3  ;;  %v537_v21 = vrot.slane %v535_v12, 4  ;;  %v530_v27 = vor.u32 %v529_v17, %v526_v16  ;;  %v703_v30 = vrot.slane %v515_v10, 4  ;;  %v463_v16 = vld [vmem:[#allocation2 + $0x58] sm:$0xff] }
  0x63   : > { %2468 = vmatprep.subr.bf16.mxu1 %v2778_v44  ;;  %v520_v32 = vrot.slane %v518_v23, 4  ;;  %v704_v33 = vrot.slane %v518_v23, 5  ;;  %v670_v35 = vrot.slane %v487_v1, 4  ;;  %v702_v36 = vor.u32 %v701_v29, %v700_v28 }
  0x64   : > { %v538_v31 = vor.u32 %v537_v21, %v534_v20  ;;  %v671_v37 = vrot.slane %v3090_v3, 4  ;;  %v489_v38 = vpack.c.bf16 %v454_v24, %v453_v19  ;;  %v3102_v39 = vpack.c.bf16 %v456_v26, %v455_v25  ;;  %v2796_v3 = vld [vmem:[%s3616_s1 + $0x1b8] sm:$0xff]   ;;  %v464_v20 = vld [vmem:[#allocation2 + $0x88] sm:$0xff]  ;;  %v2797_v25 = vld [vmem:[%s3616_s1 + $0x160] sm:$0xff]  }
  0x65   : > { %2405 = vmatpush3.bf16.msra.mxu0 %v2779_v45  ;;  %v521_v42 = vor.u32 %v520_v32, %v517_v18  ;;  %v705_v43 = vor.u32 %v704_v33, %v703_v30  ;;  %v707_v44 = vrot.slane %v524_v8, 4  ;;  %v457_v45 = vld [vmem:[#allocation2 + $0x10] sm:$0xff]  ;;  %v708_v56 = vrot.slane %v527_v9, 5  ;;  %v2793_v8 = vld [vmem:[%s3616_s1 + $0x168] sm:$0xff]  }
  0x66   : > { %2469 = vmatpush3.bf16.msra.mxu1 %v2780_v46  ;;  %2406 = vmatprep.subr.bf16.mxu0 %v2781_v47  ;;  %v3108_v41 = vsel %vm505_vm1, %v530_v27, %v538_v31  ;;  %v458_v46 = vld [vmem:[#allocation2 + $0xd8] sm:$0xff]  ;;  %v459_v47 = vld [vmem:[#allocation2 + $0x90] sm:$0xff]  ;;  %v552_v55 = vshll.u32 %v3102_v39, 16  ;;  %v710_v60 = vrot.slane %v532_v11, 4  ;;  %v711_v1 = vrot.slane %v535_v12, 5 }
  0x67   : > { %2470 = vmatprep.subr.bf16.mxu1 %v2782_v48  ;;  %1540 = vmatprep.mubr.bf16.mxu1 %v3108_v41  ;;  %v3112_v48 = vsel %vm666_vm0, %v670_v35, %v671_v37  ;;  %v709_v0 = vor.u32 %v708_v56, %v707_v44  ;;  %v673_v2 = vrot.slane %v489_v38, 4  ;;  %v674_v5 = vrot.slane %v3102_v39, 4  ;;  %v2799_v35 = vld [vmem:[%s3616_s1 + $0x120] sm:$0xff]   ;;  %v465_v44 = vld [vmem:[#allocation2 + $0xb8] sm:$0xff] }
  0x68   : > { %v554_v63 = vrot.slane %v552_v55, 4  ;;  %v712_v10 = vor.u32 %v711_v1, %v710_v60  ;;  %v718_v31 = vrot.slane %v552_v55, 5  ;;  %v3165_v37 = vpack.c.bf16 %v462_v15, %v461_v14  ;;  %v468_v55 = vld [vmem:[#allocation2 + $0xa8] sm:$0xff]  ;;  %v2801_v60 = vld [vmem:[%s3616_s1 + $0x158] sm:$0xff]  }
  0x69   : > { %2407 = vmatpush3.bf16.msra.mxu0 %v2783_v49  ;;  %v541_v49 = vshrl.u32 %v489_v38, 16  ;;  %v3149_v23 = vsel %vm666_vm0, %v673_v2, %v674_v5  ;;  %v2803_v2 = vld [vmem:[%s3616_s1 + $0x118] sm:$0xff]  }
  0x6a   : > { %2471 = vmatpush3.bf16.msra.mxu1 %v2784_v50  ;;  %2408 = vmatprep.subr.bf16.mxu0 %v2785_v51  ;;  %v544_v50 = vshll.u32 %v489_v38, 16  ;;  %v549_v51 = vshrl.u32 %v3102_v39, 16  ;;  %v3167_v38 = vpack.c.bf16 %v464_v20, %v463_v16  ;;  %v2800_v39 = vld [vmem:[%s3616_s1 + $0x1b0] sm:$0xff]   ;;  %v679_v15 = vrot.slane %v3165_v37, 4 }
  0x6b   : > { %2472 = vmatprep.subr.bf16.mxu1 %v2786_v52  ;;  %v460_v52 = vld [vmem:[#allocation2 + $0x110] sm:$0xff]  ;;  %v543_v57 = vrot.slane %v541_v49, 3  ;;  %v3134_v11 = vrot.slane %v541_v49, 4 }
  0x6c   : > { %v546_v58 = vrot.slane %v544_v50, 4  ;;  %v551_v59 = vrot.slane %v549_v51, 3  ;;  %v3129_v7 = vpack.c.bf16 %v460_v52, %v459_v47  ;;  %v3136_v12 = vrot.slane %v544_v50, 5  ;;  %v466_v50 = vld [vmem:[#allocation2 + $0x8] sm:$0xff]  ;;  %v472_v20 = vld [vmem:[#allocation2 + $0x70] sm:$0xff] }
  0x6d   : > { %2409 = vmatpush3.bf16.msra.mxu0 %v2787_v53  ;;  %v522_v53 = vsel %vm505_vm1, %v513_v22, %v521_v42  ;;  %v3146_v22 = vsel %vm699_vm2, %v709_v0, %v712_v10  ;;  %v717_v29 = vrot.slane %v549_v51, 4  ;;  %v583_v47 = vshrl.u32 %v3167_v38, 16  ;;  %v467_v51 = vld [vmem:[#allocation2 + $0x78] sm:$0xff] }
  0x6e   : > { %2473 = vmatpush3.bf16.msra.mxu1 %v2788_v54  ;;  %2522 = vmatprep.subr.bf16.mxu0 %v2789_v6  ;;  %v706_v54 = vsel %vm699_vm2, %v702_v36, %v705_v43  ;;  %v547_v4 = vor.u32 %v546_v58, %v543_v57  ;;  %v491_v6 = vpack.c.bf16 %v458_v46, %v457_v45  ;;  %v566_v19 = vshrl.u32 %v3129_v7, 16 }
  0x6f   : > { %2586 = vmatprep.subr.bf16.mxu1 %v2794_v62  ;;  %v555_v9 = vor.u32 %v554_v63, %v551_v59  ;;  %v569_v24 = vshll.u32 %v3129_v7, 16  ;;  %v677_v33 = vrot.slane %v3129_v7, 4  ;;  %v716_v42 = vor.u32 %v3136_v12, %v3134_v11 }
  0x70   : > { %1444 = vmatmul.mubr.bf16.vlgmr.msra.gmra.mxu0 %v522_v53  ;;  %v558_v17 = vshrl.u32 %v491_v6, 16  ;;  %v561_v18 = vshll.u32 %v491_v6, 16  ;;  %v568_v28 = vrot.slane %v566_v19, 3  ;;  %v676_v32 = vrot.slane %v491_v6, 4  ;;  %v2804_v6 = vld [vmem:[%s3616_s1 + $0x1a8] sm:$0xff]  }
  0x71   : > { %1541 = vmatmul.mubr.bf16.vlgmr.msra.gmra.mxu1 %v706_v54  ;;  %2523 = vmatpush3.bf16.msra.mxu0 %v2790_v34  ;;  %v3143_v21 = vsel %vm505_vm1, %v547_v4, %v555_v9  ;;  %v571_v30 = vrot.slane %v569_v24, 4  ;;  %v2798_v34 = vld [vmem:[%s3616_s1 + $0x1f0] sm:$0xff]   ;;  %v719_v43 = vor.u32 %v718_v31, %v717_v29  ;;  %v575_v45 = vshrl.u32 %v3165_v37, 16 }
  0x72   : > { %1451 = vmatprep.mubr.bf16.mxu0 %v3112_v48  ;;  %2524 = vmatprep.subr.bf16.mxu0 %v2791_v40  ;;  %v560_v26 = vrot.slane %v558_v17, 3  ;;  %v563_v27 = vrot.slane %v561_v18, 4  ;;  %v578_v46 = vshll.u32 %v3165_v37, 16  ;;  %v586_v49 = vshll.u32 %v3167_v38, 16 }
  0x73   : > { %2587 = vmatpush3.bf16.msra.mxu1 %v2796_v3  ;;  %1548 = vmatprep.mubr.bf16.mxu1 %v3143_v21  ;;  %v572_v40 = vor.u32 %v571_v30, %v568_v28  ;;  %v3185_v53 = vsel %vm666_vm0, %v676_v32, %v677_v33  ;;  %v722_v54 = vrot.slane %v561_v18, 5  ;;  %v577_v56 = vrot.slane %v575_v45, 3  ;;  %v470_v18 = vld [vmem:[#allocation2 + $0x138] sm:$0xff] }
  0x74   : > { %v564_v36 = vor.u32 %v563_v27, %v560_v26  ;;  %2588 = vmatprep.subr.bf16.mxu1 %v2798_v34  ;;  %v580_v57 = vrot.slane %v578_v46, 4  ;;  %v585_v58 = vrot.slane %v583_v47, 3  ;;  %v588_v59 = vrot.slane %v586_v49, 4  ;;  %v2805_v27 = vld [vmem:[%s3616_s1 + $0x150] sm:$0xff]  }
  0x75   : > { %2525 = vmatpush3.bf16.msra.mxu0 %v2792_v61  ;;  %v2802_v61 = vld [vmem:[%s3616_s1 + $0x1e8] sm:$0xff]   ;;  %v3197_v62 = vsel %vm699_vm2, %v716_v42, %v719_v43  ;;  %v724_v63 = vrot.slane %v566_v19, 4  ;;  %v725_v0 = vrot.slane %v569_v24, 5  ;;  %v3199_v1 = vpack.c.bf16 %v466_v50, %v465_v44  ;;  %v471_v19 = vld [vmem:[#allocation2 + $0x18] sm:$0xff]  ;;  %v2807_v42 = vld [vmem:[%s3616_s1 + $0x110] sm:$0xff]  }
  0x76   : > { %2526 = vmatprep.subr.bf16.mxu0 %v2793_v8  ;;  %v3182_v52 = vsel %vm505_vm1, %v564_v36, %v572_v40  ;;  %v581_v3 = vor.u32 %v580_v57, %v577_v56  ;;  %v589_v4 = vor.u32 %v588_v59, %v585_v58  ;;  %v3204_v5 = vpack.c.bf16 %v468_v55, %v467_v51  ;;  %v2808_v50 = vld [vmem:[%s3616_s1 + $0x1a0] sm:$0xff]  }
  0x77   : > { %2589 = vmatpush3.bf16.msra.mxu1 %v2800_v39  ;;  %v592_v7 = vshrl.u32 %v3199_v1, 16  ;;  %v595_v8 = vshll.u32 %v3199_v1, 16  ;;  %v726_v14 = vor.u32 %v725_v0, %v724_v63  ;;  %v680_v24 = vrot.slane %v3167_v38, 4  ;;  %v473_v51 = vld [vmem:[#allocation2] sm:$0xff] }
  0x78   : > { %1452 = vmatmul.mubr.bf16.gmra.mxu0 %v3108_v41  ;;  %v3175_v41 = vrot.slane %v558_v17, 4  ;;  %2590 = vmatprep.subr.bf16.mxu1 %v2802_v61  ;;  %v3214_v9 = vsel %vm505_vm1, %v581_v3, %v589_v4  ;;  %v600_v11 = vshrl.u32 %v3204_v5, 16  ;;  %v603_v12 = vshll.u32 %v3204_v5, 16  ;;  %v475_v59 = vld [vmem:[#allocation2 + $0xa0] sm:$0xff] }
  0x79   : > { %1549 = vmatmul.mubr.bf16.gmra.mxu1 %v3146_v22  ;;  %1459 = vmatprep.mubr.bf16.mxu0 %v3149_v23  ;;  %v594_v16 = vrot.slane %v592_v7, 3  ;;  %v597_v17 = vrot.slane %v595_v8, 4  ;;  %v728_v29 = vrot.slane %v575_v45, 4  ;;  %v729_v30 = vrot.slane %v578_v46, 5 }
  0x7a   : > { %2527 = vmatpush3.bf16.msra.mxu0 %v2795_v13  ;;  %1556 = vmatprep.mubr.bf16.mxu1 %v3182_v52  ;;  %v723_v10 = vor.u32 %v722_v54, %v3175_v41  ;;  %v469_v13 = vld [vmem:[#allocation2 + $0xe0] sm:$0xff]  ;;  %v605_v26 = vrot.slane %v603_v12, 4  ;;  %v731_v33 = vrot.slane %v583_v47, 4  ;;  %v3228_v34 = vpack.c.bf16 %v472_v20, %v471_v19  ;;  %v474_v54 = vld [vmem:[#allocation2 + $0x50] sm:$0xff] }
  0x7b   : > { %2528 = vmatprep.subr.bf16.mxu0 %v2797_v25  ;;  %v602_v25 = vrot.slane %v600_v11, 3  ;;  %2591 = vmatpush3.bf16.msra.mxu1 %v2804_v6  ;;  %v598_v28 = vor.u32 %v597_v17, %v594_v16  ;;  %v3226_v31 = vpack.c.bf16 %v470_v18, %v469_v13  ;;  %v732_v37 = vrot.slane %v586_v49, 5 }
  0x7c   : > { %v3234_v36 = vsel %vm699_vm2, %v723_v10, %v726_v14  ;;  %v3244_v43 = vsel %vm666_vm0, %v679_v15, %v680_v24  ;;  %v617_v44 = vshrl.u32 %v3228_v34, 16  ;;  %v620_v45 = vshll.u32 %v3228_v34, 16  ;;  %v2811_v15 = vld [vmem:[%s3616_s1 + $0x108] sm:$0xff]   ;;  %v2812_v24 = vld [vmem:[%s3616_s1 + $0x198] sm:$0xff]  }
  0x7d   : > { %v606_v32 = vor.u32 %v605_v26, %v602_v25  ;;  %v609_v39 = vshrl.u32 %v3226_v31, 16  ;;  %v612_v40 = vshll.u32 %v3226_v31, 16  ;;  %v730_v38 = vor.u32 %v729_v30, %v728_v29  ;;  %v2813_v25 = vld [vmem:[%s3616_s1 + $0x1d0] sm:$0xff]  }
  0x7e   : > { %2529 = vmatpush3.bf16.msra.mxu0 %v2799_v35  ;;  %v2806_v35 = vld [vmem:[%s3616_s1 + $0x1e0] sm:$0xff]   ;;  %v682_v46 = vrot.slane %v3199_v1, 4  ;;  %v683_v55 = vrot.slane %v3204_v5, 4  ;;  %v619_v56 = vrot.slane %v617_v44, 3  ;;  %v622_v57 = vrot.slane %v620_v45, 4  ;;  %v2814_v30 = vld [vmem:[%s3616_s1 + $0x190] sm:$0xff]  }
  0x7f   : > { %2530 = vmatprep.subr.bf16.mxu0 %v2801_v60  ;;  %v3247_v41 = vsel %vm505_vm1, %v598_v28, %v606_v32  ;;  %2592 = vmatprep.subr.bf16.mxu1 %v2806_v35  ;;  %v611_v47 = vrot.slane %v609_v39, 3  ;;  %v614_v49 = vrot.slane %v612_v40, 4  ;;  %v3264_v58 = vrot.slane %v592_v7, 4  ;;  %v476_v60 = vld [vmem:[#allocation2 + $0x28] sm:$0xff]  ;;  %v477_v32 = vld [vmem:[#allocation2 + $0xf0] sm:$0xff] }
  0x80   : > { %1460 = vmatmul.mubr.bf16.gmra.mxu0 %v3143_v21  ;;  %v733_v61 = vor.u32 %v732_v37, %v731_v33  ;;  %v736_v63 = vrot.slane %v595_v8, 5  ;;  %v3268_v0 = vpack.c.bf16 %v474_v54, %v473_v51  ;;  %v3270_v1 = vpack.c.bf16 %v476_v60, %v475_v59  ;;  %2593 = vmatpush3.bf16.msra.mxu1 %v2808_v50  ;;  %v2810_v8 = vld [vmem:[%s3616_s1 + $0x1d8] sm:$0xff]   ;;  %v478_v33 = vld [vmem:[#allocation2 + $0x108] sm:$0xff] }
  0x81   : > { %1557 = vmatmul.mubr.bf16.gmra.mxu1 %v3197_v62  ;;  %1467 = vmatprep.mubr.bf16.mxu0 %v3185_v53  ;;  %v615_v3 = vor.u32 %v614_v49, %v611_v47  ;;  %v623_v4 = vor.u32 %v622_v57, %v619_v56  ;;  %v738_v5 = vrot.slane %v600_v11, 4  ;;  %v739_v6 = vrot.slane %v603_v12, 5  ;;  %v2815_v49 = vld [vmem:[%s3616_s1 + $0x140] sm:$0xff]   ;;  %v2818_v59 = vld [vmem:[%s3616_s1 + $0x188] sm:$0xff]  }
  0x82   : > { %1564 = vmatprep.mubr.bf16.mxu1 %v3214_v9  ;;  %2531 = vmatpush3.bf16.msra.mxu0 %v2803_v2  ;;  %v2809_v2 = vld [vmem:[%s3616_s1 + $0x148] sm:$0xff]   ;;  %v626_v7 = vshrl.u32 %v3268_v0, 16  ;;  %v629_v10 = vshll.u32 %v3268_v0, 16  ;;  %v634_v13 = vshrl.u32 %v3270_v1, 16  ;;  %v637_v14 = vshll.u32 %v3270_v1, 16 }
  0x83   : > { %2532 = vmatprep.subr.bf16.mxu0 %v2805_v27  ;;  %v3286_v11 = vsel %vm699_vm2, %v730_v38, %v733_v61  ;;  %2594 = vmatprep.subr.bf16.mxu1 %v2810_v8  ;;  %v3293_v17 = vsel %vm666_vm0, %v682_v46, %v683_v55  ;;  %v3296_v18 = vsel %vm505_vm1, %v615_v3, %v623_v4  ;;  %v685_v28 = vrot.slane %v3226_v31, 4  ;;  %v479_v38 = vld [vmem:[#allocation2 + $0x68] sm:$0xff]  ;;  %v480_v46 = vld [vmem:[#allocation2 + $0x60] sm:$0xff] }
  0x84   : > { %v628_v12 = vrot.slane %v626_v7, 3  ;;  %v631_v16 = vrot.slane %v629_v10, 4  ;;  %v636_v19 = vrot.slane %v634_v13, 3  ;;  %v639_v20 = vrot.slane %v637_v14, 4  ;;  %2595 = vmatpush3.bf16.msra.mxu1 %v2812_v24  ;;  %v2819_v3 = vld [vmem:[%s3616_s1 + $0x1c0] sm:$0xff]  }
  0x85   : > { %v737_v26 = vor.u32 %v736_v63, %v3264_v58  ;;  %v740_v27 = vor.u32 %v739_v6, %v738_v5  ;;  %v686_v29 = vrot.slane %v3228_v34, 4  ;;  %v742_v35 = vrot.slane %v609_v39, 4  ;;  %2596 = vmatprep.subr.bf16.mxu1 %v2813_v25 }
  0x86   : > { %2533 = vmatpush3.bf16.msra.mxu0 %v2807_v42  ;;  %v743_v37 = vrot.slane %v612_v40, 5  ;;  %v745_v42 = vrot.slane %v617_v44, 4  ;;  %v3322_v47 = vpack.c.bf16 %v478_v33, %v477_v32  ;;  %v632_v50 = vor.u32 %v631_v16, %v628_v12  ;;  %v2816_v44 = vld [vmem:[%s3616_s1 + $0x1c8] sm:$0xff]  }
  0x87   : > { %2534 = vmatprep.subr.bf16.mxu0 %v2809_v2  ;;  %v640_v51 = vor.u32 %v639_v20, %v636_v19  ;;  %v3327_v54 = vpack.c.bf16 %v480_v46, %v479_v38  ;;  %v746_v39 = vrot.slane %v620_v45, 5  ;;  %v3339_v57 = vsel %vm699_vm2, %v737_v26, %v740_v27  ;;  %v2817_v45 = vld [vmem:[%s3616_s1 + $0x100] sm:$0xff]   ;;  %v483_v38 = vld [vmem:[#allocation2 + $0x130] sm:$0xff]  ;;  %v484_v46 = vld [vmem:[#allocation2 + $0xe8] sm:$0xff] }
  0x88   : > { %1468 = vmatmul.mubr.bf16.gmra.mxu0 %v3182_v52  ;;  %v765_v31 = vshrl.u32 %v3322_v47, 16  ;;  %v768_v40 = vshll.u32 %v3322_v47, 16  ;;  %v3348_v60 = vsel %vm666_vm0, %v685_v28, %v686_v29  ;;  %2597 = vmatpush3.bf16.msra.mxu1 %v2814_v30  ;;  %v688_v4 = vrot.slane %v3268_v0, 4  ;;  %v2820_v20 = vld [vmem:[%s3616_s1 + $0x180] sm:$0xff]  }
  0x89   : > { %1565 = vmatmul.mubr.bf16.gmra.mxu1 %v3234_v36  ;;  %1475 = vmatprep.mubr.bf16.mxu0 %v3244_v43  ;;  %v773_v55 = vshrl.u32 %v3327_v54, 16  ;;  %v776_v56 = vshll.u32 %v3327_v54, 16  ;;  %v3351_v61 = vsel %vm505_vm1, %v632_v50, %v640_v51  ;;  %v689_v5 = vrot.slane %v3270_v1, 4 }
  0x8a   : > { %1572 = vmatprep.mubr.bf16.mxu1 %v3247_v41  ;;  %2535 = vmatpush3.bf16.msra.mxu0 %v2811_v15  ;;  %v767_v58 = vrot.slane %v765_v31, 3  ;;  %v770_v34 = vrot.slane %v768_v40, 4  ;;  %v744_v6 = vor.u32 %v743_v37, %v742_v35  ;;  %v747_v8 = vor.u32 %v746_v39, %v745_v42  ;;  %v2821_v15 = vld [vmem:[%s3616_s1 + $0x238] sm:$0xff]   ;;  %v2822_v37 = vld [vmem:[%s3616_s1 + $0x230] sm:$0xff]  }
  0x8b   : > { %2536 = vmatprep.subr.bf16.mxu0 %v2815_v49  ;;  %v775_v63 = vrot.slane %v773_v55, 3  ;;  %v778_v2 = vrot.slane %v776_v56, 4  ;;  %2598 = vmatprep.subr.bf16.mxu1 %v2816_v44  ;;  %v788_v12 = vrot.slane %v765_v31, 4  ;;  %v789_v24 = vrot.slane %v768_v40, 5  ;;  %v482_v42 = vld [vmem:[#allocation2 + $0x30] sm:$0xff] }
  0x8c   : > { %v771_v16 = vor.u32 %v770_v34, %v767_v58  ;;  %2599 = vmatpush3.bf16.msra.mxu1 %v2818_v59  ;;  %v749_v25 = vrot.slane %v626_v7, 4  ;;  %v791_v26 = vrot.slane %v773_v55, 4  ;;  %v750_v27 = vrot.slane %v629_v10, 5 }
  0x8d   : > { %v779_v19 = vor.u32 %v778_v2, %v775_v63  ;;  %2600 = vmatprep.subr.bf16.mxu1 %v2819_v3  ;;  %v790_v28 = vor.u32 %v789_v24, %v788_v12  ;;  %v792_v29 = vrot.slane %v776_v56, 5  ;;  %v3373_v30 = vsel %vm699_vm2, %v744_v6, %v747_v8  ;;  %v3462_v8 = vld [vmem:[%s3617_s2] ss:$0 sm:$0xff] }
  0x8e   : > { %2537 = vmatpush3.bf16.msra.mxu0 %v2817_v45  ;;  %v752_v32 = vrot.slane %v634_v13, 4  ;;  %v753_v33 = vrot.slane %v637_v14, 5  ;;  %v3380_v35 = vsel %vm666_vm0, %v688_v4, %v689_v5  ;;  %v751_v1 = vor.u32 %v750_v27, %v749_v25 }
  0x8f   : > { %2666 = vmatprep.subr.bf16.mxu0 %v2821_v15  ;;  %v3383_v7 = vsel %vm505_vm1, %v771_v16, %v779_v19  ;;  %v793_v0 = vor.u32 %v792_v29, %v791_v26  ;;  %v504_v50 = vpack.c.bf16 %v484_v46, %v483_v38 }
  0x90   : > { %1476 = vmatmul.mubr.bf16.gmra.mxu0 %v3214_v9  ;;  %2601 = vmatpush3.bf16.msra.mxu1 %v2820_v20  ;;  %v754_v13 = vor.u32 %v753_v33, %v752_v32 }
  0x91   : > { %1573 = vmatmul.mubr.bf16.gmra.mxu1 %v3286_v11  ;;  %1483 = vmatprep.mubr.bf16.mxu0 %v3293_v17  ;;  %v3388_v10 = vsel %vm699_vm2, %v790_v28, %v793_v0  ;;  %v805_v39 = vshrl.u32 %v504_v50, 16 }
  0x92   : > { %1580 = vmatprep.mubr.bf16.mxu1 %v3296_v18  ;;  %2698 = vmatprep.subr.bf16.mxu1 %v2821_v15  ;;  %v3393_v14 = vsel %vm699_vm2, %v751_v1, %v754_v13 }
  0x93   : > { %v807_v55 = vrot.slane %v805_v39, 3  ;;  %v823_v63 = vrot.slane %v805_v39, 4 }
  0x98   : > { %1484 = vmatmul.mubr.bf16.gmra.mxu0 %v3247_v41 }
  0x99   : > { %1581 = vmatmul.mubr.bf16.gmra.mxu1 %v3339_v57  ;;  %1491 = vmatprep.mubr.bf16.mxu0 %v3348_v60 }
  0x9a   : > { %1588 = vmatprep.mubr.bf16.mxu1 %v3351_v61 }
  0xa0   : > { %1492 = vmatmul.mubr.bf16.gmra.mxu0 %v3296_v18 }
  0xa1   : > { %1589 = vmatmul.mubr.bf16.gmra.mxu1 %v3373_v30  ;;  %1499 = vmatprep.mubr.bf16.mxu0 %v3380_v35 }
  0xa2   : > { %1596 = vmatprep.mubr.bf16.mxu1 %v3383_v7 }
  0xa8   : > { %1500 = vmatmul.mubr.bf16.gmra.mxu0 %v3351_v61 }
  0xa9   : > { %1597 = vmatmul.mubr.bf16.gmra.mxu1 %v3393_v14  ;;  %1637 = vmatprep.mubr.bf16.mxu0 %v3146_v22  ;;  %v2823_v22 = vld [vmem:[%s3616_s1 + $0x228] sm:$0xff]  }
  0xaa   : > { %1734 = vmatprep.mubr.bf16.mxu1 %v3149_v23 }
  0xb0   : > { %1638 = vmatmul.mubr.bf16.vlgmr.msra.gmra.mxu0 %v3112_v48  ;;  %v2824_v48 = vld [vmem:[%s3616_s1 + $0x220] sm:$0xff]  }
  0xb1   : > { %1735 = vmatmul.mubr.bf16.vlgmr.msra.gmra.mxu1 %v3143_v21  ;;  %2667 = vmatpush3.bf16.msra.mxu0 %v2821_v15  ;;  %v2825_v21 = vld [vmem:[%s3616_s1 + $0x218] sm:$0xff]  }
  0xb2   : > { %1645 = vmatprep.mubr.bf16.mxu0 %v3197_v62  ;;  %1742 = vmatprep.mubr.bf16.mxu1 %v3185_v53 }
  0xb3   : > { %2668 = vmatprep.subr.bf16.mxu0 %v2822_v37  ;;  %2706 = vmatpush3.bf16.msra.mxu1 %v2821_v15 }
  0xb4   : > { %2699 = vmatprep.subr.bf16.mxu1 %v2822_v37 }
  0xb5   : > { %2669 = vmatpush3.bf16.msra.mxu0 %v2822_v37 }
  0xb6   : > { %2670 = vmatprep.subr.bf16.mxu0 %v2823_v22 }
  0xb7   : > { %2707 = vmatpush3.bf16.msra.mxu1 %v2822_v37 }
  0xb8   : > { %1646 = vmatmul.mubr.bf16.gmra.mxu0 %v3149_v23  ;;  %2700 = vmatprep.subr.bf16.mxu1 %v2823_v22  ;;  %v2826_v23 = vld [vmem:[%s3616_s1 + $0x210] sm:$0xff]  }
  0xb9   : > { %1743 = vmatmul.mubr.bf16.gmra.mxu1 %v3182_v52  ;;  %1653 = vmatprep.mubr.bf16.mxu0 %v3234_v36  ;;  %v2827_v52 = vld [vmem:[%s3616_s1 + $0x208] sm:$0xff]  }
  0xba   : > { %1750 = vmatprep.mubr.bf16.mxu1 %v3244_v43  ;;  %2671 = vmatpush3.bf16.msra.mxu0 %v2823_v22 }
  0xbb   : > { %2672 = vmatprep.subr.bf16.mxu0 %v2824_v48  ;;  %2708 = vmatpush3.bf16.msra.mxu1 %v2823_v22 }
  0xbc   : > { %2701 = vmatprep.subr.bf16.mxu1 %v2824_v48 }
  0xbe   : > { %2673 = vmatpush3.bf16.msra.mxu0 %v2824_v48 }
  0xbf   : > { %2674 = vmatprep.subr.bf16.mxu0 %v2825_v21  ;;  %2709 = vmatpush3.bf16.msra.mxu1 %v2824_v48 }
  0xc0   : > { %1654 = vmatmul.mubr.bf16.gmra.mxu0 %v3185_v53  ;;  %2702 = vmatprep.subr.bf16.mxu1 %v2825_v21  ;;  %v2828_v53 = vld [vmem:[%s3616_s1 + $0x200] sm:$0xff]  }
  0xc1   : > { %1751 = vmatmul.mubr.bf16.gmra.mxu1 %v3214_v9  ;;  %1661 = vmatprep.mubr.bf16.mxu0 %v3286_v11  ;;  %v481_v9 = vld [vmem:[#allocation2 + $0x118] sm:$0xff] }
  0xc2   : > { %1758 = vmatprep.mubr.bf16.mxu1 %v3293_v17  ;;  %2675 = vmatpush3.bf16.msra.mxu0 %v2825_v21  ;;  %v503_v49 = vpack.c.bf16 %v482_v42, %v481_v9 }
  0xc3   : > { %2676 = vmatprep.subr.bf16.mxu0 %v2826_v23  ;;  %2710 = vmatpush3.bf16.msra.mxu1 %v2825_v21 }
  0xc4   : > { %2703 = vmatprep.subr.bf16.mxu1 %v2826_v23  ;;  %v816_v31 = vrot.slane %v503_v49, 4 }
  0xc6   : > { %2677 = vmatpush3.bf16.msra.mxu0 %v2826_v23 }
  0xc7   : > { %2678 = vmatprep.subr.bf16.mxu0 %v2827_v52  ;;  %2711 = vmatpush3.bf16.msra.mxu1 %v2826_v23 }
  0xc8   : > { %1662 = vmatmul.mubr.bf16.gmra.mxu0 %v3244_v43  ;;  %2704 = vmatprep.subr.bf16.mxu1 %v2827_v52  ;;  %v784_v43 = vrot.slane %v3322_v47, 4  ;;  %v808_v47 = vshll.u32 %v504_v50, 16 }
  0xc9   : > { %1759 = vmatmul.mubr.bf16.gmra.mxu1 %v3247_v41  ;;  %1669 = vmatprep.mubr.bf16.mxu0 %v3339_v57  ;;  %v785_v41 = vrot.slane %v3327_v54, 4  ;;  %v817_v54 = vrot.slane %v504_v50, 4 }
  0xca   : > { %1766 = vmatprep.mubr.bf16.mxu1 %v3348_v60  ;;  %2679 = vmatpush3.bf16.msra.mxu0 %v2827_v52  ;;  %v810_v56 = vrot.slane %v808_v47, 4  ;;  %v824_v2 = vrot.slane %v808_v47, 5 }
  0xcb   : > { %2680 = vmatprep.subr.bf16.mxu0 %v2828_v53  ;;  %2712 = vmatpush3.bf16.msra.mxu1 %v2827_v52  ;;  %v786_v51 = vsel %vm666_vm0, %v784_v43, %v785_v41  ;;  %v818_v58 = vsel %vm666_vm0, %v816_v31, %v817_v54 }
  0xcc   : > { %2705 = vmatprep.subr.bf16.mxu1 %v2828_v53  ;;  %v811_v45 = vor.u32 %v810_v56, %v807_v55  ;;  %v825_v4 = vor.u32 %v824_v2, %v823_v63 }
  0xce   : > { %2681 = vmatpush3.bf16.msra.mxu0 %v2828_v53 }
  0xcf   : > { %2713 = vmatpush3.bf16.msra.mxu1 %v2828_v53 }
  0xd0   : > { %1670 = vmatmul.mubr.bf16.gmra.mxu0 %v3293_v17  ;;  %v797_v17 = vshrl.u32 %v503_v49, 16 }
  0xd1   : > { %1767 = vmatmul.mubr.bf16.gmra.mxu1 %v3296_v18  ;;  %1677 = vmatprep.mubr.bf16.mxu0 %v3373_v30  ;;  %v800_v18 = vshll.u32 %v503_v49, 16 }
  0xd2   : > { %1774 = vmatprep.mubr.bf16.mxu1 %v3380_v35  ;;  %v799_v40 = vrot.slane %v797_v17, 3 }
  0xd3   : > { %v802_v44 = vrot.slane %v800_v18, 4 }
  0xd5   : > { %v803_v34 = vor.u32 %v802_v44, %v799_v40 }
  0xd7   : > { %v812_v59 = vsel %vm505_vm1, %v803_v34, %v811_v45 }
  0xd8   : > { %1678 = vmatmul.mubr.bf16.gmra.mxu0 %v3348_v60  ;;  %v820_v60 = vrot.slane %v797_v17, 4 }
  0xd9   : > { %1775 = vmatmul.mubr.bf16.gmra.mxu1 %v3351_v61  ;;  %1685 = vmatprep.mubr.bf16.mxu0 %v3393_v14  ;;  %v821_v61 = vrot.slane %v800_v18, 5 }
  0xda   : > { %1782 = vmatprep.mubr.bf16.mxu1 %v786_v51 }
  0xdb   : > { %v822_v3 = vor.u32 %v821_v61, %v820_v60 }
  0xdd   : > { %v826_v5 = vsel %vm699_vm2, %v822_v3, %v825_v4 }
  0xe0   : > { %1686 = vmatmul.mubr.bf16.gmra.mxu0 %v3380_v35 }
  0xe1   : > { %1783 = vmatmul.mubr.bf16.gmra.mxu1 %v3383_v7  ;;  %1693 = vmatprep.mubr.bf16.mxu0 %v3388_v10 }
  0xe2   : > { %1790 = vmatprep.mubr.bf16.mxu1 %v818_v58 }
  0xe8   : > { %1694 = vmatmul.mubr.bf16.gmra.mxu0 %v786_v51 }
  0xe9   : > { %1791 = vmatmul.mubr.bf16.gmra.mxu1 %v812_v59  ;;  %2682 = vmatprep.mubr.bf16.mxu0 %v3197_v62 }
  0xea   : > { %2690 = vmatprep.mubr.bf16.mxu1 %v3373_v30 }
  0xf0   : > { %2683 = vmatmul.mubr.bf16.vlgmr.msra.gmra.mxu0 %v3234_v36 }
  0xf1   : > { %2691 = vmatmul.mubr.bf16.vlgmr.msra.gmra.mxu1 %v3393_v14  ;;  %2686 = vmatprep.mubr.bf16.mxu0 %v3286_v11 }
  0xf2   : > { %2694 = vmatprep.mubr.bf16.mxu1 %v3388_v10 }
  0xf8   : > { %2687 = vmatmul.mubr.bf16.gmra.mxu0 %v3339_v57 }
  0xf9   : > { %2695 = vmatmul.mubr.bf16.gmra.mxu1 %v826_v5 }
 0x130   : > { %v2410_v62 = vpop.f32.mrf.mxu0 }
 0x131   : > { %v2474_v6 = vpop.f32.mrf.mxu1 }
 0x132   : > { %v2411_v36 = vpop.f32.mrf.mxu0 }
 0x133   : > { %v2475_v15 = vpop.f32.mrf.mxu1  ;;  %v2412_v12 = vadd.f32 %v2411_v36, %v2410_v62 }
 0x134   : > { %v2476_v11 = vadd.f32 %v2475_v15, %v2474_v6  ;;  %v2413_v16 = vpop.f32.mrf.mxu0 }
 0x135   : > { %v2477_v19 = vpop.f32.mrf.mxu1  ;;  %v1446_v20 = vadd.f32 %v2412_v12, %v3462_v8 }
 0x136   : > { %v2414_v24 = vpop.f32.mrf.mxu0 }
 0x137   : > { %v2478_v25 = vpop.f32.mrf.mxu1  ;;  %v3465_v26 = vadd.f32 %v2476_v11, %v1446_v20  ;;  %v2415_v57 = vadd.f32 %v2414_v24, %v2413_v16 }
 0x138   : > { %v2479_v27 = vadd.f32 %v2478_v25, %v2477_v19  ;;  %v2416_v28 = vpop.f32.mrf.mxu0 }
 0x139   : > { %v2480_v29 = vpop.f32.mrf.mxu1  ;;  %v1449_v30 = vadd.f32 %v2415_v57, %v3462_v8 }
 0x13a   : > { %v2417_v32 = vpop.f32.mrf.mxu0 }
 0x13b   : > { %v2481_v33 = vpop.f32.mrf.mxu1  ;;  %v3468_v35 = vadd.f32 %v2479_v27, %v1449_v30  ;;  %v2418_v7 = vadd.f32 %v2417_v32, %v2416_v28 }
 0x13c   : > { %v2482_v0 = vadd.f32 %v2481_v33, %v2480_v29  ;;  %v2419_v10 = vpop.f32.mrf.mxu0 }
 0x13d   : > { %v2483_v1 = vpop.f32.mrf.mxu1  ;;  %v1454_v13 = vadd.f32 %v2418_v7, %v3462_v8 }
 0x13e   : > { %v2420_v14 = vpop.f32.mrf.mxu0 }
 0x13f   : > { %v2484_v37 = vpop.f32.mrf.mxu1  ;;  %v3471_v22 = vadd.f32 %v2482_v0, %v1454_v13  ;;  %v2421_v48 = vadd.f32 %v2420_v14, %v2419_v10 }
 0x140   : > { %v2485_v21 = vadd.f32 %v2484_v37, %v2483_v1  ;;  %v2422_v23 = vpop.f32.mrf.mxu0 }
 0x141   : > { %v2486_v52 = vpop.f32.mrf.mxu1  ;;  %v1457_v53 = vadd.f32 %v2421_v48, %v3462_v8 }
 0x142   : > { %v2423_v9 = vpop.f32.mrf.mxu0 }
 0x143   : > { %v2487_v43 = vpop.f32.mrf.mxu1  ;;  %v3474_v41 = vadd.f32 %v2485_v21, %v1457_v53  ;;  %v2424_v42 = vadd.f32 %v2423_v9, %v2422_v23 }
 0x144   : > { %v2488_v38 = vadd.f32 %v2487_v43, %v2486_v52  ;;  %v2425_v46 = vpop.f32.mrf.mxu0 }
 0x145   : > { %v2489_v49 = vpop.f32.mrf.mxu1  ;;  %v1462_v50 = vadd.f32 %v2424_v42, %v3462_v8 }
 0x146   : > { %v2426_v51 = vpop.f32.mrf.mxu0 }
 0x147   : > { %v2490_v17 = vpop.f32.mrf.mxu1  ;;  %v3477_v18 = vadd.f32 %v2488_v38, %v1462_v50  ;;  %v2427_v39 = vadd.f32 %v2426_v51, %v2425_v46 }
 0x148   : > { %v2491_v47 = vadd.f32 %v2490_v17, %v2489_v49  ;;  %v2428_v31 = vpop.f32.mrf.mxu0 }
 0x149   : > { %v2492_v54 = vpop.f32.mrf.mxu1  ;;  %v1465_v40 = vadd.f32 %v2427_v39, %v3462_v8 }
 0x14a   : > { %v2429_v44 = vpop.f32.mrf.mxu0 }
 0x14b   : > { %v2493_v55 = vpop.f32.mrf.mxu1  ;;  %v3480_v56 = vadd.f32 %v2491_v47, %v1465_v40  ;;  %v2430_v58 = vadd.f32 %v2429_v44, %v2428_v31 }
 0x14c   : > { %v2494_v34 = vadd.f32 %v2493_v55, %v2492_v54  ;;  %v2431_v45 = vpop.f32.mrf.mxu0 }
 0x14d   : > { %3620 = vst [vmem:[#allocation10_spill] sm:$0xff] %v3480_v56  ;;  %v2495_v59 = vpop.f32.mrf.mxu1  ;;  %v1470_v60 = vadd.f32 %v2430_v58, %v3462_v8 }
 0x14e   : > { %v2432_v61 = vpop.f32.mrf.mxu0 }
 0x14f   : > { %v2496_v63 = vpop.f32.mrf.mxu1  ;;  %v3483_v2 = vadd.f32 %v2494_v34, %v1470_v60  ;;  %v2433_v3 = vadd.f32 %v2432_v61, %v2431_v45 }
 0x150   : > { %v2497_v4 = vadd.f32 %v2496_v63, %v2495_v59  ;;  %v2434_v5 = vpop.f32.mrf.mxu0 }
 0x151   : > { %v2498_v62 = vpop.f32.mrf.mxu1  ;;  %v1473_v6 = vadd.f32 %v2433_v3, %v3462_v8 }
 0x152   : > { %v2435_v36 = vpop.f32.mrf.mxu0 }
 0x153   : > { %v2499_v15 = vpop.f32.mrf.mxu1  ;;  %v3486_v12 = vadd.f32 %v2497_v4, %v1473_v6  ;;  %v2436_v11 = vadd.f32 %v2435_v36, %v2434_v5 }
 0x154   : > { %v2500_v16 = vadd.f32 %v2499_v15, %v2498_v62  ;;  %v2437_v19 = vpop.f32.mrf.mxu0 }
 0x155   : > { %3621 = vst [vmem:[#allocation11_spill] sm:$0xff] %v3486_v12  ;;  %v2501_v20 = vpop.f32.mrf.mxu1  ;;  %v1478_v24 = vadd.f32 %v2436_v11, %v3462_v8 }
 0x156   : > { %v2438_v25 = vpop.f32.mrf.mxu0 }
 0x157   : > { %v2502_v57 = vpop.f32.mrf.mxu1  ;;  %v3489_v27 = vadd.f32 %v2500_v16, %v1478_v24  ;;  %v2439_v28 = vadd.f32 %v2438_v25, %v2437_v19 }
 0x158   : > { %v2503_v29 = vadd.f32 %v2502_v57, %v2501_v20  ;;  %v2440_v30 = vpop.f32.mrf.mxu0 }
 0x159   : > { %3622 = vst [vmem:[#allocation12_spill] sm:$0xff] %v3489_v27  ;;  %v2504_v32 = vpop.f32.mrf.mxu1  ;;  %v1481_v33 = vadd.f32 %v2439_v28, %v3462_v8 }
 0x15a   : > { %v2441_v7 = vpop.f32.mrf.mxu0 }
 0x15b   : > { %v2505_v0 = vpop.f32.mrf.mxu1  ;;  %v3492_v10 = vadd.f32 %v2503_v29, %v1481_v33  ;;  %v2442_v1 = vadd.f32 %v2441_v7, %v2440_v30 }
 0x15c   : > { %v2506_v13 = vadd.f32 %v2505_v0, %v2504_v32  ;;  %v2443_v14 = vpop.f32.mrf.mxu0 }
 0x15d   : > { %3623 = vst [vmem:[#allocation13_spill] sm:$0xff] %v3492_v10  ;;  %v2507_v37 = vpop.f32.mrf.mxu1  ;;  %v1486_v48 = vadd.f32 %v2442_v1, %v3462_v8 }
 0x15e   : > { %v2444_v21 = vpop.f32.mrf.mxu0 }
 0x15f   : > { %v2508_v23 = vpop.f32.mrf.mxu1  ;;  %v3495_v52 = vadd.f32 %v2506_v13, %v1486_v48  ;;  %v2445_v53 = vadd.f32 %v2444_v21, %v2443_v14 }
 0x160   : > { %v2509_v9 = vadd.f32 %v2508_v23, %v2507_v37  ;;  %v2446_v43 = vpop.f32.mrf.mxu0 }
 0x161   : > { %v2510_v42 = vpop.f32.mrf.mxu1  ;;  %v1489_v38 = vadd.f32 %v2445_v53, %v3462_v8 }
 0x162   : > { %v2447_v46 = vpop.f32.mrf.mxu0 }
 0x163   : > { %v2511_v49 = vpop.f32.mrf.mxu1  ;;  %v3498_v50 = vadd.f32 %v2509_v9, %v1489_v38  ;;  %v2448_v51 = vadd.f32 %v2447_v46, %v2446_v43 }
 0x164   : > { %v2512_v17 = vadd.f32 %v2511_v49, %v2510_v42  ;;  %v2449_v39 = vpop.f32.mrf.mxu0 }
 0x165   : > { %3624 = vst [vmem:[#allocation14_spill] sm:$0xff] %v3498_v50  ;;  %v2513_v47 = vpop.f32.mrf.mxu1  ;;  %v1494_v31 = vadd.f32 %v2448_v51, %v3462_v8 }
 0x166   : > { %v2450_v54 = vpop.f32.mrf.mxu0 }
 0x167   : > { %v2514_v40 = vpop.f32.mrf.mxu1  ;;  %v3501_v44 = vadd.f32 %v2512_v17, %v1494_v31  ;;  %v2451_v55 = vadd.f32 %v2450_v54, %v2449_v39 }
 0x168   : > { %v2515_v58 = vadd.f32 %v2514_v40, %v2513_v47  ;;  %v2452_v34 = vpop.f32.mrf.mxu0 }
 0x169   : > { %3625 = vst [vmem:[#allocation15_spill] sm:$0xff] %v3501_v44  ;;  %v2516_v45 = vpop.f32.mrf.mxu1  ;;  %v1497_v59 = vadd.f32 %v2451_v55, %v3462_v8 }
 0x16a   : > { %v2453_v60 = vpop.f32.mrf.mxu0 }
 0x16b   : > { %v2517_v61 = vpop.f32.mrf.mxu1  ;;  %v3504_v63 = vadd.f32 %v2515_v58, %v1497_v59  ;;  %v2454_v3 = vadd.f32 %v2453_v60, %v2452_v34 }
 0x16c   : > { %v2518_v4 = vadd.f32 %v2517_v61, %v2516_v45  ;;  %v2455_v5 = vpop.f32.mrf.mxu0 }
 0x16d   : > { %3626 = vst [vmem:[#allocation16_spill] sm:$0xff] %v3504_v63  ;;  %v2519_v62 = vpop.f32.mrf.mxu1  ;;  %v1502_v6 = vadd.f32 %v2454_v3, %v3462_v8 }
 0x16e   : > { %v2456_v36 = vpop.f32.mrf.mxu0 }
 0x16f   : > { %v2520_v15 = vpop.f32.mrf.mxu1  ;;  %v3507_v11 = vadd.f32 %v2518_v4, %v1502_v6  ;;  %v2457_v16 = vadd.f32 %v2456_v36, %v2455_v5 }
 0x170   : > { %v2521_v19 = vadd.f32 %v2520_v15, %v2519_v62  ;;  %v2538_v20 = vpop.f32.mrf.mxu0 }
 0x171   : > { %3627 = vst [vmem:[#allocation17_spill] sm:$0xff] %v3507_v11  ;;  %v2602_v24 = vpop.f32.mrf.mxu1  ;;  %v1505_v25 = vadd.f32 %v2457_v16, %v3462_v8 }
 0x172   : > { %v2539_v57 = vpop.f32.mrf.mxu0 }
 0x173   : > { %v2603_v28 = vpop.f32.mrf.mxu1  ;;  %v3510_v29 = vadd.f32 %v2521_v19, %v1505_v25  ;;  %v2540_v30 = vadd.f32 %v2539_v57, %v2538_v20 }
 0x174   : > { %v2604_v32 = vadd.f32 %v2603_v28, %v2602_v24  ;;  %v2541_v33 = vpop.f32.mrf.mxu0 }
 0x175   : > { %3628 = vst [vmem:[#allocation18_spill] sm:$0xff] %v3510_v29  ;;  %v2605_v7 = vpop.f32.mrf.mxu1  ;;  %v1640_v0 = vadd.f32 %v2540_v30, %v3465_v26 }
 0x176   : > { %v2542_v1 = vpop.f32.mrf.mxu0 }
 0x177   : > { %v2606_v13 = vpop.f32.mrf.mxu1  ;;  %v3513_v14 = vadd.f32 %v2604_v32, %v1640_v0  ;;  %v2543_v29 = vadd.f32 %v2542_v1, %v2541_v33 }
 0x178   : > { %v2544_v37 = vpop.f32.mrf.mxu0 }
 0x179   : > { %3629 = vst [vmem:[#allocation19_spill] sm:$0xff] %v3513_v14  ;;  %v2608_v48 = vpop.f32.mrf.mxu1 }
 0x17a   : > { %v2545_v21 = vpop.f32.mrf.mxu0 }
 0x17b   : > { %v2609_v23 = vpop.f32.mrf.mxu1  ;;  %v2546_v12 = vadd.f32 %v2545_v21, %v2544_v37 }
 0x17c   : > { %v2547_v53 = vpop.f32.mrf.mxu0 }
 0x17d   : > { %v2611_v8 = vpop.f32.mrf.mxu1  ;;  %v1648_v27 = vadd.f32 %v2546_v12, %v3471_v22 }
 0x17e   : > { %v2548_v9 = vpop.f32.mrf.mxu0 }
 0x17f   : > { %v2612_v43 = vpop.f32.mrf.mxu1 }
 0x180   : > { %v2550_v42 = vpop.f32.mrf.mxu0  ;;  %v2613_v33 = vadd.f32 %v2612_v43, %v2611_v8 }
 0x181   : > { %v2614_v38 = vpop.f32.mrf.mxu1 }
 0x182   : > { %v2551_v46 = vpop.f32.mrf.mxu0 }
 0x183   : > { %v2615_v49 = vpop.f32.mrf.mxu1 }
 0x184   : > { %v2553_v51 = vpop.f32.mrf.mxu0 }
 0x185   : > { %v3515_v17 = vpop.f32.mrf.mxu1 }
 0x186   : > { %3630 = vst [vmem:[#allocation20_spill] sm:$0xff] %v3515_v17  ;;  %v2554_v26 = vpop.f32.mrf.mxu0 }
 0x187   : > { %v3517_v39 = vpop.f32.mrf.mxu1 }
 0x188   : > { %3631 = vst [vmem:[#allocation21_spill] sm:$0xff] %v3517_v39  ;;  %v2556_v47 = vpop.f32.mrf.mxu0  ;;  %v2607_v39 = vadd.f32 %v2606_v13, %v2605_v7 }
 0x189   : > { %v2620_v31 = vpop.f32.mrf.mxu1 }
 0x18a   : > { %v2557_v54 = vpop.f32.mrf.mxu0 }
 0x18b   : > { %v2621_v40 = vpop.f32.mrf.mxu1 }
 0x18c   : > { %v2559_v55 = vpop.f32.mrf.mxu0 }
 0x18d   : > { %v3519_v58 = vpop.f32.mrf.mxu1 }
 0x18e   : > { %3632 = vst [vmem:[#allocation22_spill] sm:$0xff] %v3519_v58  ;;  %v2560_v34 = vpop.f32.mrf.mxu0  ;;  %v2552_v58 = vadd.f32 %v2551_v46, %v2550_v42 }
 0x18f   : > { %v3521_v45 = vpop.f32.mrf.mxu1  ;;  %v2561_v43 = vadd.f32 %v2560_v34, %v2559_v55 }
 0x190   : > { %3633 = vst [vmem:[#allocation23_spill] sm:$0xff] %v3521_v45  ;;  %v2562_v59 = vpop.f32.mrf.mxu0  ;;  %v2549_v45 = vadd.f32 %v2548_v9, %v2547_v53  ;;  %v1656_v21 = vadd.f32 %v2552_v58, %v3477_v18  ;;  %v2616_v53 = vadd.f32 %v2615_v49, %v2614_v38  ;;  %v2555_v9 = vadd.f32 %v2554_v26, %v2553_v51  ;;  %v3643_v51 = vld [vmem:[#allocation10_spill] sm:$0xff]  ;;  %v3644_v26 = vld [vmem:[#allocation20_spill] sm:$0xff] }
 0x191   : > { %v2626_v60 = vpop.f32.mrf.mxu1 }
 0x192   : > { %v2563_v61 = vpop.f32.mrf.mxu0  ;;  %v1651_v37 = vadd.f32 %v2549_v45, %v3474_v41  ;;  %v1753_v58 = vadd.f32 %v2616_v53, %v1656_v21 }
 0x193   : > { %v2627_v3 = vpop.f32.mrf.mxu1  ;;  %v2564_v1 = vadd.f32 %v2563_v61, %v2562_v59  ;;  %v3648_v59 = vld [vmem:[#allocation13_spill] sm:$0xff] }
 0x194   : > { %v2565_v4 = vpop.f32.mrf.mxu0 }
 0x195   : > { %v3523_v5 = vpop.f32.mrf.mxu1 }
 0x196   : > { %3634 = vst [vmem:[#allocation24_spill] sm:$0xff] %v3523_v5  ;;  %v2566_v62 = vpop.f32.mrf.mxu0 }
 0x197   : > { %v2630_v6 = vpop.f32.mrf.mxu1  ;;  %v2567_v7 = vadd.f32 %v2566_v62, %v2565_v4 }
 0x198   : > { %v2568_v36 = vpop.f32.mrf.mxu0 }
 0x199   : > { %v2632_v15 = vpop.f32.mrf.mxu1  ;;  %v1675_v61 = vadd.f32 %v2567_v7, %v3648_v59 }
 0x19a   : > { %v2569_v16 = vpop.f32.mrf.mxu0 }
 0x19b   : > { %v2633_v19 = vpop.f32.mrf.mxu1  ;;  %v2570_v56 = vadd.f32 %v2569_v16, %v2568_v36 }
 0x19c   : > { %v2571_v20 = vpop.f32.mrf.mxu0  ;;  %v2634_v12 = vadd.f32 %v2633_v19, %v2632_v15  ;;  %v3650_v15 = vld [vmem:[#allocation11_spill] sm:$0xff] }
 0x19d   : > { %v2635_v24 = vpop.f32.mrf.mxu1  ;;  %v1680_v22 = vadd.f32 %v2570_v56, %v3495_v52  ;;  %v3646_v56 = vld [vmem:[#allocation22_spill] sm:$0xff]  ;;  %v3647_v52 = vld [vmem:[#allocation23_spill] sm:$0xff]  ;;  %v3649_v55 = vld [vmem:[#allocation24_spill] sm:$0xff]  ;;  %v1667_v16 = vadd.f32 %v2561_v43, %v3650_v15 }
 0x19e   : > { %v2572_v25 = vpop.f32.mrf.mxu0  ;;  %v2625_v45 = vadd.f32 %v3647_v52, %v3646_v56  ;;  %v2631_v34 = vadd.f32 %v2630_v6, %v3649_v55  ;;  %v3661_v56 = vld [vmem:[#allocation15_spill] sm:$0xff] }
 0x19f   : > { %v2636_v57 = vpop.f32.mrf.mxu1 }
 0x1a0   : > { %v3525_v28 = vpop.f32.mrf.mxu0  ;;  %v2637_v8 = vadd.f32 %v2636_v57, %v2635_v24 }
 0x1a1   : > { %3635 = vst [vmem:[#allocation25_spill] sm:$0xff] %v3525_v28  ;;  %v3527_v30 = vpop.f32.mrf.mxu1  ;;  %v1643_v28 = vadd.f32 %v2543_v29, %v3468_v35  ;;  %v2622_v29 = vadd.f32 %v2621_v40, %v2620_v31  ;;  %v3645_v31 = vld [vmem:[#allocation21_spill] sm:$0xff] }
 0x1a2   : > { %3636 = vst [vmem:[#allocation26_spill] sm:$0xff] %v3527_v30  ;;  %v3529_v32 = vpop.f32.mrf.mxu0  ;;  %v2558_v30 = vadd.f32 %v2557_v54, %v2556_v47  ;;  %v3642_v47 = vld [vmem:[#allocation12_spill] sm:$0xff]  ;;  %v2628_v54 = vadd.f32 %v2627_v3, %v2626_v60  ;;  %v2619_v40 = vadd.f32 %v3645_v31, %v3644_v26  ;;  %v1777_v3 = vadd.f32 %v2634_v12, %v1680_v22 }
 0x1a3   : > { %3637 = vst [vmem:[#allocation27_spill] sm:$0xff] %v3529_v32  ;;  %v3531_v0 = vpop.f32.mrf.mxu1  ;;  %v1740_v46 = vadd.f32 %v2607_v39, %v1643_v28  ;;  %v1672_v41 = vadd.f32 %v2564_v1, %v3642_v47  ;;  %v1748_v39 = vadd.f32 %v2613_v33, %v1651_v37  ;;  %v3654_v1 = vld [vmem:[#allocation17_spill] sm:$0xff] }
 0x1a4   : > { %3638 = vst [vmem:[#allocation28_spill] sm:$0xff] %v3531_v0  ;;  %v2577_v44 = vpop.f32.mrf.mxu0  ;;  %v2573_v0 = vadd.f32 %v2572_v25, %v2571_v20  ;;  %v1664_v35 = vadd.f32 %v2558_v30, %v3483_v2  ;;  %v3546_v2 = vadd.f32 %v2555_v9, %v3643_v51  ;;  %v3651_v30 = vld [vmem:[#allocation19_spill] sm:$0xff]  ;;  %v1772_v9 = vadd.f32 %v2631_v34, %v1675_v61 }
 0x1a5   : > { %v3533_v63 = vpop.f32.mrf.mxu1  ;;  %v1769_v24 = vadd.f32 %v2628_v54, %v1672_v41  ;;  %v3658_v41 = vld [vmem:[#allocation16_spill] sm:$0xff] }
 0x1a6   : > { %3639 = vst [vmem:[#allocation29_spill] sm:$0xff] %v3533_v63  ;;  %v2578_v11 = vpop.f32.mrf.mxu0  ;;  %v2610_v63 = vadd.f32 %v2609_v23, %v2608_v48  ;;  %v3641_v48 = vld [vmem:[#allocation14_spill] sm:$0xff]  ;;  %v1761_v36 = vadd.f32 %v2622_v29, %v1664_v35 }
 0x1a7   : > { %v3535_v14 = vpop.f32.mrf.mxu1  ;;  %v1683_v23 = vadd.f32 %v2573_v0, %v3641_v48  ;;  %v2579_v19 = vadd.f32 %v2578_v11, %v2577_v44  ;;  %v3655_v11 = vld [vmem:[#allocation18_spill] sm:$0xff] }
 0x1a8   : > { %3640 = vst [vmem:[#allocation30_spill] sm:$0xff] %v3535_v14  ;;  %v2580_v5 = vpop.f32.mrf.mxu0  ;;  %v1745_v18 = vadd.f32 %v2610_v63, %v1648_v27 }
 0x1a9   : > { %v2644_v10 = vpop.f32.mrf.mxu1  ;;  %v1780_v62 = vadd.f32 %v2637_v8, %v1683_v23  ;;  %v1691_v54 = vadd.f32 %v2579_v19, %v3658_v41 }
 0x1aa   : > { %v2581_v17 = vpop.f32.mrf.mxu0 }
 0x1ab   : > { %v2645_v32 = vpop.f32.mrf.mxu1  ;;  %v2582_v4 = vadd.f32 %v2581_v17, %v2580_v5  ;;  %v3652_v17 = vld [vmem:[#allocation25_spill] sm:$0xff]  ;;  %v3653_v5 = vld [vmem:[#allocation27_spill] sm:$0xff]  ;;  %v3657_v43 = vld [vmem:[#allocation28_spill] sm:$0xff] }
 0x1ac   : > { %v2583_v50 = vpop.f32.mrf.mxu0  ;;  %v2646_v21 = vadd.f32 %v2645_v32, %v2644_v10  ;;  %v1764_v10 = vadd.f32 %v2625_v45, %v1667_v16  ;;  %v3656_v32 = vld [vmem:[#allocation26_spill] sm:$0xff] }
 0x1ad   : > { %v2647_v14 = vpop.f32.mrf.mxu1  ;;  %v1696_v37 = vadd.f32 %v2582_v4, %v3654_v1  ;;  %v2640_v47 = vadd.f32 %v3657_v43, %v3656_v32 }
 0x1ae   : > { %v2584_v13 = vpop.f32.mrf.mxu0 }
 0x1af   : > { %v2648_v42 = vpop.f32.mrf.mxu1  ;;  %v2585_v63 = vadd.f32 %v2584_v13, %v2583_v50  ;;  %v2576_v50 = vadd.f32 %v3653_v5, %v3652_v17  ;;  %v1793_v45 = vadd.f32 %v2646_v21, %v1696_v37 }
 0x1b0   : > { %v2684_v38 = vpop.f32.mrf.mxu0  ;;  %v2649_v29 = vadd.f32 %v2648_v42, %v2647_v14 }
 0x1b1   : > { %v2692_v49 = vpop.f32.mrf.mxu1  ;;  %v1842_v20 = vadd.f32 %v2684_v38, %v1745_v18  ;;  %v1699_v35 = vadd.f32 %v2585_v63, %v3655_v11  ;;  %v3659_v18 = vld [vmem:[#allocation29_spill] sm:$0xff]  ;;  %v3660_v38 = vld [vmem:[#allocation30_spill] sm:$0xff]  ;;  %v1688_v52 = vadd.f32 %v2576_v50, %v3661_v56  ;;  %v1756_v63 = vadd.f32 %v2619_v40, %v3546_v2 }
 0x1b2   : > { %v1833_v60 = vpop.f32.mrf.mxu0  ;;  %v3555_v28 = vadd.f32 %v2692_v49, %v1777_v3  ;;  %v2643_v14 = vadd.f32 %v3660_v38, %v3659_v18 }
 0x1b3   : > { %v1865_v27 = vpop.f32.mrf.mxu1  ;;  %v1834_v0 = vadd.f32 %v1833_v60, %v3651_v30  ;;  %v1796_v61 = vadd.f32 %v2649_v29, %v1699_v35  ;;  %v1999_v55 = vmul.f32 %v1842_v20, %v1842_v20 }
 0x1b4   : > { %v2685_v25 = vpop.f32.mrf.mxu0  ;;  %v3566_v22 = vadd.f32 %v1865_v27, %v1769_v24 }
 0x1b5   : > { %v2693_v57 = vpop.f32.mrf.mxu1  ;;  %v1845_v33 = vadd.f32 %v2685_v25, %v1748_v39  ;;  %v1997_v42 = vmul.f32 %v1834_v0, %v1834_v0 }
 0x1b6   : > { %v3558_v6 = vadd.f32 %v2693_v57, %v1780_v62  ;;  %v1836_v53 = vpop.f32.mrf.mxu0  ;;  %v1788_v57 = vadd.f32 %v2643_v14, %v1691_v54 }
 0x1b7   : > { %v1868_v44 = vpop.f32.mrf.mxu1  ;;  %v2355_v7 = vpack.c.bf16 %v1845_v33, %v1842_v20  ;;  %v1837_v12 = vadd.f32 %v1836_v53, %v1740_v46  ;;  %v2000_v19 = vmul.f32 %v1845_v33, %v1845_v33 }
 0x1b8   : > { %v2375_v13 = vpack.c.bf16 %v3558_v6, %v3555_v28  ;;  %v3568_v48 = vadd.f32 %v1868_v44, %v1772_v9  ;;  %v2688_v23 = vpop.f32.mrf.mxu0  ;;  %v2008_v18 = vmul.f32 %v3558_v6, %v3558_v6 }
 0x1b9   : > { %v2696_v8 = vpop.f32.mrf.mxu1  ;;  %2387 = vst [vmem:[%s2944_s8 + $0x8] sm:$0xff] %v2355_v7   ;;  %v2350_v49 = vpack.c.bf16 %v1837_v12, %v1834_v0  ;;  %v1976_v46 = vadd.f32 %v1837_v12, %v1834_v0  ;;  %v1998_v51 = vmul.f32 %v1837_v12, %v1837_v12  ;;  %v1858_v3 = vadd.f32 %v2688_v23, %v1761_v36 }
 0x1ba   : > { %2391 = vst [vmem:[%s2944_s8 + $0x28] sm:$0xff] %v2375_v13   ;;  %v2370_v26 = vpack.c.bf16 %v3568_v48, %v3566_v22  ;;  %v1849_v31 = vpop.f32.mrf.mxu0  ;;  %v1890_v62 = vadd.f32 %v2696_v8, %v1793_v45  ;;  %v2005_v12 = vmul.f32 %v3566_v22, %v3566_v22 }
 0x1bb   : > { %v1881_v39 = vpop.f32.mrf.mxu1  ;;  %v1850_v59 = vadd.f32 %v1849_v31, %v1753_v58  ;;  %2351 = vst [vmem:[%s2944_s8] sm:$0xff] %v2350_v49   ;;  %v1977_v34 = vadd.f32 %v1976_v46, %v1842_v20  ;;  %v2013_v4 = vadd.f32 %v1998_v51, %v1997_v42  ;;  %v1785_v20 = vadd.f32 %v2640_v47, %v1688_v52 }
 0x1bc   : > { %2390 = vst [vmem:[%s2944_s8 + $0x20] sm:$0xff] %v2370_v26   ;;  %v2689_v60 = vpop.f32.mrf.mxu0  ;;  %v2003_v44 = vmul.f32 %v1858_v3, %v1858_v3  ;;  %v2007_v47 = vmul.f32 %v3555_v28, %v3555_v28  ;;  %v2011_v31 = vmul.f32 %v1890_v62, %v1890_v62 }
 0x1bd   : > { %v2697_v27 = vpop.f32.mrf.mxu1  ;;  %v1861_v15 = vadd.f32 %v2689_v60, %v1764_v10  ;;  %v2014_v24 = vadd.f32 %v2013_v4, %v1999_v55  ;;  %v1978_v25 = vadd.f32 %v1977_v34, %v1845_v33  ;;  %v2001_v0 = vmul.f32 %v1850_v59, %v1850_v59 }
 0x1be   : > { %v1893_v16 = vadd.f32 %v2697_v27, %v1796_v61  ;;  %v1852_v58 = vpop.f32.mrf.mxu0  ;;  %v1882_v1 = vadd.f32 %v1881_v39, %v1785_v20  ;;  %v2006_v10 = vmul.f32 %v3568_v48, %v3568_v48 }
 0x1bf   : > { %v1884_v30 = vpop.f32.mrf.mxu1  ;;  %v2365_v17 = vpack.c.bf16 %v1861_v15, %v1858_v3  ;;  %v1979_v50 = vadd.f32 %v1978_v25, %v1850_v59  ;;  %v2015_v2 = vadd.f32 %v2014_v24, %v2000_v19  ;;  %v1853_v40 = vadd.f32 %v1852_v58, %v1756_v63 }
 0x1c0   : > { %v2385_v5 = vpack.c.bf16 %v1893_v16, %v1890_v62  ;;  %v1885_v36 = vadd.f32 %v1884_v30, %v1788_v57  ;;  %v2004_v29 = vmul.f32 %v1861_v15, %v1861_v15  ;;  %v2012_v56 = vmul.f32 %v1893_v16, %v1893_v16 }
 0x1c1   : > { %2389 = vst [vmem:[%s2944_s8 + $0x18] sm:$0xff] %v2365_v17   ;;  %v2016_v37 = vadd.f32 %v2015_v2, %v2001_v0  ;;  %v2360_v21 = vpack.c.bf16 %v1853_v40, %v1850_v59  ;;  %v1980_v53 = vadd.f32 %v1979_v50, %v1853_v40  ;;  %v2002_v33 = vmul.f32 %v1853_v40, %v1853_v40 }
 0x1c2   : > { %2393 = vst [vmem:[%s2944_s8 + $0x38] sm:$0xff] %v2385_v5   ;;  %v2380_v9 = vpack.c.bf16 %v1885_v36, %v1882_v1  ;;  %v2010_v51 = vmul.f32 %v1885_v36, %v1885_v36 }
 0x1c3   : > { %2388 = vst [vmem:[%s2944_s8 + $0x10] sm:$0xff] %v2360_v21   ;;  %v1981_v11 = vadd.f32 %v1980_v53, %v1858_v3  ;;  %v2017_v35 = vadd.f32 %v2016_v37, %v2002_v33 }
 0x1c4   : > { %2392 = vst [vmem:[%s2944_s8 + $0x30] sm:$0xff] %v2380_v9  }
 0x1c5   : > { %v1982_v7 = vadd.f32 %v1981_v11, %v1861_v15  ;;  %v2018_v13 = vadd.f32 %v2017_v35, %v2003_v44 }
 0x1c7   : > { %v1983_v23 = vadd.f32 %v1982_v7, %v3566_v22  ;;  %v2019_v8 = vadd.f32 %v2018_v13, %v2004_v29  ;;  %v2009_v22 = vmul.f32 %v1882_v1, %v1882_v1 }
 0x1c9   : > { %v2020_v32 = vadd.f32 %v2019_v8, %v2005_v12  ;;  %v1984_v43 = vadd.f32 %v1983_v23, %v3568_v48 }
 0x1cb   : > { %v1985_v41 = vadd.f32 %v1984_v43, %v3555_v28  ;;  %v2021_v54 = vadd.f32 %v2020_v32, %v2006_v10 }
 0x1cd   : > { %v1986_v38 = vadd.f32 %v1985_v41, %v3558_v6  ;;  %v2022_v14 = vadd.f32 %v2021_v54, %v2007_v47 }
 0x1cf   : > { %v1987_v42 = vadd.f32 %v1986_v38, %v1882_v1  ;;  %v2023_v49 = vadd.f32 %v2022_v14, %v2008_v18 }
 0x1d1   : > { %v1988_v46 = vadd.f32 %v1987_v42, %v1885_v36  ;;  %v2024_v26 = vadd.f32 %v2023_v49, %v2009_v22 }
 0x1d3   : > { %v1989_v48 = vadd.f32 %v1988_v46, %v1890_v62  ;;  %v2025_v39 = vadd.f32 %v2024_v26, %v2010_v51 }
 0x1d5   : > { %v1990_v52 = vadd.f32 %v1989_v48, %v1893_v16  ;;  %v2026_v45 = vadd.f32 %v2025_v39, %v2011_v31 }
 0x1d7   : > { %v1991_v28 = vrot.slane %v1990_v52, 4  ;;  %v2027_v59 = vadd.f32 %v2026_v45, %v2012_v56 }
 0x1d9   : > { %v1992_v61 = vadd.f32 %v1991_v28, %v1990_v52  ;;  %v2028_v55 = vrot.slane %v2027_v59, 4 }
 0x1db   : > { %v1993_v34 = vrot.slane %v1992_v61, 2  ;;  %v2029_v6 = vadd.f32 %v2028_v55, %v2027_v59 }
 0x1dd   : > { %v1994_v4 = vadd.f32 %v1993_v34, %v1992_v61  ;;  %v2030_v60 = vrot.slane %v2029_v6, 2 }
 0x1df   : > { %v1995_v27 = vrot.slane %v1994_v4, 1  ;;  %v2031_v63 = vadd.f32 %v2030_v60, %v2029_v6 }
 0x1e1   : > { %v2032_v3 = vrot.slane %v2031_v63, 1  ;;  %v1996_v15 = vadd.f32 %v1995_v27, %v1994_v4 }
 0x1e3   : > { %v2033_v19 = vadd.f32 %v2032_v3, %v2031_v63 }
 0x1e5   : > { %v2035_v62 = vsel %vm2034_vm3, %v1996_v15, %v2033_v19 }
 0x1e6   : > { %2036 = vst [vmem:[%s2956_s24] sm:$0x3] %v2035_v62 }
 0x1e7 PF: > { %s15_s19 = sadd.s32 1, %s2873_s19   ;;  %s3662_s15 = smov %s2865_s17 }
 0x1e8   : > { %p12_p12 = scmp.ge.s32.totalorder %s15_s19, 6   ;;  %s3663_s16 = smov %s2869_s18 }
 0x1e9   : > { %s3664_s17 = smov %s3667_s20  ;;  %s3665_s18 = smov %s3671_s21 }
 0x1ea   :  { %14 = sbr.rel (!%p12_p12) target bundleno = 3 (0x3), region = 212 }
 0x1ef   :  { %2091 = vsyncmov [#allocation3] }
 0x1f2   :  { %s2092_s8 = vpop.sfrf %2091 }
 0x1f3   :  { %p2327_p13 = scmp.ne.s32.totalorder %s2092_s8, 0 }
 0x1f5   :  { %2096 = shalt.err (%p2327_p13)  }
 0x1f6   :  { %2098 = vsyncmov [#allocation3 + $0x1] }
 0x1f9   :  { %s2099_s24 = vpop.sfrf %2098 }
 0x1fa   :  { %p2328_p0 = scmp.ne.s32.totalorder %s2099_s24, 0 }
 0x1fc   :  { %2103 = shalt.err (%p2328_p0)  }
 0x1fd   :  { %2105 = vsyncmov [#allocation3 + $0x2] }
 0x200   :  { %s2106_s7 = vpop.sfrf %2105 }
 0x201   :  { %p2329_p1 = scmp.ne.s32.totalorder %s2106_s7, 0 }
 0x203   :  { %2110 = shalt.err (%p2329_p1)  }

// kernel: double_conv.4
= control target key start
LH: loop header
LB: loop body
LE: loop exit
PB: predicated region body
PF: predicated region fallthrough
CT: control target
= control target key end

     0   :  { %s3965_s21 = smov 0   ;;  %s3967_s22 = smov 0   ;;  %s4809_s0 = inlined_call_operand.vmem [shape: bf16[2,16,16,128], index: 0, kind: input, shape index: {}]   ;;  %s4810_s1 = inlined_call_operand.vmem [shape: bf16[1152,128], index: 1, kind: input, shape index: {}]   ;;  %s4811_s2 = inlined_call_operand.vmem [shape: f32[1,128], index: 2, kind: input, shape index: {}]   ;;  %s4812_s3 = inlined_call_operand.vmem [shape: f32[1,128], index: 3, kind: input, shape index: {}]   ;;  %s4813_s4 = inlined_call_operand.vmem [shape: f32[1,128], index: 4, kind: input, shape index: {}]   ;;  %s4814_s5 = inlined_call_operand.vmem [shape: bf16[2,16,16,128], index: 5, kind: output, shape index: {0}]   ;;  %s4815_s6 = inlined_call_operand.vmem [shape: f32[2,2,2,128], index: 6, kind: output, shape index: {1}]  }
   0x1   :  { %s3969_s23 = smov 0   ;;  %s3971_s24 = smov 0  }
   0x2   :  { %s3973_s25 = smov 0  }
   0x3 LB: > { %s26_s26 = sadd.s32 1, %s3917_s23  ;;  %s29_s27 = sadd.s32 1, %s3921_s24  ;;  %s3925_s25 = sphi %s3973_s25, %s17_s25   ;;  %s3921_s24 = sphi %s3971_s24, %s4863_s24   ;;  %s3917_s23 = sphi %s3969_s23, %s4862_s23   ;;  %s3913_s22 = sphi %s3967_s22, %s4861_s22   ;;  %s3909_s21 = sphi %s3965_s21, %s4860_s21  }
   0x4   : > { %p27_p0 = scmp.ge.s32.totalorder %s26_s26, 2  ;;  %p2920_p1 = scmp.ge.s32.totalorder %s3925_s25, 1 }
   0x5   : > { %p197_p2 = scmp.lt.s32.totalorder %s3925_s25, 5 }
   0x6   : > { %s4865_s26 = smov (%p27_p0, %s26_s26), 0  ;;  %s4867_s27 = smov (!%p27_p0, %s29_s27), %s3921_s24 }
   0x7   : > { %p198_p3 = pnand %p2920_p1, %p197_p2  ;;  %p31_p4 = scmp.ge.s32.totalorder %s4867_s27, 2 }
   0x9   : > { %s4869_s27 = smov (%p31_p4, %s4867_s27), 0  ;;  %201 = sbr.rel (%p198_p3) target bundleno = 548 (0x224), region = 36 }
   0xa   : > { %4816 = sst [smem:[#allocation10_spill]] %s4869_s27 }
   0xe   : > { %s2921_s28 = sshll.u32 %s3909_s21, 3  ;;  %p234_p5 = scmp.lt.s32.totalorder %s3913_s22, 1 }
   0xf   : > { %p236_p6 = scmp.lt.s32.totalorder %s2921_s28, 15  ;;  %p246_p7 = scmp.lt.s32.totalorder %s3909_s21, 1 }
  0x10   : > { %s235_s29 = scalar_select %p234_p5, %s3913_s22, 1 }
  0x11   : > { %s237_s30 = scalar_select %p236_p6, %s2921_s28, 15 }
  0x12   : > { %s2923_s7 = sshll.u32 %s235_s29, 5  ;;  %s2925_s8 = sshll.u32 %s235_s29, 1 }
  0x13   : > { %s2922_s9 = sshll.u32 %s237_s30, 1  ;;  %s2928_s10 = sadd.s32 4294967295, %s2921_s28 }
  0x14   : > { %s240_s11 = sadd.s32 %s2923_s7, %s2922_s9  ;;  %p255_p8 = scmp.gt.s32.totalorder %s2928_s10, 0 }
  0x15   : > { %s2924_s12 = sshll.u32 %s240_s11, 2  ;;  %s257_s13 = sadd.s32 8, %s2921_s28 }
  0x16   : > { %s4006_s16 = scalar_lea.vmem %s4814_s5, %s2924_s12  ;;  %p258_p9 = scmp.lt.s32.totalorder %s257_s13, 15 }
  0x17   : > { %s247_s17 = scalar_select %p246_p7, %s3909_s21, 1 }
  0x18   : > { %s4871_s10 = smov (!%p255_p8, %s2928_s10), 0  ;;  %s3114_s19 = sshll.u32 %s3909_s21, 4 }
  0x19   : > { %s249_s18 = sadd.s32 %s2925_s8, %s247_s17  ;;  %s4013_s27 = sshll.u32 %s3913_s22, 5 }
  0x1a   : > { %s2926_s20 = sshll.u32 %s249_s18, 1  ;;  %s262_s28 = sadd.s32 %s3114_s19, %s4013_s27 }
  0x1b   : > { %s4018_s7 = scalar_lea.vmem %s4815_s6, %s2926_s20  ;;  %s4873_s13 = smov (!%p258_p9, %s257_s13), 15 }
  0x1c   : > { %s2931_s9 = sshll.u32 %s262_s28, 2 }
  0x1d   : > { %s264_s14 = scalar_lea.vmem %s4809_s0, %s2931_s9 }
  0x1e   : > { %v313_v0 = vld [vmem:[%s264_s14] sm:$0xff]  ;;  %v315_v1 = vld [vmem:[%s264_s14 + $0x8] sm:$0xff]  ;;  %v317_v2 = vld [vmem:[%s264_s14 + $0x10] sm:$0xff] }
  0x1f   : > { %314 = vst [vmem:[#allocation2 + $0x14] sm:$0xff] %v313_v0  ;;  %316 = vst [vmem:[#allocation2 + $0x24] sm:$0xff] %v315_v1  ;;  %v319_v3 = vld [vmem:[%s264_s14 + $0x18] sm:$0xff]  ;;  %v321_v4 = vld [vmem:[%s264_s14 + $0x20] sm:$0xff] }
  0x20   : > { %318 = vst [vmem:[#allocation2 + $0x34] sm:$0xff] %v317_v2  ;;  %v323_v5 = vld [vmem:[%s264_s14 + $0x28] sm:$0xff]  ;;  %320 = vst [vmem:[#allocation2 + $0x44] sm:$0xff] %v319_v3  ;;  %v325_v6 = vld [vmem:[%s264_s14 + $0x30] sm:$0xff] }
  0x21   : > { %322 = vst [vmem:[#allocation2 + $0x54] sm:$0xff] %v321_v4  ;;  %324 = vst [vmem:[#allocation2 + $0x64] sm:$0xff] %v323_v5  ;;  %v327_v7 = vld [vmem:[%s264_s14 + $0x38] sm:$0xff] }
  0x22   : > { %326 = vst [vmem:[#allocation2 + $0x74] sm:$0xff] %v325_v6  ;;  %328 = vst [vmem:[#allocation2 + $0x84] sm:$0xff] %v327_v7 }
  0x23   : > { %336 = vsyncadd [#allocation3], 1024  ;;  %s2932_s22 = sshll.u32 %s4871_s10, 1 }
  0x24   : > { %s338_s8 = sadd.s32 %s2932_s22, %s4013_s27 }
  0x25   : > { %s2933_s15 = sshll.u32 %s338_s8, 2 }
  0x26   : > { %s340_s19 = scalar_lea.vmem %s4809_s0, %s2933_s15 }
  0x27   : > { %v376_v8 = vld [vmem:[%s340_s19] sm:$0xff] }
  0x28   : > { %377 = vst [vmem:[#allocation2 + $0x4] sm:$0xff] %v376_v8 }
  0x29   : > { %385 = vsyncadd [#allocation3 + $0x1], 128  ;;  %s2934_s20 = sshll.u32 %s4873_s13, 1 }
  0x2a   : > { %s387_s29 = sadd.s32 %s2934_s20, %s4013_s27 }
  0x2b   : > { %s2935_s30 = sshll.u32 %s387_s29, 2 }
  0x2c   : > { %s389_s11 = scalar_lea.vmem %s4809_s0, %s2935_s30 }
  0x2d   : > { %v425_v9 = vld [vmem:[%s389_s11] sm:$0xff] }
  0x2e   : > { %426 = vst [vmem:[#allocation2 + $0x94] sm:$0xff] %v425_v9 }
  0x2f   : > { %434 = vsyncadd [#allocation3 + $0x2], 128 }
  0x30   : > { %3901 = dma.done.wait [#allocation3], 1024 }
  0x31   : > { %3902 = vsyncadd [#allocation3], 4294966272 }
  0x32   : > { %3903 = dma.done.wait [#allocation3 + $0x1], 128 }
  0x33   : > { %3904 = vsyncadd [#allocation3 + $0x1], 4294967168 }
  0x34   : > { %3905 = dma.done.wait [#allocation3 + $0x2], 128 }
  0x35   : > { %3906 = vsyncadd [#allocation3 + $0x2], 4294967168  ;;  %v3172_v10 = vld [vmem:[#allocation2] sm:$0xff]   ;;  %v3391_v14 = vld [vmem:[#allocation2 + $0x8] sm:$0xff]   ;;  %v3927_v61 = vmov 0   ;;  %p2978_p10 = scmp.ne.s32.totalorder %s3909_s21, 0 }
  0x36   : > { %v4039_v11 = vld [vmem:[%s4812_s3] ss:$0 sm:$0xff]  ;;  %v3173_v12 = vunpack.c.l.bf16 %v3172_v10  ;;  %v3174_v13 = vunpack.c.h.bf16 %v3172_v10  ;;  %v3392_v15 = vld [vmem:[#allocation2 + $0x10] sm:$0xff]   ;;  %v3393_v16 = vld [vmem:[#allocation2 + $0x18] sm:$0xff]   ;;  %v3177_v18 = vunpack.c.l.bf16 %v3391_v14  ;;  %v3178_v19 = vunpack.c.h.bf16 %v3391_v14 }
  0x37   : > { %v4044_v17 = vld [vmem:[%s4813_s4] ss:$0 sm:$0xff]  ;;  %v3181_v20 = vunpack.c.l.bf16 %v3392_v15  ;;  %v3182_v21 = vunpack.c.h.bf16 %v3392_v15  ;;  %v3185_v24 = vunpack.c.l.bf16 %v3393_v16  ;;  %v3186_v25 = vunpack.c.h.bf16 %v3393_v16  ;;  %v3395_v45 = vld [vmem:[#allocation2 + $0x28] sm:$0xff]   ;;  %v3396_v58 = vld [vmem:[#allocation2 + $0x30] sm:$0xff]  }
  0x38   : > { %v534_v22 = vmul.f32 %v3173_v12, %v4039_v11  ;;  %v535_v23 = vmul.f32 %v3174_v13, %v4039_v11  ;;  %v536_v26 = vmul.f32 %v3177_v18, %v4039_v11  ;;  %v537_v27 = vmul.f32 %v3178_v19, %v4039_v11  ;;  %v3394_v44 = vld [vmem:[#allocation2 + $0x20] sm:$0xff]   ;;  %v3397_v15 = vld [vmem:[#allocation2 + $0x38] sm:$0xff]  }
  0x39   : > { %v538_v28 = vmul.f32 %v3181_v20, %v4039_v11  ;;  %v539_v29 = vmul.f32 %v3182_v21, %v4039_v11  ;;  %v540_v32 = vmul.f32 %v3185_v24, %v4039_v11  ;;  %v541_v33 = vmul.f32 %v3186_v25, %v4039_v11 }
  0x3a   : > { %v581_v30 = vadd.f32 %v4044_v17, %v534_v22  ;;  %v582_v31 = vadd.f32 %v4044_v17, %v535_v23  ;;  %v583_v34 = vadd.f32 %v4044_v17, %v536_v26  ;;  %v584_v35 = vadd.f32 %v4044_v17, %v537_v27  ;;  %v3398_v26 = vld [vmem:[#allocation2 + $0x40] sm:$0xff]  }
  0x3b   : > { %v585_v36 = vadd.f32 %v4044_v17, %v538_v28  ;;  %v586_v37 = vadd.f32 %v4044_v17, %v539_v29  ;;  %v587_v52 = vadd.f32 %v4044_v17, %v540_v32  ;;  %v588_v53 = vadd.f32 %v4044_v17, %v541_v33 }
  0x3c   : > { %vm621_vm0 = vcmp.ge.f32.partialorder %v581_v30, 0.0  ;;  %vm622_vm1 = vcmp.ge.f32.partialorder %v582_v31, 0.0  ;;  %v661_v38 = vmul.f32 0.2, %v581_v30  ;;  %v662_v39 = vmul.f32 0.2, %v582_v31 }
  0x3d   : > { %vm623_vm2 = vcmp.ge.f32.partialorder %v583_v34, 0.0  ;;  %vm624_vm3 = vcmp.ge.f32.partialorder %v584_v35, 0.0  ;;  %v663_v40 = vmul.f32 0.2, %v583_v34  ;;  %v664_v41 = vmul.f32 0.2, %v584_v35 }
  0x3e   : > { %v701_v42 = vsel %vm621_vm0, %v581_v30, %v661_v38  ;;  %v702_v43 = vsel %vm622_vm1, %v582_v31, %v662_v39  ;;  %vm625_vm4 = vcmp.ge.f32.partialorder %v585_v36, 0.0  ;;  %vm626_vm5 = vcmp.ge.f32.partialorder %v586_v37, 0.0  ;;  %v3400_v38 = vld [vmem:[#allocation2 + $0x50] sm:$0xff]  }
  0x3f   : > { %v3254_v46 = vpack.c.bf16 %v702_v43, %v701_v42  ;;  %v703_v47 = vsel %vm623_vm2, %v583_v34, %v663_v40  ;;  %v704_v48 = vsel %vm624_vm3, %v584_v35, %v664_v41  ;;  %v665_v49 = vmul.f32 0.2, %v585_v36 }
  0x40   : > { %v3259_v50 = vpack.c.bf16 %v704_v48, %v703_v47  ;;  %v666_v51 = vmul.f32 0.2, %v586_v37  ;;  %v3189_v55 = vunpack.c.l.bf16 %v3394_v44  ;;  %v3190_v56 = vunpack.c.h.bf16 %v3394_v44 }
  0x41   : > { %3255 = vst [vmem:[#allocation2] sm:$0xff] %v3254_v46   ;;  %v705_v54 = vsel %vm625_vm4, %v585_v36, %v665_v49  ;;  %v3193_v57 = vunpack.c.l.bf16 %v3395_v45  ;;  %vm627_vm6 = vcmp.ge.f32.partialorder %v587_v52, 0.0  ;;  %vm628_vm7 = vcmp.ge.f32.partialorder %v588_v53, 0.0 }
  0x42   : > { %3410 = vst [vmem:[#allocation2 + $0x8] sm:$0xff] %v3259_v50   ;;  %v706_v59 = vsel %vm626_vm5, %v586_v37, %v666_v51  ;;  %v667_v60 = vmul.f32 0.2, %v587_v52  ;;  %941 = vst [vmem:[#allocation2] sm:$0xf] %v3927_v61  ;;  %v542_v0 = vmul.f32 %v3189_v55, %v4039_v11  ;;  %v543_v1 = vmul.f32 %v3190_v56, %v4039_v11  ;;  %v3399_v37 = vld [vmem:[#allocation2 + $0x48] sm:$0xff]  }
  0x43   : > { %v3264_v62 = vpack.c.bf16 %v706_v59, %v705_v54  ;;  %v668_v63 = vmul.f32 0.2, %v588_v53  ;;  %951 = vst [vmem:[#allocation2 + $0xc] sm:$0xf] %v3927_v61  ;;  %v3194_v3 = vunpack.c.h.bf16 %v3395_v45  ;;  %v544_v4 = vmul.f32 %v3193_v57, %v4039_v11 }
  0x44   : > { %v707_v2 = vsel %vm627_vm6, %v587_v52, %v667_v60  ;;  %v3197_v5 = vunpack.c.l.bf16 %v3396_v58  ;;  %v589_v7 = vadd.f32 %v4044_v17, %v542_v0  ;;  %v590_v8 = vadd.f32 %v4044_v17, %v543_v1 }
  0x45   : > { %3411 = vst [vmem:[#allocation2 + $0x10] sm:$0xff] %v3264_v62   ;;  %v708_v6 = vsel %vm628_vm7, %v588_v53, %v668_v63  ;;  %v3198_v9 = vunpack.c.h.bf16 %v3396_v58  ;;  %v545_v12 = vmul.f32 %v3194_v3, %v4039_v11  ;;  %v591_v13 = vadd.f32 %v4044_v17, %v544_v4  ;;  %v3401_v3 = vld [vmem:[#allocation2 + $0x58] sm:$0xff]  }
  0x46   : > { %v3269_v10 = vpack.c.bf16 %v708_v6, %v707_v2  ;;  %v546_v14 = vmul.f32 %v3197_v5, %v4039_v11  ;;  %942 = vst [vmem:[#allocation2 + $0x10] sm:$0xf] %v3927_v61  ;;  %vm629_vm8 = vcmp.ge.f32.partialorder %v589_v7, 0.0  ;;  %vm630_vm9 = vcmp.ge.f32.partialorder %v590_v8, 0.0 }
  0x47   : > { %v669_v16 = vmul.f32 0.2, %v589_v7  ;;  %v670_v18 = vmul.f32 0.2, %v590_v8  ;;  %v592_v19 = vadd.f32 %v4044_v17, %v545_v12  ;;  %vm631_vm10 = vcmp.ge.f32.partialorder %v591_v13, 0.0 }
  0x48   : > { %3412 = vst [vmem:[#allocation2 + $0x18] sm:$0xff] %v3269_v10   ;;  %v671_v20 = vmul.f32 0.2, %v591_v13  ;;  %v547_v21 = vmul.f32 %v3198_v9, %v4039_v11  ;;  %v593_v24 = vadd.f32 %v4044_v17, %v546_v14  ;;  %v3201_v25 = vunpack.c.l.bf16 %v3397_v15 }
  0x49   : > { %v709_v22 = vsel %vm629_vm8, %v589_v7, %v669_v16  ;;  %v710_v23 = vsel %vm630_vm9, %v590_v8, %v670_v18  ;;  %952 = vst [vmem:[#allocation2 + $0x1c] sm:$0xf] %v3927_v61  ;;  %vm632_vm11 = vcmp.ge.f32.partialorder %v592_v19, 0.0  ;;  %v672_v28 = vmul.f32 0.2, %v592_v19  ;;  %v3402_v8 = vld [vmem:[#allocation2 + $0x60] sm:$0xff]  }
  0x4a   : > { %v3274_v27 = vpack.c.bf16 %v710_v23, %v709_v22  ;;  %v711_v29 = vsel %vm631_vm10, %v591_v13, %v671_v20  ;;  %v594_v30 = vadd.f32 %v4044_v17, %v547_v21  ;;  %vm633_vm12 = vcmp.ge.f32.partialorder %v593_v24, 0.0  ;;  %v3403_v21 = vld [vmem:[#allocation2 + $0x68] sm:$0xff]  }
  0x4b   : > { %v673_v31 = vmul.f32 0.2, %v593_v24  ;;  %v3202_v32 = vunpack.c.h.bf16 %v3397_v15  ;;  %v712_v33 = vsel %vm632_vm11, %v592_v19, %v672_v28  ;;  %v548_v34 = vmul.f32 %v3201_v25, %v4039_v11 }
  0x4c   : > { %3413 = vst [vmem:[#allocation2 + $0x20] sm:$0xff] %v3274_v27   ;;  %v3205_v35 = vunpack.c.l.bf16 %v3398_v26  ;;  %v3206_v36 = vunpack.c.h.bf16 %v3398_v26  ;;  %v3279_v39 = vpack.c.bf16 %v712_v33, %v711_v29  ;;  %vm634_vm13 = vcmp.ge.f32.partialorder %v594_v30, 0.0 }
  0x4d   : > { %v674_v40 = vmul.f32 0.2, %v594_v30  ;;  %v713_v41 = vsel %vm633_vm12, %v593_v24, %v673_v31  ;;  %943 = vst [vmem:[#allocation2 + $0x20] sm:$0xf] %v3927_v61  ;;  %v549_v42 = vmul.f32 %v3202_v32, %v4039_v11  ;;  %v595_v43 = vadd.f32 %v4044_v17, %v548_v34 }
  0x4e   : > { %v550_v44 = vmul.f32 %v3205_v35, %v4039_v11  ;;  %v551_v45 = vmul.f32 %v3206_v36, %v4039_v11  ;;  %3414 = vst [vmem:[#allocation2 + $0x28] sm:$0xff] %v3279_v39   ;;  %v3209_v47 = vunpack.c.l.bf16 %v3399_v37  ;;  %v3210_v48 = vunpack.c.h.bf16 %v3399_v37 }
  0x4f   : > { %v714_v46 = vsel %vm634_vm13, %v594_v30, %v674_v40  ;;  %v3213_v49 = vunpack.c.l.bf16 %v3400_v38  ;;  %v596_v51 = vadd.f32 %v4044_v17, %v549_v42  ;;  %vm635_vm14 = vcmp.ge.f32.partialorder %v595_v43, 0.0  ;;  %953 = vst [vmem:[#allocation2 + $0x2c] sm:$0xf] %v3927_v61  ;;  %v3404_v40 = vld [vmem:[#allocation2 + $0x70] sm:$0xff]  }
  0x50   : > { %v3284_v50 = vpack.c.bf16 %v714_v46, %v713_v41  ;;  %v675_v52 = vmul.f32 0.2, %v595_v43  ;;  %v597_v53 = vadd.f32 %v4044_v17, %v550_v44  ;;  %v598_v54 = vadd.f32 %v4044_v17, %v551_v45 }
  0x51   : > { %v552_v55 = vmul.f32 %v3209_v47, %v4039_v11  ;;  %v553_v56 = vmul.f32 %v3210_v48, %v4039_v11  ;;  %vm636_vm15 = vcmp.ge.f32.partialorder %v596_v51, 0.0  ;;  %v676_v57 = vmul.f32 0.2, %v596_v51 }
  0x52   : > { %3415 = vst [vmem:[#allocation2 + $0x30] sm:$0xff] %v3284_v50   ;;  %v715_v58 = vsel %vm635_vm14, %v595_v43, %v675_v52  ;;  %v3214_v59 = vunpack.c.h.bf16 %v3400_v38  ;;  %vm637_vm0 = vcmp.ge.f32.partialorder %v597_v53, 0.0  ;;  %vm638_vm1 = vcmp.ge.f32.partialorder %v598_v54, 0.0 }
  0x53   : > { %v677_v60 = vmul.f32 0.2, %v597_v53  ;;  %v678_v62 = vmul.f32 0.2, %v598_v54  ;;  %944 = vst [vmem:[#allocation2 + $0x30] sm:$0xf] %v3927_v61  ;;  %v716_v63 = vsel %vm636_vm15, %v596_v51, %v676_v57  ;;  %v599_v0 = vadd.f32 %v4044_v17, %v552_v55 }
  0x54   : > { %v600_v1 = vadd.f32 %v4044_v17, %v553_v56  ;;  %v554_v2 = vmul.f32 %v3213_v49, %v4039_v11  ;;  %v3289_v4 = vpack.c.bf16 %v716_v63, %v715_v58  ;;  %v555_v7 = vmul.f32 %v3214_v59, %v4039_v11  ;;  %v3405_v49 = vld [vmem:[#allocation2 + $0x78] sm:$0xff]   ;;  %v3407_v63 = vld [vmem:[#allocation2 + $0x88] sm:$0xff]  }
  0x55   : > { %v717_v5 = vsel %vm637_vm0, %v597_v53, %v677_v60  ;;  %v718_v6 = vsel %vm638_vm1, %v598_v54, %v678_v62  ;;  %vm639_vm2 = vcmp.ge.f32.partialorder %v599_v0, 0.0  ;;  %v679_v10 = vmul.f32 0.2, %v599_v0  ;;  %v3406_v54 = vld [vmem:[#allocation2 + $0x80] sm:$0xff]  }
  0x56   : > { %v3294_v9 = vpack.c.bf16 %v718_v6, %v717_v5  ;;  %vm640_vm3 = vcmp.ge.f32.partialorder %v600_v1, 0.0  ;;  %3416 = vst [vmem:[#allocation2 + $0x38] sm:$0xff] %v3289_v4   ;;  %v680_v12 = vmul.f32 0.2, %v600_v1  ;;  %v601_v13 = vadd.f32 %v4044_v17, %v554_v2 }
  0x57   : > { %v602_v14 = vadd.f32 %v4044_v17, %v555_v7  ;;  %v3217_v15 = vunpack.c.l.bf16 %v3401_v3  ;;  %v719_v16 = vsel %vm639_vm2, %v599_v0, %v679_v10  ;;  %v3218_v18 = vunpack.c.h.bf16 %v3401_v3  ;;  %954 = vst [vmem:[#allocation2 + $0x3c] sm:$0xf] %v3927_v61 }
  0x58   : > { %3417 = vst [vmem:[#allocation2 + $0x40] sm:$0xff] %v3294_v9   ;;  %v3221_v19 = vunpack.c.l.bf16 %v3402_v8  ;;  %v3222_v20 = vunpack.c.h.bf16 %v3402_v8  ;;  %v720_v22 = vsel %vm640_vm3, %v600_v1, %v680_v12  ;;  %vm641_vm4 = vcmp.ge.f32.partialorder %v601_v13, 0.0 }
  0x59   : > { %vm642_vm5 = vcmp.ge.f32.partialorder %v602_v14, 0.0  ;;  %v681_v23 = vmul.f32 0.2, %v601_v13  ;;  %945 = vst [vmem:[#allocation2 + $0x40] sm:$0xf] %v3927_v61  ;;  %v3299_v24 = vpack.c.bf16 %v720_v22, %v719_v16  ;;  %v556_v26 = vmul.f32 %v3217_v15, %v4039_v11 }
  0x5a   : > { %v682_v25 = vmul.f32 0.2, %v602_v14  ;;  %v557_v27 = vmul.f32 %v3218_v18, %v4039_v11  ;;  %v558_v29 = vmul.f32 %v3221_v19, %v4039_v11  ;;  %v559_v30 = vmul.f32 %v3222_v20, %v4039_v11 }
  0x5b   : > { %v721_v28 = vsel %vm641_vm4, %v601_v13, %v681_v23  ;;  %v3225_v31 = vunpack.c.l.bf16 %v3403_v21  ;;  %3418 = vst [vmem:[#allocation2 + $0x48] sm:$0xff] %v3299_v24   ;;  %v603_v33 = vadd.f32 %v4044_v17, %v556_v26  ;;  %v3226_v35 = vunpack.c.h.bf16 %v3403_v21 }
  0x5c   : > { %v722_v32 = vsel %vm642_vm5, %v602_v14, %v682_v25  ;;  %v604_v34 = vadd.f32 %v4044_v17, %v557_v27  ;;  %v605_v37 = vadd.f32 %v4044_v17, %v558_v29  ;;  %v606_v38 = vadd.f32 %v4044_v17, %v559_v30  ;;  %955 = vst [vmem:[#allocation2 + $0x4c] sm:$0xf] %v3927_v61 }
  0x5d   : > { %v3304_v36 = vpack.c.bf16 %v722_v32, %v721_v28  ;;  %v560_v39 = vmul.f32 %v3225_v31, %v4039_v11  ;;  %vm643_vm6 = vcmp.ge.f32.partialorder %v603_v33, 0.0  ;;  %v683_v41 = vmul.f32 0.2, %v603_v33  ;;  %v3408_v28 = vld [vmem:[#allocation2 + $0x90] sm:$0xff]  }
  0x5e   : > { %vm644_vm7 = vcmp.ge.f32.partialorder %v604_v34, 0.0  ;;  %v684_v42 = vmul.f32 0.2, %v604_v34  ;;  %vm645_vm8 = vcmp.ge.f32.partialorder %v605_v37, 0.0  ;;  %vm646_vm9 = vcmp.ge.f32.partialorder %v606_v38, 0.0 }
  0x5f   : > { %3419 = vst [vmem:[#allocation2 + $0x50] sm:$0xff] %v3304_v36   ;;  %v685_v43 = vmul.f32 0.2, %v605_v37  ;;  %v686_v44 = vmul.f32 0.2, %v606_v38  ;;  %v723_v45 = vsel %vm643_vm6, %v603_v33, %v683_v41  ;;  %v561_v47 = vmul.f32 %v3226_v35, %v4039_v11  ;;  %v3409_v33 = vld [vmem:[#allocation2 + $0x98] sm:$0xff]  }
  0x60   : > { %v724_v46 = vsel %vm644_vm7, %v604_v34, %v684_v42  ;;  %v607_v48 = vadd.f32 %v4044_v17, %v560_v39  ;;  %946 = vst [vmem:[#allocation2 + $0x50] sm:$0xf] %v3927_v61  ;;  %v3229_v53 = vunpack.c.l.bf16 %v3404_v40  ;;  %v3230_v58 = vunpack.c.h.bf16 %v3404_v40 }
  0x61   : > { %v3309_v50 = vpack.c.bf16 %v724_v46, %v723_v45  ;;  %v725_v51 = vsel %vm645_vm8, %v605_v37, %v685_v43  ;;  %v726_v52 = vsel %vm646_vm9, %v606_v38, %v686_v44  ;;  %v608_v56 = vadd.f32 %v4044_v17, %v561_v47 }
  0x62   : > { %v3314_v55 = vpack.c.bf16 %v726_v52, %v725_v51  ;;  %vm647_vm10 = vcmp.ge.f32.partialorder %v607_v48, 0.0  ;;  %v687_v57 = vmul.f32 0.2, %v607_v48  ;;  %v562_v59 = vmul.f32 %v3229_v53, %v4039_v11 }
  0x63   : > { %3420 = vst [vmem:[#allocation2 + $0x58] sm:$0xff] %v3309_v50   ;;  %v3233_v60 = vunpack.c.l.bf16 %v3405_v49  ;;  %v3234_v62 = vunpack.c.h.bf16 %v3405_v49  ;;  %vm648_vm11 = vcmp.ge.f32.partialorder %v608_v56, 0.0  ;;  %v688_v0 = vmul.f32 0.2, %v608_v56 }
  0x64   : > { %3421 = vst [vmem:[#allocation2 + $0x60] sm:$0xff] %v3314_v55   ;;  %v727_v1 = vsel %vm647_vm10, %v607_v48, %v687_v57  ;;  %v3237_v2 = vunpack.c.l.bf16 %v3406_v54  ;;  %956 = vst [vmem:[#allocation2 + $0x5c] sm:$0xf] %v3927_v61  ;;  %v563_v3 = vmul.f32 %v3230_v58, %v4039_v11  ;;  %v609_v4 = vadd.f32 %v4044_v17, %v562_v59 }
  0x65   : > { %v564_v5 = vmul.f32 %v3233_v60, %v4039_v11  ;;  %v565_v6 = vmul.f32 %v3234_v62, %v4039_v11  ;;  %947 = vst [vmem:[#allocation2 + $0x60] sm:$0xf] %v3927_v61  ;;  %v728_v7 = vsel %vm648_vm11, %v608_v56, %v688_v0  ;;  %v3238_v8 = vunpack.c.h.bf16 %v3406_v54 }
  0x66   : > { %v566_v9 = vmul.f32 %v3237_v2, %v4039_v11  ;;  %v3241_v10 = vunpack.c.l.bf16 %v3407_v63  ;;  %v3319_v12 = vpack.c.bf16 %v728_v7, %v727_v1  ;;  %v610_v13 = vadd.f32 %v4044_v17, %v563_v3 }
  0x67   : > { %vm649_vm12 = vcmp.ge.f32.partialorder %v609_v4, 0.0  ;;  %v689_v14 = vmul.f32 0.2, %v609_v4  ;;  %v611_v15 = vadd.f32 %v4044_v17, %v564_v5  ;;  %v612_v16 = vadd.f32 %v4044_v17, %v565_v6 }
  0x68   : > { %v567_v18 = vmul.f32 %v3238_v8, %v4039_v11  ;;  %v613_v19 = vadd.f32 %v4044_v17, %v566_v9  ;;  %3422 = vst [vmem:[#allocation2 + $0x68] sm:$0xff] %v3319_v12   ;;  %vm650_vm13 = vcmp.ge.f32.partialorder %v610_v13, 0.0  ;;  %v690_v20 = vmul.f32 0.2, %v610_v13 }
  0x69   : > { %v729_v21 = vsel %vm649_vm12, %v609_v4, %v689_v14  ;;  %v3242_v22 = vunpack.c.h.bf16 %v3407_v63  ;;  %vm651_vm14 = vcmp.ge.f32.partialorder %v611_v15, 0.0  ;;  %vm652_vm15 = vcmp.ge.f32.partialorder %v612_v16, 0.0  ;;  %957 = vst [vmem:[#allocation2 + $0x6c] sm:$0xf] %v3927_v61 }
  0x6a   : > { %v691_v23 = vmul.f32 0.2, %v611_v15  ;;  %v692_v24 = vmul.f32 0.2, %v612_v16  ;;  %v730_v25 = vsel %vm650_vm13, %v610_v13, %v690_v20  ;;  %v614_v26 = vadd.f32 %v4044_v17, %v567_v18 }
  0x6b   : > { %vm653_vm0 = vcmp.ge.f32.partialorder %v613_v19, 0.0  ;;  %v693_v27 = vmul.f32 0.2, %v613_v19  ;;  %v3324_v29 = vpack.c.bf16 %v730_v25, %v729_v21  ;;  %v568_v32 = vmul.f32 %v3241_v10, %v4039_v11 }
  0x6c   : > { %v731_v30 = vsel %vm651_vm14, %v611_v15, %v691_v23  ;;  %v732_v31 = vsel %vm652_vm15, %v612_v16, %v692_v24  ;;  %vm654_vm1 = vcmp.ge.f32.partialorder %v614_v26, 0.0  ;;  %v694_v35 = vmul.f32 0.2, %v614_v26 }
  0x6d   : > { %v3329_v34 = vpack.c.bf16 %v732_v31, %v731_v30  ;;  %v733_v36 = vsel %vm653_vm0, %v613_v19, %v693_v27  ;;  %3423 = vst [vmem:[#allocation2 + $0x70] sm:$0xff] %v3324_v29   ;;  %v569_v37 = vmul.f32 %v3242_v22, %v4039_v11  ;;  %v615_v38 = vadd.f32 %v4044_v17, %v568_v32 }
  0x6e   : > { %v3245_v39 = vunpack.c.l.bf16 %v3408_v28  ;;  %v3246_v40 = vunpack.c.h.bf16 %v3408_v28  ;;  %v734_v41 = vsel %vm654_vm1, %v614_v26, %v694_v35  ;;  %v3249_v42 = vunpack.c.l.bf16 %v3409_v33  ;;  %948 = vst [vmem:[#allocation2 + $0x70] sm:$0xf] %v3927_v61 }
  0x6f   : > { %3424 = vst [vmem:[#allocation2 + $0x78] sm:$0xff] %v3329_v34   ;;  %v3250_v43 = vunpack.c.h.bf16 %v3409_v33  ;;  %v3334_v44 = vpack.c.bf16 %v734_v41, %v733_v36  ;;  %v616_v45 = vadd.f32 %v4044_v17, %v569_v37  ;;  %vm655_vm2 = vcmp.ge.f32.partialorder %v615_v38, 0.0 }
  0x70   : > { %v695_v46 = vmul.f32 0.2, %v615_v38  ;;  %958 = vst [vmem:[#allocation2 + $0x7c] sm:$0xf] %v3927_v61  ;;  %v570_v47 = vmul.f32 %v3245_v39, %v4039_v11  ;;  %v571_v48 = vmul.f32 %v3246_v40, %v4039_v11  ;;  %v572_v49 = vmul.f32 %v3249_v42, %v4039_v11 }
  0x71   : > { %v573_v50 = vmul.f32 %v3250_v43, %v4039_v11  ;;  %3425 = vst [vmem:[#allocation2 + $0x80] sm:$0xff] %v3334_v44   ;;  %vm656_vm3 = vcmp.ge.f32.partialorder %v616_v45, 0.0  ;;  %v696_v51 = vmul.f32 0.2, %v616_v45 }
  0x72   : > { %v735_v52 = vsel %vm655_vm2, %v615_v38, %v695_v46  ;;  %v617_v53 = vadd.f32 %v4044_v17, %v570_v47  ;;  %v618_v54 = vadd.f32 %v4044_v17, %v571_v48  ;;  %v619_v55 = vadd.f32 %v4044_v17, %v572_v49  ;;  %949 = vst [vmem:[#allocation2 + $0x80] sm:$0xf] %v3927_v61 }
  0x73   : > { %v620_v56 = vadd.f32 %v4044_v17, %v573_v50  ;;  %v736_v57 = vsel %vm656_vm3, %v616_v45, %v696_v51 }
  0x74   : > { %v3339_v58 = vpack.c.bf16 %v736_v57, %v735_v52  ;;  %vm657_vm4 = vcmp.ge.f32.partialorder %v617_v53, 0.0  ;;  %vm658_vm5 = vcmp.ge.f32.partialorder %v618_v54, 0.0  ;;  %v697_v59 = vmul.f32 0.2, %v617_v53 }
  0x75   : > { %v698_v11 = vmul.f32 0.2, %v618_v54  ;;  %vm659_vm6 = vcmp.ge.f32.partialorder %v619_v55, 0.0  ;;  %vm660_vm7 = vcmp.ge.f32.partialorder %v620_v56, 0.0  ;;  %v699_v60 = vmul.f32 0.2, %v619_v55 }
  0x76   : > { %3426 = vst [vmem:[#allocation2 + $0x88] sm:$0xff] %v3339_v58   ;;  %v737_v62 = vsel %vm657_vm4, %v617_v53, %v697_v59  ;;  %v700_v63 = vmul.f32 0.2, %v620_v56 }
  0x77   : > { %v738_v0 = vsel %vm658_vm5, %v618_v54, %v698_v11  ;;  %v739_v1 = vsel %vm659_vm6, %v619_v55, %v699_v60  ;;  %959 = vst [vmem:[#allocation2 + $0x8c] sm:$0xf] %v3927_v61 }
  0x78   : > { %v3344_v2 = vpack.c.bf16 %v738_v0, %v737_v62  ;;  %v740_v17 = vsel %vm660_vm7, %v620_v56, %v700_v63  ;;  %964 = sbr.rel (%p2978_p10) target bundleno = 128 (0x80), region = 142 }
  0x79   : > { %v3349_v3 = vpack.c.bf16 %v740_v17, %v739_v1 }
  0x7a   : > { %3427 = vst [vmem:[#allocation2 + $0x90] sm:$0xff] %v3344_v2  }
  0x7b   : > { %3428 = vst [vmem:[#allocation2 + $0x98] sm:$0xff] %v3349_v3   ;;  %950 = vst [vmem:[#allocation2 + $0x90] sm:$0xf] %v3927_v61 }
  0x7c   : > { %960 = vst [vmem:[#allocation2 + $0x9c] sm:$0xf] %v3927_v61 }
  0x7d   : > { %v3928_v4 = vmov 0  }
  0x7e   : > { %965 = vst [vmem:[#allocation2] sm:$0xf] %v3928_v4  ;;  %966 = vst [vmem:[#allocation2 + $0x4] sm:$0xf] %v3928_v4 }
  0x7f   : > { %967 = vst [vmem:[#allocation2 + $0x8] sm:$0xf] %v3928_v4  ;;  %968 = vst [vmem:[#allocation2 + $0xc] sm:$0xf] %v3928_v4 }
  0x80 PF: > { %p2979_p11 = scmp.ne.s32.totalorder %s3909_s21, 1 }
  0x82   : > { %972 = sbr.rel (%p2979_p11) target bundleno = 138 (0x8a), region = 146 }
  0x87   : > { %v3929_v5 = vmov 0  }
  0x88   : > { %974 = vst [vmem:[#allocation2 + $0x90] sm:$0xf] %v3929_v5  ;;  %975 = vst [vmem:[#allocation2 + $0x94] sm:$0xf] %v3929_v5 }
  0x89   : > { %976 = vst [vmem:[#allocation2 + $0x98] sm:$0xf] %v3929_v5  ;;  %977 = vst [vmem:[#allocation2 + $0x9c] sm:$0xf] %v3929_v5 }
  0x8a PF: > { %v3799_v61 = vld [vmem:[%s4810_s1 + $0x78] sm:$0xff]   ;;  %v3803_v9 = vld [vmem:[%s4810_s1 + $0x70] sm:$0xff]   ;;  %v3807_v14 = vld [vmem:[%s4810_s1 + $0x68] sm:$0xff]   ;;  %vm1018_vm8 = vsmask.f32 256  ;;  %vm2730_vm14 = vcmask 1040384  }
  0x8b   : > { %v3800_v6 = vld [vmem:[%s4810_s1 + $0xf8] sm:$0xff]   ;;  %3436 = vmatprep.subr.bf16.mxu0 %v3799_v61  ;;  %v3804_v10 = vld [vmem:[%s4810_s1 + $0xf0] sm:$0xff]   ;;  %v3808_v15 = vld [vmem:[%s4810_s1 + $0xe8] sm:$0xff]   ;;  %vm1019_vm9 = vsmask.f32 4368 }
  0x8c   : > { %v3801_v7 = vld [vmem:[%s4810_s1 + $0x38] sm:$0xff]   ;;  %3500 = vmatprep.subr.bf16.mxu1 %v3800_v6  ;;  %v3805_v12 = vld [vmem:[%s4810_s1 + $0x30] sm:$0xff]   ;;  %v3809_v16 = vld [vmem:[%s4810_s1 + $0x28] sm:$0xff]   ;;  %vm1197_vm11 = vsmask.f32 3328 }
  0x8d   : > { %v3802_v8 = vld [vmem:[%s4810_s1 + $0xb8] sm:$0xff]   ;;  %3437 = vmatpush3.bf16.msra.mxu0 %v3801_v7  ;;  %v3806_v13 = vld [vmem:[%s4810_s1 + $0xb0] sm:$0xff]   ;;  %v3810_v18 = vld [vmem:[%s4810_s1 + $0xa8] sm:$0xff]   ;;  %vm1198_vm12 = vsmask.f32 7440 }
  0x8e   : > { %3501 = vmatpush3.bf16.msra.mxu1 %v3802_v8  ;;  %3438 = vmatprep.subr.bf16.mxu0 %v3803_v9  ;;  %v3811_v19 = vld [vmem:[%s4810_s1 + $0x60] sm:$0xff]   ;;  %v3815_v23 = vld [vmem:[%s4810_s1 + $0x58] sm:$0xff]   ;;  %v3819_v27 = vld [vmem:[%s4810_s1 + $0x50] sm:$0xff]  }
  0x8f   : > { %3502 = vmatprep.subr.bf16.mxu1 %v3804_v10  ;;  %v3812_v20 = vld [vmem:[%s4810_s1 + $0xe0] sm:$0xff]   ;;  %v3816_v24 = vld [vmem:[%s4810_s1 + $0xd8] sm:$0xff]   ;;  %v3820_v28 = vld [vmem:[%s4810_s1 + $0xd0] sm:$0xff]  }
  0x90   : > { %v3813_v21 = vld [vmem:[%s4810_s1 + $0x20] sm:$0xff]   ;;  %v3817_v25 = vld [vmem:[%s4810_s1 + $0x18] sm:$0xff]   ;;  %v3821_v29 = vld [vmem:[%s4810_s1 + $0x10] sm:$0xff]  }
  0x91   : > { %3439 = vmatpush3.bf16.msra.mxu0 %v3805_v12  ;;  %v3814_v22 = vld [vmem:[%s4810_s1 + $0xa0] sm:$0xff]   ;;  %v3818_v26 = vld [vmem:[%s4810_s1 + $0x98] sm:$0xff]   ;;  %v3822_v30 = vld [vmem:[%s4810_s1 + $0x90] sm:$0xff]  }
  0x92   : > { %3503 = vmatpush3.bf16.msra.mxu1 %v3806_v13  ;;  %3440 = vmatprep.subr.bf16.mxu0 %v3807_v14  ;;  %v3823_v31 = vld [vmem:[%s4810_s1 + $0x48] sm:$0xff]   ;;  %v3827_v35 = vld [vmem:[%s4810_s1 + $0x40] sm:$0xff]   ;;  %v982_v41 = vld [vmem:[#allocation2 + $0x10] sm:$0xf] }
  0x93   : > { %3504 = vmatprep.subr.bf16.mxu1 %v3808_v15  ;;  %v3824_v32 = vld [vmem:[%s4810_s1 + $0xc8] sm:$0xff]   ;;  %v3828_v36 = vld [vmem:[%s4810_s1 + $0xc0] sm:$0xff]   ;;  %v4245_v46 = vld [vmem:[#allocation2 + $0x14] sm:$0xf]  ;;  %v1044_v55 = vshrl.u32 %v982_v41, 16 }
  0x94   : > { %v3825_v33 = vld [vmem:[%s4810_s1 + $0x8] sm:$0xff]   ;;  %v3829_v37 = vld [vmem:[%s4810_s1] sm:$0xff]   ;;  %v4247_v52 = vld [vmem:[#allocation2 + $0x18] sm:$0xf]  ;;  %v1049_v56 = vshrl.u32 %v4245_v46, 16  ;;  %v1052_v3 = vshll.u32 %v4245_v46, 16 }
  0x95   : > { %3441 = vmatpush3.bf16.msra.mxu0 %v3809_v16  ;;  %v3826_v34 = vld [vmem:[%s4810_s1 + $0x88] sm:$0xff]   ;;  %v3830_v38 = vld [vmem:[%s4810_s1 + $0x80] sm:$0xff]   ;;  %v3832_v63 = vld [vmem:[%s4810_s1 + $0x178] sm:$0xff]   ;;  %v2981_v2 = vrot.slane %v1044_v55, 11  ;;  %v1058_v5 = vshrl.u32 %v4247_v52, 16  ;;  %v1061_v61 = vshll.u32 %v4247_v52, 16 }
  0x96   : > { %3505 = vmatpush3.bf16.msra.mxu1 %v3810_v18  ;;  %3442 = vmatprep.subr.bf16.mxu0 %v3811_v19  ;;  %v979_v39 = vld [vmem:[#allocation2 + $0x4] sm:$0xf]  ;;  %v980_v40 = vld [vmem:[#allocation2 + $0x8] sm:$0xf]  ;;  %v978_v57 = vld [vmem:[#allocation2] sm:$0xf] }
  0x97   : > { %3506 = vmatprep.subr.bf16.mxu1 %v3812_v20  ;;  %v1027_v42 = vshrl.u32 %v979_v39, 16  ;;  %v1030_v43 = vshll.u32 %v979_v39, 16  ;;  %v1036_v44 = vshrl.u32 %v980_v40, 16  ;;  %v1039_v45 = vshll.u32 %v980_v40, 16  ;;  %v981_v62 = vld [vmem:[#allocation2 + $0xc] sm:$0xf]  ;;  %vm4255_vm10 = vmor %vm1018_vm8, %vm1019_vm9 }
  0x98   : > { %v2998_v47 = vcombine.low %v979_v39, %v980_v40  ;;  %v1051_v17 = vrot.slane %v1049_v56, 7  ;;  %v1022_v6 = vshrl.u32 %v978_v57, 16  ;;  %v1215_v10 = vrot.slane %v1052_v3, 5  ;;  %v986_v12 = vld [vmem:[#allocation2 + $0x20] sm:$0xf]  ;;  %v3833_v16 = vld [vmem:[%s4810_s1 + $0x138] sm:$0xff]   ;;  %vm4282_vm13 = vmor %vm1197_vm11, %vm1198_vm12 }
  0x99   : > { %3443 = vmatpush3.bf16.msra.mxu0 %v3813_v21  ;;  %v1029_v48 = vrot.slane %v1027_v42, 7  ;;  %v1038_v49 = vrot.slane %v1036_v44, 7  ;;  %v1200_v50 = vrot.slane %v1027_v42, 4  ;;  %v1201_v51 = vrot.slane %v1030_v43, 5  ;;  %v4267_v18 = vld [vmem:[#allocation2 + $0x24] sm:$0xf] }
  0x9a   : > { %3507 = vmatpush3.bf16.msra.mxu1 %v3814_v22  ;;  %3444 = vmatprep.subr.bf16.mxu0 %v3815_v23  ;;  %v1204_v53 = vrot.slane %v1039_v45, 5  ;;  %v1206_v54 = vrot.slane %v1036_v44, 4  ;;  %v1054_v8 = vor.u32 %v1052_v3, %v1051_v17  ;;  %v1056_v9 = vrot.slane %v1051_v17, 4  ;;  %v4275_v22 = vld [vmem:[#allocation2 + $0x28] sm:$0xf]  ;;  %v3835_v23 = vld [vmem:[%s4810_s1 + $0x170] sm:$0xff]  }
  0x9b   : > { %3508 = vmatprep.subr.bf16.mxu1 %v3816_v24  ;;  %2139 = vmatprep.mubr.bf16.mxu0 %v2998_v47  ;;  %v1032_v58 = vor.u32 %v1030_v43, %v1029_v48  ;;  %v1034_v59 = vrot.slane %v1029_v48, 4  ;;  %v1041_v11 = vor.u32 %v1039_v45, %v1038_v49  ;;  %v1202_v60 = vor.u32 %v1201_v51, %v1200_v50  ;;  %v3836_v42 = vld [vmem:[%s4810_s1 + $0x130] sm:$0xff]   ;;  %v3838_v44 = vld [vmem:[%s4810_s1 + $0x168] sm:$0xff]   ;;  %v4307_v50 = vld [vmem:[#allocation2 + $0x38] sm:$0xf] }
  0x9c   : > { %v1207_v0 = vor.u32 %v1206_v54, %v1204_v53  ;;  %v1060_v13 = vrot.slane %v1058_v5, 7  ;;  %v2980_v14 = vrot.slane %v1022_v6, 11  ;;  %v1055_v19 = vsel %vm4255_vm10, %v2981_v2, %v1054_v8  ;;  %v990_v43 = vld [vmem:[#allocation2 + $0x30] sm:$0xf]  ;;  %v4305_v49 = vld [vmem:[#allocation2 + $0x34] sm:$0xf] }
  0x9d   : > { %3445 = vmatpush3.bf16.msra.mxu0 %v3817_v25  ;;  %v1203_v4 = vrot.slane %v1202_v60, 4  ;;  %v1042_v15 = vsel %vm4255_vm10, %v1034_v59, %v1041_v11  ;;  %v1210_v20 = vshll.u32 %v981_v62, 16  ;;  %v4273_v21 = vcombine.low %v4245_v46, %v4247_v52  ;;  %v3839_v55 = vld [vmem:[%s4810_s1 + $0x1f8] sm:$0xff]   ;;  %v3840_v11 = vld [vmem:[%s4810_s1 + $0x128] sm:$0xff]   ;;  %v3843_v6 = vld [vmem:[%s4810_s1 + $0x160] sm:$0xff]  }
  0x9e   : > { %3509 = vmatpush3.bf16.msra.mxu1 %v3818_v26  ;;  %3446 = vmatprep.subr.bf16.mxu0 %v3819_v27  ;;  %v1208_v7 = vrot.slane %v1207_v0, 4  ;;  %v1063_v24 = vor.u32 %v1061_v61, %v1060_v13  ;;  %v1033_v25 = vsel %vm4255_vm10, %v2980_v14, %v1032_v58  ;;  %v1066_v27 = vshrl.u32 %v986_v12, 16  ;;  %v3841_v2 = vld [vmem:[%s4810_s1 + $0x1b8] sm:$0xff]  }
  0x9f   : > { %3510 = vmatprep.subr.bf16.mxu1 %v3820_v28  ;;  %v1071_v28 = vshrl.u32 %v4267_v18, 16  ;;  %v1083_v40 = vshll.u32 %v4275_v22, 16  ;;  %v1214_v41 = vrot.slane %v1049_v56, 4  ;;  %v1218_v52 = vrot.slane %v1061_v61, 5  ;;  %v989_v61 = vld [vmem:[#allocation2 + $0x2c] sm:$0xf] }
  0xa0   : > { %v4316_v58 = vcombine.low %v4267_v18, %v4275_v22  ;;  %v1088_v59 = vshrl.u32 %v990_v43, 16  ;;  %v1093_v0 = vshrl.u32 %v4305_v49, 16  ;;  %v1105_v13 = vshll.u32 %v4307_v50, 16 }
  0xa1   : > { %3447 = vmatpush3.bf16.msra.mxu0 %v3821_v29  ;;  %v985_v29 = vld [vmem:[#allocation2 + $0x1c] sm:$0xf]  ;;  %v1216_v51 = vor.u32 %v1215_v10, %v1214_v41  ;;  %v1228_v14 = vrot.slane %v1071_v28, 4 }
  0xa2   : > { %3511 = vmatpush3.bf16.msra.mxu1 %v3822_v30  ;;  %3448 = vmatprep.subr.bf16.mxu0 %v3823_v31  ;;  %v2990_v30 = vcombine.low %v1033_v25, %v1042_v15  ;;  %v1205_v31 = vsel %vm4282_vm13, %v1203_v4, %v1204_v53  ;;  %v1220_v53 = vrot.slane %v1058_v5, 4  ;;  %v1224_v54 = vshll.u32 %v985_v29, 16 }
  0xa3   : > { %3512 = vmatprep.subr.bf16.mxu1 %v3824_v32  ;;  %v1212_v32 = vrot.slane %v1210_v20, 5  ;;  %v1217_v60 = vrot.slane %v1216_v51, 4  ;;  %v2983_v3 = vrot.slane %v1088_v59, 11  ;;  %v1096_v4 = vshll.u32 %v4305_v49, 16 }
  0xa4   : > { %v1221_v62 = vor.u32 %v1220_v53, %v1218_v52  ;;  %v1102_v5 = vshrl.u32 %v4307_v50, 16  ;;  %v1095_v10 = vrot.slane %v1093_v0, 7  ;;  %v1232_v20 = vrot.slane %v1083_v40, 5 }
  0xa5   : > { %3449 = vmatpush3.bf16.msra.mxu0 %v3825_v33  ;;  %v1074_v33 = vshll.u32 %v4267_v18, 16  ;;  %v1213_v39 = vsel %vm4282_vm13, %v1208_v7, %v1212_v32  ;;  %v1219_v8 = vsel %vm4282_vm13, %v1217_v60, %v1218_v52  ;;  %v1242_v52 = vrot.slane %v1093_v0, 4 }
  0xa6   : > { %3513 = vmatpush3.bf16.msra.mxu1 %v3826_v34  ;;  %3450 = vmatprep.subr.bf16.mxu0 %v3827_v35  ;;  %v1064_v34 = vsel %vm4255_vm10, %v1056_v9, %v1063_v24  ;;  %v2982_v35 = vrot.slane %v1066_v27, 11  ;;  %v3006_v45 = vcombine.low %v1205_v31, %v1213_v39  ;;  %v1222_v9 = vrot.slane %v1221_v62, 4  ;;  %v4342_v24 = vld [vmem:[#allocation2 + $0x44] sm:$0xf]  ;;  %v3844_v31 = vld [vmem:[%s4810_s1 + $0x1f0] sm:$0xff]  }
  0xa7   : > { %3514 = vmatprep.subr.bf16.mxu1 %v3828_v36  ;;  %v1073_v36 = vrot.slane %v1071_v28, 7  ;;  %v1104_v12 = vrot.slane %v1102_v5, 7  ;;  %v1229_v15 = vrot.slane %v1074_v33, 5  ;;  %v1098_v18 = vor.u32 %v1096_v4, %v1095_v10  ;;  %v993_v39 = vld [vmem:[#allocation2 + $0x3c] sm:$0xf] }
  0xa8   : > { %v1118_v43 = vshll.u32 %v4342_v24, 16  ;;  %v1243_v53 = vrot.slane %v1096_v4, 5  ;;  %v1252_v0 = vshll.u32 %v993_v39, 16 }
  0xa9   : > { %3451 = vmatpush3.bf16.msra.mxu0 %v3829_v37  ;;  %v1080_v37 = vshrl.u32 %v4275_v22, 16  ;;  %v1076_v46 = vor.u32 %v1074_v33, %v1073_v36  ;;  %v1078_v47 = vrot.slane %v1073_v36, 4  ;;  %v1107_v27 = vor.u32 %v1105_v13, %v1104_v12  ;;  %v3849_v12 = vld [vmem:[%s4810_s1 + $0x1e8] sm:$0xff]  }
  0xaa   : > { %3515 = vmatpush3.bf16.msra.mxu1 %v3830_v38  ;;  %3564 = vmatprep.subr.bf16.mxu0 %v3832_v63  ;;  %v2991_v38 = vcombine.low %v1055_v19, %v1064_v34  ;;  %v1226_v63 = vrot.slane %v1224_v54, 5  ;;  %v1100_v19 = vrot.slane %v1095_v10, 4  ;;  %v1230_v29 = vor.u32 %v1229_v15, %v1228_v14 }
  0xab   : > { %v1082_v48 = vrot.slane %v1080_v37, 7  ;;  %v1077_v56 = vsel %vm4255_vm10, %v2982_v35, %v1076_v46  ;;  %3628 = vmatprep.subr.bf16.mxu1 %v3839_v55  ;;  %v1234_v28 = vrot.slane %v1080_v37, 4  ;;  %v1099_v32 = vsel %vm4255_vm10, %v2983_v3, %v1098_v18  ;;  %v997_v18 = vld [vmem:[#allocation2 + $0x4c] sm:$0xf] }
  0xac   : > { %2140 = vmatmul.mubr.bf16.vlgmr.msra.gmra.mxu0 %v2990_v30  ;;  %2236 = vmatprep.mubr.bf16.mxu1 %v2991_v38  ;;  %v4349_v30 = vld [vmem:[#allocation2 + $0x48] sm:$0xf]  ;;  %v1238_v33 = vshll.u32 %v989_v61, 16  ;;  %v4358_v34 = vcombine.low %v4305_v49, %v4307_v50  ;;  %v1108_v22 = vsel %vm4255_vm10, %v1100_v19, %v1107_v27  ;;  %v1231_v36 = vrot.slane %v1230_v29, 4  ;;  %v3846_v49 = vld [vmem:[%s4810_s1 + $0x1b0] sm:$0xff]   ;;  %v3848_v50 = vld [vmem:[%s4810_s1 + $0x158] sm:$0xff]  }
  0xad   : > { %3565 = vmatpush3.bf16.msra.mxu0 %v3833_v16  ;;  %2147 = vmatprep.mubr.bf16.mxu0 %v4273_v21  ;;  %v1085_v57 = vor.u32 %v1083_v40, %v1082_v48  ;;  %v1227_v16 = vsel %vm4282_vm13, %v1222_v9, %v1226_v63  ;;  %v1235_v37 = vor.u32 %v1234_v28, %v1232_v20  ;;  %v1124_v48 = vshrl.u32 %v4349_v30, 16  ;;  %v3850_v19 = vld [vmem:[%s4810_s1 + $0x118] sm:$0xff]  }
  0xae   : > { %3566 = vmatprep.subr.bf16.mxu0 %v3835_v23  ;;  %2237 = vmatmul.mubr.bf16.vlgmr.msra.gmra.mxu1 %v3006_v45  ;;  %v994_v23 = vld [vmem:[#allocation2 + $0x40] sm:$0xf]  ;;  %v4344_v25 = vcombine.low %v1219_v8, %v1227_v16  ;;  %v4364_v40 = vcombine.low %v1099_v32, %v1108_v22  ;;  %v1240_v41 = vrot.slane %v1238_v33, 5  ;;  %v1233_v45 = vsel %vm4282_vm13, %v1231_v36, %v1232_v20 }
  0xaf   : > { %v1086_v17 = vsel %vm4255_vm10, %v1078_v47, %v1085_v57  ;;  %3629 = vmatpush3.bf16.msra.mxu1 %v3841_v2  ;;  %v1110_v35 = vshrl.u32 %v994_v23, 16  ;;  %v1236_v46 = vrot.slane %v1235_v37, 4  ;;  %v1127_v51 = vshll.u32 %v4349_v30, 16  ;;  %v4385_v2 = vld [vmem:[#allocation2 + $0x54] sm:$0xf] }
  0xb0   : > { %v4332_v7 = vcombine.low %v1077_v56, %v1086_v17  ;;  %3630 = vmatprep.subr.bf16.mxu1 %v3844_v31  ;;  %v1246_v54 = vrot.slane %v1105_v13, 5  ;;  %v1126_v59 = vrot.slane %v1124_v48, 7  ;;  %v1244_v62 = vor.u32 %v1243_v53, %v1242_v52  ;;  %v4387_v17 = vld [vmem:[#allocation2 + $0x58] sm:$0xf] }
  0xb1   : > { %3567 = vmatpush3.bf16.msra.mxu0 %v3836_v42  ;;  %v2984_v42 = vrot.slane %v1110_v35, 11  ;;  %v1241_v55 = vsel %vm4282_vm13, %v1236_v46, %v1240_v41  ;;  %v1248_v63 = vrot.slane %v1102_v5, 4  ;;  %v4394_v61 = vcombine.low %v4342_v24, %v4349_v30 }
  0xb2   : > { %3568 = vmatprep.subr.bf16.mxu0 %v3838_v44  ;;  %2244 = vmatprep.mubr.bf16.mxu1 %v4332_v7  ;;  %v3845_v44 = vld [vmem:[%s4810_s1 + $0x120] sm:$0xff]   ;;  %v4381_v60 = vcombine.low %v1233_v45, %v1241_v55  ;;  %v1129_v4 = vor.u32 %v1127_v51, %v1126_v59  ;;  %v1245_v5 = vrot.slane %v1244_v62, 4  ;;  %v1254_v9 = vrot.slane %v1252_v0, 5 }
  0xb3   : > { %3631 = vmatpush3.bf16.msra.mxu1 %v3846_v49  ;;  %v1249_v8 = vor.u32 %v1248_v63, %v1246_v54  ;;  %v1137_v10 = vshrl.u32 %v4385_v2, 16  ;;  %v1140_v15 = vshll.u32 %v4385_v2, 16  ;;  %v1146_v16 = vshrl.u32 %v4387_v17, 16 }
  0xb4   : > { %2148 = vmatmul.mubr.bf16.gmra.mxu0 %v2991_v38  ;;  %v1115_v38 = vshrl.u32 %v4342_v24, 16  ;;  %v1247_v23 = vsel %vm4282_vm13, %v1245_v5, %v1246_v54  ;;  %3632 = vmatprep.subr.bf16.mxu1 %v3849_v12  ;;  %v1149_v28 = vshll.u32 %v4387_v17, 16  ;;  %v1257_v31 = vrot.slane %v1118_v43, 5  ;;  %v1001_v54 = vld [vmem:[#allocation2 + $0x5c] sm:$0xf] }
  0xb5   : > { %2155 = vmatprep.mubr.bf16.mxu0 %v4316_v58  ;;  %3569 = vmatpush3.bf16.msra.mxu0 %v3840_v11  ;;  %v998_v11 = vld [vmem:[#allocation2 + $0x50] sm:$0xf]  ;;  %v1250_v24 = vrot.slane %v1249_v8, 4  ;;  %v1139_v27 = vrot.slane %v1137_v10, 7  ;;  %v1148_v29 = vrot.slane %v1146_v16, 7  ;;  %v1260_v22 = vrot.slane %v1127_v51, 5 }
  0xb6   : > { %3570 = vmatprep.subr.bf16.mxu0 %v3843_v6  ;;  %2245 = vmatmul.mubr.bf16.gmra.mxu1 %v4344_v25  ;;  %v1117_v47 = vrot.slane %v1115_v38, 7  ;;  %v1132_v6 = vshrl.u32 %v998_v11, 16  ;;  %v1256_v30 = vrot.slane %v1115_v38, 4  ;;  %v1262_v41 = vrot.slane %v1124_v48, 4  ;;  %v1002_v38 = vld [vmem:[#allocation2 + $0x60] sm:$0xf] }
  0xb7   : > { %2252 = vmatprep.mubr.bf16.mxu1 %v4364_v40  ;;  %v1255_v32 = vsel %vm4282_vm13, %v1250_v24, %v1254_v9  ;;  %v1142_v33 = vor.u32 %v1140_v15, %v1139_v27  ;;  %v1144_v35 = vrot.slane %v1139_v27, 4  ;;  %v1151_v37 = vor.u32 %v1149_v28, %v1148_v29  ;;  %v3853_v11 = vld [vmem:[%s4810_s1 + $0x150] sm:$0xff]  }
  0xb8   : > { %v1120_v56 = vor.u32 %v1118_v43, %v1117_v47  ;;  %v1122_v57 = vrot.slane %v1117_v47, 4  ;;  %v2985_v14 = vrot.slane %v1132_v6, 11  ;;  %v4421_v36 = vcombine.low %v1247_v23, %v1255_v32  ;;  %v4426_v43 = vld [vmem:[#allocation2 + $0x64] sm:$0xf]  ;;  %v4435_v47 = vld [vmem:[#allocation2 + $0x68] sm:$0xf] }
  0xb9   : > { %3571 = vmatpush3.bf16.msra.mxu0 %v3845_v44  ;;  %v1258_v39 = vor.u32 %v1257_v31, %v1256_v30  ;;  %v1266_v45 = vshll.u32 %v997_v18, 16  ;;  %v4433_v46 = vcombine.low %v4385_v2, %v4387_v17  ;;  %v1154_v48 = vshrl.u32 %v1002_v38, 16  ;;  %v3856_v18 = vld [vmem:[%s4810_s1 + $0x1a0] sm:$0xff]   ;;  %v1006_v29 = vld [vmem:[#allocation2 + $0x70] sm:$0xf] }
  0xba   : > { %v1121_v3 = vsel %vm4255_vm10, %v2984_v42, %v1120_v56  ;;  %v1130_v13 = vsel %vm4255_vm10, %v1122_v57, %v1129_v4  ;;  %3572 = vmatprep.subr.bf16.mxu0 %v3848_v50  ;;  %v3851_v42 = vld [vmem:[%s4810_s1 + $0x1a8] sm:$0xff]   ;;  %v1143_v44 = vsel %vm4255_vm10, %v2985_v14, %v1142_v33  ;;  %v1152_v49 = vsel %vm4255_vm10, %v1144_v35, %v1151_v37  ;;  %v3855_v14 = vld [vmem:[%s4810_s1 + $0x110] sm:$0xff]   ;;  %v4472_v30 = vld [vmem:[#allocation2 + $0x78] sm:$0xf] }
  0xbb   : > { %v4411_v20 = vcombine.low %v1121_v3, %v1130_v13  ;;  %v1259_v51 = vrot.slane %v1258_v39, 4  ;;  %v1263_v52 = vor.u32 %v1262_v41, %v1260_v22  ;;  %3633 = vmatpush3.bf16.msra.mxu1 %v3851_v42  ;;  %v1159_v53 = vshrl.u32 %v4426_v43, 16  ;;  %v3854_v3 = vld [vmem:[%s4810_s1 + $0x1e0] sm:$0xff]   ;;  %v3858_v33 = vld [vmem:[%s4810_s1 + $0x148] sm:$0xff]   ;;  %v3859_v42 = vld [vmem:[%s4810_s1 + $0x1d8] sm:$0xff]  }
  0xbc   : > { %2156 = vmatmul.mubr.bf16.gmra.mxu0 %v4332_v7  ;;  %v4441_v55 = vcombine.low %v1143_v44, %v1152_v49  ;;  %v1268_v56 = vrot.slane %v1266_v45, 5  ;;  %v2986_v57 = vrot.slane %v1154_v48, 11  ;;  %v1162_v59 = vshll.u32 %v4426_v43, 16  ;;  %3634 = vmatprep.subr.bf16.mxu1 %v3854_v3  ;;  %v1005_v41 = vld [vmem:[#allocation2 + $0x6c] sm:$0xf] }
  0xbd   : > { %2163 = vmatprep.mubr.bf16.mxu0 %v4358_v34  ;;  %3573 = vmatpush3.bf16.msra.mxu0 %v3850_v19  ;;  %v1261_v62 = vsel %vm4282_vm13, %v1259_v51, %v1260_v22  ;;  %v1264_v63 = vrot.slane %v1263_v52, 4  ;;  %v1161_v0 = vrot.slane %v1159_v53, 7  ;;  %v1168_v2 = vshrl.u32 %v4435_v47, 16 }
  0xbe   : > { %2253 = vmatmul.mubr.bf16.gmra.mxu1 %v4381_v60  ;;  %v1171_v4 = vshll.u32 %v4435_v47, 16  ;;  %v1270_v6 = vrot.slane %v1137_v10, 4  ;;  %v1271_v50 = vrot.slane %v1140_v15, 5  ;;  %v1274_v5 = vrot.slane %v1149_v28, 5  ;;  %3574 = vmatprep.subr.bf16.mxu0 %v3853_v11  ;;  %v4470_v28 = vld [vmem:[#allocation2 + $0x74] sm:$0xf] }
  0xbf   : > { %2260 = vmatprep.mubr.bf16.mxu1 %v4411_v20  ;;  %v1269_v8 = vsel %vm4282_vm13, %v1264_v63, %v1268_v56  ;;  %v1164_v9 = vor.u32 %v1162_v59, %v1161_v0  ;;  %v1166_v12 = vrot.slane %v1161_v0, 4  ;;  %v1170_v13 = vrot.slane %v1168_v2, 7  ;;  %3635 = vmatpush3.bf16.msra.mxu1 %v3856_v18  ;;  %v3860_v63 = vld [vmem:[%s4810_s1 + $0x108] sm:$0xff]   ;;  %v3863_v18 = vld [vmem:[%s4810_s1 + $0x190] sm:$0xff]  }
  0xc0   : > { %v1272_v19 = vor.u32 %v1271_v50, %v1270_v6  ;;  %v1276_v10 = vrot.slane %v1146_v16, 4  ;;  %v1280_v15 = vshll.u32 %v1001_v54, 16  ;;  %v4466_v23 = vcombine.low %v1261_v62, %v1269_v8  ;;  %3636 = vmatprep.subr.bf16.mxu1 %v3859_v42  ;;  %v3861_v50 = vld [vmem:[%s4810_s1 + $0x198] sm:$0xff]  }
  0xc1   : > { %v1165_v24 = vsel %vm4255_vm10, %v2986_v57, %v1164_v9  ;;  %v1173_v27 = vor.u32 %v1171_v4, %v1170_v13  ;;  %3575 = vmatpush3.bf16.msra.mxu0 %v3855_v14  ;;  %v1176_v16 = vshrl.u32 %v1006_v29, 16  ;;  %v1181_v22 = vshrl.u32 %v4470_v28, 16 }
  0xc2   : > { %v1273_v31 = vrot.slane %v1272_v19, 4  ;;  %v1277_v32 = vor.u32 %v1276_v10, %v1274_v5  ;;  %v1282_v17 = vrot.slane %v1280_v15, 5  ;;  %v1184_v37 = vshll.u32 %v4470_v28, 16  ;;  %3576 = vmatprep.subr.bf16.mxu0 %v3858_v33  ;;  %v1010_v19 = vld [vmem:[#allocation2 + $0x80] sm:$0xf] }
  0xc3   : > { %v1174_v35 = vsel %vm4255_vm10, %v1166_v12, %v1173_v27  ;;  %v1190_v39 = vshrl.u32 %v4472_v30, 16  ;;  %v2987_v48 = vrot.slane %v1176_v16, 11  ;;  %v1183_v49 = vrot.slane %v1181_v22, 7  ;;  %3637 = vmatpush3.bf16.msra.mxu1 %v3861_v50  ;;  %v4522_v10 = vld [vmem:[#allocation2 + $0x84] sm:$0xf] }
  0xc4   : > { %2164 = vmatmul.mubr.bf16.gmra.mxu0 %v4364_v40  ;;  %v4487_v38 = vcombine.low %v1165_v24, %v1174_v35  ;;  %v1275_v44 = vsel %vm4282_vm13, %v1273_v31, %v1274_v5  ;;  %v1278_v45 = vrot.slane %v1277_v32, 4  ;;  %v1193_v52 = vshll.u32 %v4472_v30, 16  ;;  %v4524_v15 = vld [vmem:[#allocation2 + $0x88] sm:$0xf] }
  0xc5   : > { %2171 = vmatprep.mubr.bf16.mxu0 %v4394_v61  ;;  %v1192_v51 = vrot.slane %v1190_v39, 7  ;;  %v1284_v54 = vrot.slane %v1159_v53, 4  ;;  %v1285_v57 = vrot.slane %v1162_v59, 5  ;;  %v1288_v11 = vrot.slane %v1171_v4, 5  ;;  %3577 = vmatpush3.bf16.msra.mxu0 %v3860_v63 }
  0xc6   : > { %2261 = vmatmul.mubr.bf16.gmra.mxu1 %v4421_v36  ;;  %v1283_v56 = vsel %vm4282_vm13, %v1278_v45, %v1282_v17  ;;  %v1290_v62 = vrot.slane %v1168_v2, 4  ;;  %v4501_v0 = vcombine.low %v4426_v43, %v4435_v47  ;;  %v1186_v3 = vor.u32 %v1184_v37, %v1183_v49  ;;  %v3862_v2 = vld [vmem:[%s4810_s1 + $0x1d0] sm:$0xff]   ;;  %v1009_v17 = vld [vmem:[#allocation2 + $0x7c] sm:$0xf] }
  0xc7   : > { %2268 = vmatprep.mubr.bf16.mxu1 %v4441_v55  ;;  %v1188_v6 = vrot.slane %v1183_v49, 4  ;;  %v1195_v53 = vor.u32 %v1193_v52, %v1192_v51  ;;  %v1286_v5 = vor.u32 %v1285_v57, %v1284_v54  ;;  %v1294_v59 = vshll.u32 %v1005_v41, 16  ;;  %3638 = vmatprep.subr.bf16.mxu1 %v3862_v2  ;;  %v3867_v57 = vld [vmem:[%s4810_s1 + $0x100] sm:$0xff]   ;;  %v3871_v2 = vld [vmem:[%s4810_s1 + $0x238] sm:$0xff]  }
  0xc8   : > { %v1291_v8 = vor.u32 %v1290_v62, %v1288_v11  ;;  %v4509_v4 = vcombine.low %v1275_v44, %v1283_v56  ;;  %v1187_v43 = vsel %vm4255_vm10, %v2987_v48, %v1186_v3  ;;  %v1313_v24 = vshrl.u32 %v1010_v19, 16  ;;  %3639 = vmatpush3.bf16.msra.mxu1 %v3863_v18  ;;  %v3866_v56 = vld [vmem:[%s4810_s1 + $0x1c8] sm:$0xff]   ;;  %v3869_v3 = vld [vmem:[%s4810_s1 + $0x1c0] sm:$0xff]  }
  0xc9   : > { %v1196_v47 = vsel %vm4255_vm10, %v1188_v6, %v1195_v53  ;;  %v1287_v12 = vrot.slane %v1286_v5, 4  ;;  %v1296_v14 = vrot.slane %v1294_v59, 5  ;;  %v1298_v27 = vrot.slane %v1181_v22, 4  ;;  %v3865_v22 = vld [vmem:[%s4810_s1 + $0x140] sm:$0xff]   ;;  %3640 = vmatprep.subr.bf16.mxu1 %v3866_v56  ;;  %v1013_v19 = vld [vmem:[#allocation2 + $0x8c] sm:$0xf] }
  0xca   : > { %v4516_v9 = vcombine.low %v1187_v43, %v1196_v47  ;;  %v1292_v13 = vrot.slane %v1291_v8, 4  ;;  %v1318_v31 = vshrl.u32 %v4522_v10, 16  ;;  %v1321_v32 = vshll.u32 %v4522_v10, 16  ;;  %3578 = vmatprep.subr.bf16.mxu0 %v3865_v22  ;;  %v3870_v8 = vld [vmem:[%s4810_s1 + $0x180] sm:$0xff]  }
  0xcb   : > { %v1289_v29 = vsel %vm4282_vm13, %v1287_v12, %v1288_v11  ;;  %v2988_v33 = vrot.slane %v1313_v24, 11  ;;  %v1327_v35 = vshrl.u32 %v4524_v15, 16  ;;  %v1330_v41 = vshll.u32 %v4524_v15, 16  ;;  %3579 = vmatpush3.bf16.msra.mxu0 %v3867_v57 }
  0xcc   : > { %2172 = vmatmul.mubr.bf16.gmra.mxu0 %v4411_v20  ;;  %v1297_v16 = vsel %vm4282_vm13, %v1292_v13, %v1296_v14  ;;  %v1320_v42 = vrot.slane %v1318_v31, 7  ;;  %v1299_v44 = vrot.slane %v1184_v37, 5  ;;  %v1302_v45 = vrot.slane %v1193_v52, 5  ;;  %3708 = vmatprep.subr.bf16.mxu0 %v3871_v2  ;;  %v3872_v13 = vld [vmem:[%s4810_s1 + $0x230] sm:$0xff]   ;;  %v3873_v14 = vld [vmem:[%s4810_s1 + $0x228] sm:$0xff]  }
  0xcd   : > { %2179 = vmatprep.mubr.bf16.mxu0 %v4433_v46  ;;  %v1304_v48 = vrot.slane %v1190_v39, 4  ;;  %v4543_v49 = vcombine.low %v4470_v28, %v4472_v30  ;;  %v1329_v51 = vrot.slane %v1327_v35, 7  ;;  %v1308_v54 = vshll.u32 %v1009_v17, 16  ;;  %v3868_v30 = vld [vmem:[%s4810_s1 + $0x188] sm:$0xff]  }
  0xce   : > { %2269 = vmatmul.mubr.bf16.gmra.mxu1 %v4466_v23  ;;  %v1323_v37 = vor.u32 %v1321_v32, %v1320_v42  ;;  %v1325_v39 = vrot.slane %v1320_v42, 4  ;;  %v1300_v52 = vor.u32 %v1299_v44, %v1298_v27  ;;  %v4558_v11 = vcombine.low %v1289_v29, %v1297_v16  ;;  %v1015_v29 = vld [vmem:[#allocation2 + $0x94] sm:$0xf] }
  0xcf   : > { %2276 = vmatprep.mubr.bf16.mxu1 %v4487_v38  ;;  %v1305_v28 = vor.u32 %v1304_v48, %v1302_v45  ;;  %v1332_v62 = vor.u32 %v1330_v41, %v1329_v51  ;;  %v1310_v63 = vrot.slane %v1308_v54, 5  ;;  %3641 = vmatpush3.bf16.msra.mxu1 %v3868_v30  ;;  %v1340_v18 = vrot.slane %v1327_v35, 4 }
  0xd0   : > { %v1324_v6 = vsel %vm4255_vm10, %v2988_v33, %v1323_v37  ;;  %v1301_v53 = vrot.slane %v1300_v52, 4  ;;  %3642 = vmatprep.subr.bf16.mxu1 %v3869_v3  ;;  %v1344_v27 = vshll.u32 %v1013_v19, 16  ;;  %v1354_v33 = vshrl.u32 %v1015_v29, 16 }
  0xd1   : > { %v1306_v50 = vrot.slane %v1305_v28, 4  ;;  %v1333_v5 = vsel %vm4255_vm10, %v1325_v39, %v1332_v62  ;;  %v1357_v42 = vshll.u32 %v1015_v29, 16  ;;  %v1017_v62 = vld [vmem:[#allocation2 + $0x9c] sm:$0xf] }
  0xd2   : > { %v4574_v59 = vcombine.low %v1324_v6, %v1333_v5  ;;  %v1303_v43 = vsel %vm4282_vm13, %v1301_v53, %v1302_v45  ;;  %v1346_v16 = vrot.slane %v1344_v27, 5  ;;  %v1356_v44 = vrot.slane %v1354_v33, 7 }
  0xd3   : > { %v1311_v47 = vsel %vm4282_vm13, %v1306_v50, %v1310_v63  ;;  %3643 = vmatpush3.bf16.msra.mxu1 %v3870_v8  ;;  %v1370_v52 = vrot.slane %v1354_v33, 4  ;;  %v1371_v28 = vrot.slane %v1357_v42, 5  ;;  %v1380_v6 = vshll.u32 %v1017_v62, 16 }
  0xd4   : > { %2180 = vmatmul.mubr.bf16.gmra.mxu0 %v4441_v55  ;;  %3740 = vmatprep.subr.bf16.mxu1 %v3871_v2  ;;  %v4585_v12 = vcombine.low %v1303_v43, %v1311_v47  ;;  %v1359_v54 = vor.u32 %v1357_v42, %v1356_v44  ;;  %v1361_v56 = vrot.slane %v1356_v44, 4 }
  0xd5   : > { %2187 = vmatprep.mubr.bf16.mxu0 %v4501_v0  ;;  %v1372_v63 = vor.u32 %v1371_v28, %v1370_v52  ;;  %v1382_v50 = vrot.slane %v1380_v6, 5 }
  0xd6   : > { %2277 = vmatmul.mubr.bf16.gmra.mxu1 %v4509_v4 }
  0xd7   : > { %2284 = vmatprep.mubr.bf16.mxu1 %v4516_v9  ;;  %v1373_v53 = vrot.slane %v1372_v63, 4 }
  0xdc   : > { %2188 = vmatmul.mubr.bf16.gmra.mxu0 %v4487_v38 }
  0xdd   : > { %2195 = vmatprep.mubr.bf16.mxu0 %v4543_v49 }
  0xde   : > { %2285 = vmatmul.mubr.bf16.gmra.mxu1 %v4558_v11 }
  0xdf   : > { %2292 = vmatprep.mubr.bf16.mxu1 %v4574_v59 }
  0xe4   : > { %2196 = vmatmul.mubr.bf16.gmra.mxu0 %v4516_v9 }
  0xe5   : > { %2333 = vmatprep.mubr.bf16.mxu0 %v4344_v25  ;;  %v3878_v25 = vld [vmem:[%s4810_s1 + $0x208] sm:$0xff]  }
  0xe6   : > { %2293 = vmatmul.mubr.bf16.gmra.mxu1 %v4585_v12 }
  0xe7   : > { %2430 = vmatprep.mubr.bf16.mxu1 %v4316_v58 }
  0xec   : > { %2334 = vmatmul.mubr.bf16.vlgmr.msra.gmra.mxu0 %v4273_v21  ;;  %v3874_v21 = vld [vmem:[%s4810_s1 + $0x220] sm:$0xff]  }
  0xed   : > { %3709 = vmatpush3.bf16.msra.mxu0 %v3871_v2  ;;  %2341 = vmatprep.mubr.bf16.mxu0 %v4381_v60 }
  0xee   : > { %3710 = vmatprep.subr.bf16.mxu0 %v3872_v13  ;;  %2431 = vmatmul.mubr.bf16.vlgmr.msra.gmra.mxu1 %v4332_v7  ;;  %v3875_v7 = vld [vmem:[%s4810_s1 + $0x218] sm:$0xff]  }
  0xef   : > { %2438 = vmatprep.mubr.bf16.mxu1 %v4358_v34  ;;  %3748 = vmatpush3.bf16.msra.mxu1 %v3871_v2 }
  0xf0   : > { %3741 = vmatprep.subr.bf16.mxu1 %v3872_v13 }
  0xf1   : > { %3711 = vmatpush3.bf16.msra.mxu0 %v3872_v13 }
  0xf2   : > { %3712 = vmatprep.subr.bf16.mxu0 %v3873_v14 }
  0xf3   : > { %3749 = vmatpush3.bf16.msra.mxu1 %v3872_v13 }
  0xf4   : > { %2342 = vmatmul.mubr.bf16.gmra.mxu0 %v4316_v58  ;;  %3742 = vmatprep.subr.bf16.mxu1 %v3873_v14  ;;  %v3876_v58 = vld [vmem:[%s4810_s1 + $0x210] sm:$0xff]  }
  0xf5   : > { %2349 = vmatprep.mubr.bf16.mxu0 %v4421_v36  ;;  %3713 = vmatpush3.bf16.msra.mxu0 %v3873_v14 }
  0xf6   : > { %3714 = vmatprep.subr.bf16.mxu0 %v3874_v21  ;;  %2439 = vmatmul.mubr.bf16.gmra.mxu1 %v4364_v40  ;;  %v1334_v40 = vrot.slane %v1318_v31, 4  ;;  %v1016_v31 = vld [vmem:[#allocation2 + $0x98] sm:$0xf] }
  0xf7   : > { %2446 = vmatprep.mubr.bf16.mxu1 %v4394_v61  ;;  %3750 = vmatpush3.bf16.msra.mxu1 %v3873_v14  ;;  %v1363_v35 = vshrl.u32 %v1016_v31, 16  ;;  %v1366_v45 = vshll.u32 %v1016_v31, 16 }
  0xf8   : > { %3743 = vmatprep.subr.bf16.mxu1 %v3874_v21 }
  0xf9   : > { %3715 = vmatpush3.bf16.msra.mxu0 %v3874_v21  ;;  %v1376_v30 = vrot.slane %v1363_v35, 4 }
  0xfa   : > { %3716 = vmatprep.subr.bf16.mxu0 %v3875_v7 }
  0xfb   : > { %3751 = vmatpush3.bf16.msra.mxu1 %v3874_v21 }
  0xfc   : > { %2350 = vmatmul.mubr.bf16.gmra.mxu0 %v4358_v34  ;;  %3744 = vmatprep.subr.bf16.mxu1 %v3875_v7  ;;  %v3880_v34 = vld [vmem:[%s4810_s1 + $0x200] sm:$0xff]  }
  0xfd   : > { %2357 = vmatprep.mubr.bf16.mxu0 %v4466_v23  ;;  %3717 = vmatpush3.bf16.msra.mxu0 %v3875_v7 }
  0xfe   : > { %3718 = vmatprep.subr.bf16.mxu0 %v3876_v58  ;;  %2447 = vmatmul.mubr.bf16.gmra.mxu1 %v4411_v20  ;;  %v1335_v20 = vrot.slane %v1321_v32, 5 }
  0xff   : > { %2454 = vmatprep.mubr.bf16.mxu1 %v4433_v46  ;;  %3752 = vmatpush3.bf16.msra.mxu1 %v3875_v7 }
 0x100   : > { %3745 = vmatprep.subr.bf16.mxu1 %v3876_v58 }
 0x101   : > { %3719 = vmatpush3.bf16.msra.mxu0 %v3876_v58 }
 0x102   : > { %3720 = vmatprep.subr.bf16.mxu0 %v3878_v25 }
 0x103   : > { %3753 = vmatpush3.bf16.msra.mxu1 %v3876_v58 }
 0x104   : > { %2358 = vmatmul.mubr.bf16.gmra.mxu0 %v4394_v61  ;;  %3746 = vmatprep.subr.bf16.mxu1 %v3878_v25  ;;  %v1338_v61 = vrot.slane %v1330_v41, 5  ;;  %v1014_v41 = vld [vmem:[#allocation2 + $0x90] sm:$0xf] }
 0x105   : > { %2365 = vmatprep.mubr.bf16.mxu0 %v4509_v4  ;;  %3721 = vmatpush3.bf16.msra.mxu0 %v3878_v25  ;;  %v1349_v48 = vshrl.u32 %v1014_v41, 16 }
 0x106   : > { %3722 = vmatprep.subr.bf16.mxu0 %v3880_v34  ;;  %2455 = vmatmul.mubr.bf16.gmra.mxu1 %v4441_v55  ;;  %v1336_v55 = vor.u32 %v1335_v20, %v1334_v40  ;;  %v1341_v24 = vor.u32 %v1340_v18, %v1338_v61 }
 0x107   : > { %2462 = vmatprep.mubr.bf16.mxu1 %v4501_v0  ;;  %3754 = vmatpush3.bf16.msra.mxu1 %v3878_v25  ;;  %v2989_v51 = vrot.slane %v1349_v48, 11 }
 0x108   : > { %3747 = vmatprep.subr.bf16.mxu1 %v3880_v34  ;;  %v1337_v32 = vrot.slane %v1336_v55, 4  ;;  %v1342_v17 = vrot.slane %v1341_v24, 4 }
 0x109   : > { %3723 = vmatpush3.bf16.msra.mxu0 %v3880_v34 }
 0x10a   : > { %v1347_v22 = vsel %vm4282_vm13, %v1342_v17, %v1346_v16 }
 0x10b   : > { %3755 = vmatpush3.bf16.msra.mxu1 %v3880_v34 }
 0x10c   : > { %2366 = vmatmul.mubr.bf16.gmra.mxu0 %v4433_v46  ;;  %v3015_v46 = vcombine.low %v4522_v10, %v4524_v15  ;;  %v3018_v15 = vcombine.low %v1015_v29, %v1016_v31 }
 0x10d   : > { %2373 = vmatprep.mubr.bf16.mxu0 %v4558_v11 }
 0x10e   : > { %2463 = vmatmul.mubr.bf16.gmra.mxu1 %v4487_v38  ;;  %v1339_v38 = vsel %vm4282_vm13, %v1337_v32, %v1338_v61 }
 0x10f   : > { %2470 = vmatprep.mubr.bf16.mxu1 %v4543_v49  ;;  %v3016_v10 = vcombine.low %v1339_v38, %v1347_v22 }
 0x114   : > { %2374 = vmatmul.mubr.bf16.gmra.mxu0 %v4501_v0  ;;  %v1365_v0 = vrot.slane %v1363_v35, 7 }
 0x115   : > { %2381 = vmatprep.mubr.bf16.mxu0 %v4585_v12 }
 0x116   : > { %2471 = vmatmul.mubr.bf16.gmra.mxu1 %v4516_v9  ;;  %v1368_v57 = vor.u32 %v1366_v45, %v1365_v0  ;;  %v1360_v9 = vsel %vm4255_vm10, %v2989_v51, %v1359_v54 }
 0x117   : > { %2478 = vmatprep.mubr.bf16.mxu1 %v3015_v46 }
 0x118   : > { %v1369_v37 = vsel %vm4255_vm10, %v1361_v56, %v1368_v57 }
 0x119   : > { %v3017_v39 = vcombine.low %v1360_v9, %v1369_v37 }
 0x11c   : > { %2382 = vmatmul.mubr.bf16.gmra.mxu0 %v4543_v49  ;;  %v1374_v49 = vrot.slane %v1366_v45, 5 }
 0x11d   : > { %2389 = vmatprep.mubr.bf16.mxu0 %v3016_v10 }
 0x11e   : > { %2479 = vmatmul.mubr.bf16.gmra.mxu1 %v4574_v59  ;;  %v1377_v3 = vor.u32 %v1376_v30, %v1374_v49 }
 0x11f   : > { %2486 = vmatprep.mubr.bf16.mxu1 %v3018_v15 }
 0x120   : > { %v1378_v1 = vrot.slane %v1377_v3, 4 }
 0x122   : > { %v1383_v5 = vsel %vm4282_vm13, %v1378_v1, %v1382_v50 }
 0x124   : > { %2390 = vmatmul.mubr.bf16.gmra.mxu0 %v3015_v46 }
 0x125   : > { %3724 = vmatprep.mubr.bf16.mxu0 %v4381_v60  ;;  %v1375_v60 = vsel %vm4282_vm13, %v1373_v53, %v1374_v49 }
 0x126   : > { %2487 = vmatmul.mubr.bf16.gmra.mxu1 %v3017_v39 }
 0x127   : > { %3732 = vmatprep.mubr.bf16.mxu1 %v4558_v11  ;;  %v3019_v11 = vcombine.low %v1375_v60, %v1383_v5 }
 0x12c   : > { %3725 = vmatmul.mubr.bf16.vlgmr.msra.gmra.mxu0 %v4421_v36  ;;  %v4668_v36 = vld [vmem:[%s4811_s2] ss:$0 sm:$0xff] }
 0x12d   : > { %3728 = vmatprep.mubr.bf16.mxu0 %v4466_v23 }
 0x12e   : > { %3733 = vmatmul.mubr.bf16.vlgmr.msra.gmra.mxu1 %v4585_v12 }
 0x12f   : > { %3736 = vmatprep.mubr.bf16.mxu1 %v3016_v10 }
 0x134   : > { %3729 = vmatmul.mubr.bf16.gmra.mxu0 %v4509_v4 }
 0x136   : > { %3737 = vmatmul.mubr.bf16.gmra.mxu1 %v3019_v11 }
 0x16c   : > { %v3452_v8 = vpop.f32.mrf.mxu0 }
 0x16e   : > { %v3453_v23 = vpop.f32.mrf.mxu0  ;;  %v3516_v59 = vpop.f32.mrf.mxu1 }
 0x16f   : > { %v3454_v2 = vadd.f32 %v3453_v23, %v3452_v8 }
 0x170   : > { %v3455_v43 = vpop.f32.mrf.mxu0  ;;  %v3517_v12 = vpop.f32.mrf.mxu1 }
 0x171   : > { %v2142_v47 = vadd.f32 %v3454_v2, %v4668_v36  ;;  %v3518_v13 = vadd.f32 %v3517_v12, %v3516_v59 }
 0x172   : > { %v3456_v26 = vpop.f32.mrf.mxu0  ;;  %v3519_v14 = vpop.f32.mrf.mxu1 }
 0x173   : > { %v3457_v21 = vadd.f32 %v3456_v26, %v3455_v43  ;;  %v4671_v7 = vadd.f32 %v3518_v13, %v2142_v47 }
 0x174   : > { %v3458_v4 = vpop.f32.mrf.mxu0  ;;  %v3520_v25 = vpop.f32.mrf.mxu1 }
 0x175   : > { %v2145_v58 = vadd.f32 %v3457_v21, %v4668_v36  ;;  %v3521_v34 = vadd.f32 %v3520_v25, %v3519_v14 }
 0x176   : > { %v3459_v40 = vpop.f32.mrf.mxu0  ;;  %v3522_v20 = vpop.f32.mrf.mxu1 }
 0x177   : > { %v3460_v61 = vadd.f32 %v3459_v40, %v3458_v4  ;;  %v4674_v18 = vadd.f32 %v3521_v34, %v2145_v58 }
 0x178   : > { %v3461_v19 = vpop.f32.mrf.mxu0  ;;  %v3523_v24 = vpop.f32.mrf.mxu1 }
 0x179   : > { %v2150_v55 = vadd.f32 %v3460_v61, %v4668_v36  ;;  %v3524_v27 = vadd.f32 %v3523_v24, %v3522_v20 }
 0x17a   : > { %v3462_v29 = vpop.f32.mrf.mxu0  ;;  %v3525_v31 = vpop.f32.mrf.mxu1 }
 0x17b   : > { %v3463_v32 = vadd.f32 %v3462_v29, %v3461_v19  ;;  %v4677_v17 = vadd.f32 %v3524_v27, %v2150_v55 }
 0x17c   : > { %v3464_v16 = vpop.f32.mrf.mxu0  ;;  %v3526_v33 = vpop.f32.mrf.mxu1 }
 0x17d   : > { %v2153_v46 = vadd.f32 %v3463_v32, %v4668_v36  ;;  %v3527_v35 = vadd.f32 %v3526_v33, %v3525_v31 }
 0x17e   : > { %v3465_v41 = vpop.f32.mrf.mxu0  ;;  %v3528_v38 = vpop.f32.mrf.mxu1 }
 0x17f   : > { %v3466_v22 = vadd.f32 %v3465_v41, %v3464_v16  ;;  %v4680_v42 = vadd.f32 %v3527_v35, %v2153_v46 }
 0x180   : > { %v3467_v44 = vpop.f32.mrf.mxu0  ;;  %v3529_v45 = vpop.f32.mrf.mxu1 }
 0x181   : > { %v2158_v0 = vadd.f32 %v3466_v22, %v4668_v36  ;;  %v3530_v48 = vadd.f32 %v3529_v45, %v3528_v38 }
 0x182   : > { %v3468_v10 = vpop.f32.mrf.mxu0  ;;  %v3531_v15 = vpop.f32.mrf.mxu1 }
 0x183   : > { %v3469_v51 = vadd.f32 %v3468_v10, %v3467_v44  ;;  %v4683_v54 = vadd.f32 %v3530_v48, %v2158_v0 }
 0x184   : > { %v3470_v56 = vpop.f32.mrf.mxu0  ;;  %v3532_v9 = vpop.f32.mrf.mxu1 }
 0x185   : > { %v2161_v57 = vadd.f32 %v3469_v51, %v4668_v36  ;;  %v3533_v37 = vadd.f32 %v3532_v9, %v3531_v15 }
 0x186   : > { %v3471_v39 = vpop.f32.mrf.mxu0  ;;  %v3534_v52 = vpop.f32.mrf.mxu1 }
 0x187   : > { %v3472_v28 = vadd.f32 %v3471_v39, %v3470_v56  ;;  %v4686_v30 = vadd.f32 %v3533_v37, %v2161_v57 }
 0x188   : > { %v3473_v49 = vpop.f32.mrf.mxu0  ;;  %v3535_v63 = vpop.f32.mrf.mxu1 }
 0x189   : > { %4821 = vst [vmem:[#allocation11_spill] sm:$0xff] %v4686_v30  ;;  %v2166_v62 = vadd.f32 %v3472_v28, %v4668_v36  ;;  %v3536_v3 = vadd.f32 %v3535_v63, %v3534_v52 }
 0x18a   : > { %v3474_v6 = vpop.f32.mrf.mxu0  ;;  %v3537_v53 = vpop.f32.mrf.mxu1 }
 0x18b   : > { %v3475_v1 = vadd.f32 %v3474_v6, %v3473_v49  ;;  %v4689_v50 = vadd.f32 %v3536_v3, %v2166_v62 }
 0x18c   : > { %v3476_v60 = vpop.f32.mrf.mxu0  ;;  %v3538_v11 = vpop.f32.mrf.mxu1 }
 0x18d   : > { %4822 = vst [vmem:[#allocation12_spill] sm:$0xff] %v4689_v50  ;;  %v2169_v5 = vadd.f32 %v3475_v1, %v4668_v36  ;;  %v3539_v8 = vadd.f32 %v3538_v11, %v3537_v53 }
 0x18e   : > { %v3477_v23 = vpop.f32.mrf.mxu0  ;;  %v3540_v59 = vpop.f32.mrf.mxu1 }
 0x18f   : > { %v3478_v2 = vadd.f32 %v3477_v23, %v3476_v60  ;;  %v4692_v43 = vadd.f32 %v3539_v8, %v2169_v5 }
 0x190   : > { %v3479_v47 = vpop.f32.mrf.mxu0  ;;  %v3541_v13 = vpop.f32.mrf.mxu1 }
 0x191   : > { %4823 = vst [vmem:[#allocation13_spill] sm:$0xff] %v4692_v43  ;;  %v2174_v12 = vadd.f32 %v3478_v2, %v4668_v36  ;;  %v3542_v26 = vadd.f32 %v3541_v13, %v3540_v59 }
 0x192   : > { %v3480_v14 = vpop.f32.mrf.mxu0  ;;  %v3543_v21 = vpop.f32.mrf.mxu1 }
 0x193   : > { %v3481_v4 = vadd.f32 %v3480_v14, %v3479_v47  ;;  %v4695_v58 = vadd.f32 %v3542_v26, %v2174_v12 }
 0x194   : > { %v3482_v25 = vpop.f32.mrf.mxu0  ;;  %v3544_v40 = vpop.f32.mrf.mxu1 }
 0x195   : > { %4824 = vst [vmem:[#allocation14_spill] sm:$0xff] %v4695_v58  ;;  %v2177_v34 = vadd.f32 %v3481_v4, %v4668_v36  ;;  %v3545_v20 = vadd.f32 %v3544_v40, %v3543_v21 }
 0x196   : > { %v3483_v61 = vpop.f32.mrf.mxu0  ;;  %v3546_v19 = vpop.f32.mrf.mxu1 }
 0x197   : > { %v3484_v55 = vadd.f32 %v3483_v61, %v3482_v25  ;;  %v4698_v24 = vadd.f32 %v3545_v20, %v2177_v34 }
 0x198   : > { %v3485_v27 = vpop.f32.mrf.mxu0  ;;  %v3547_v31 = vpop.f32.mrf.mxu1 }
 0x199   : > { %4825 = vst [vmem:[#allocation15_spill] sm:$0xff] %v4698_v24  ;;  %v2182_v29 = vadd.f32 %v3484_v55, %v4668_v36  ;;  %v3548_v32 = vadd.f32 %v3547_v31, %v3546_v19 }
 0x19a   : > { %v3486_v16 = vpop.f32.mrf.mxu0  ;;  %v3549_v46 = vpop.f32.mrf.mxu1 }
 0x19b   : > { %v3487_v33 = vadd.f32 %v3486_v16, %v3485_v27  ;;  %v4701_v35 = vadd.f32 %v3548_v32, %v2182_v29 }
 0x19c   : > { %v3488_v41 = vpop.f32.mrf.mxu0  ;;  %v3550_v22 = vpop.f32.mrf.mxu1 }
 0x19d   : > { %4826 = vst [vmem:[#allocation16_spill] sm:$0xff] %v4701_v35  ;;  %v2185_v38 = vadd.f32 %v3487_v33, %v4668_v36  ;;  %v3551_v44 = vadd.f32 %v3550_v22, %v3549_v46 }
 0x19e   : > { %v3489_v0 = vpop.f32.mrf.mxu0  ;;  %v3552_v45 = vpop.f32.mrf.mxu1 }
 0x19f   : > { %v3490_v48 = vadd.f32 %v3489_v0, %v3488_v41  ;;  %v4704_v10 = vadd.f32 %v3551_v44, %v2185_v38 }
 0x1a0   : > { %v3491_v15 = vpop.f32.mrf.mxu0  ;;  %v3553_v56 = vpop.f32.mrf.mxu1 }
 0x1a1   : > { %4827 = vst [vmem:[#allocation17_spill] sm:$0xff] %v4704_v10  ;;  %v2190_v51 = vadd.f32 %v3490_v48, %v4668_v36  ;;  %v3554_v57 = vadd.f32 %v3553_v56, %v3552_v45 }
 0x1a2   : > { %v3492_v9 = vpop.f32.mrf.mxu0  ;;  %v3555_v37 = vpop.f32.mrf.mxu1 }
 0x1a3   : > { %v3493_v39 = vadd.f32 %v3492_v9, %v3491_v15  ;;  %v4707_v52 = vadd.f32 %v3554_v57, %v2190_v51 }
 0x1a4   : > { %v3494_v28 = vpop.f32.mrf.mxu0  ;;  %v3556_v62 = vpop.f32.mrf.mxu1 }
 0x1a5   : > { %4828 = vst [vmem:[#allocation18_spill] sm:$0xff] %v4707_v52  ;;  %v2193_v49 = vadd.f32 %v3493_v39, %v4668_v36  ;;  %v3557_v63 = vadd.f32 %v3556_v62, %v3555_v37 }
 0x1a6   : > { %v3495_v3 = vpop.f32.mrf.mxu0  ;;  %v3558_v6 = vpop.f32.mrf.mxu1 }
 0x1a7   : > { %v3496_v53 = vadd.f32 %v3495_v3, %v3494_v28  ;;  %v4710_v1 = vadd.f32 %v3557_v63, %v2193_v49 }
 0x1a8   : > { %v3497_v60 = vpop.f32.mrf.mxu0  ;;  %v3559_v11 = vpop.f32.mrf.mxu1 }
 0x1a9   : > { %4829 = vst [vmem:[#allocation19_spill] sm:$0xff] %v4710_v1  ;;  %v2198_v5 = vadd.f32 %v3496_v53, %v4668_v36  ;;  %v3560_v8 = vadd.f32 %v3559_v11, %v3558_v6 }
 0x1aa   : > { %v3498_v23 = vpop.f32.mrf.mxu0  ;;  %v3561_v59 = vpop.f32.mrf.mxu1 }
 0x1ab   : > { %v3499_v2 = vadd.f32 %v3498_v23, %v3497_v60  ;;  %v4713_v47 = vadd.f32 %v3560_v8, %v2198_v5 }
 0x1ac   : > { %v3580_v12 = vpop.f32.mrf.mxu0  ;;  %v3562_v26 = vpop.f32.mrf.mxu1 }
 0x1ad   : > { %4830 = vst [vmem:[#allocation20_spill] sm:$0xff] %v4713_v47  ;;  %v2201_v13 = vadd.f32 %v3499_v2, %v4668_v36  ;;  %v3563_v14 = vadd.f32 %v3562_v26, %v3561_v59 }
 0x1ae   : > { %v3581_v21 = vpop.f32.mrf.mxu0  ;;  %v3644_v4 = vpop.f32.mrf.mxu1 }
 0x1af   : > { %v3582_v25 = vadd.f32 %v3581_v21, %v3580_v12  ;;  %v4716_v34 = vadd.f32 %v3563_v14, %v2201_v13 }
 0x1b0   : > { %v3583_v40 = vpop.f32.mrf.mxu0  ;;  %v3645_v61 = vpop.f32.mrf.mxu1 }
 0x1b1   : > { %4831 = vst [vmem:[#allocation21_spill] sm:$0xff] %v4716_v34  ;;  %v4719_v20 = vadd.f32 %v3582_v25, %v4671_v7  ;;  %v3646_v10 = vadd.f32 %v3645_v61, %v3644_v4 }
 0x1b2   : > { %v3584_v19 = vpop.f32.mrf.mxu0  ;;  %v3647_v55 = vpop.f32.mrf.mxu1 }
 0x1b3   : > { %v3585_v47 = vadd.f32 %v3584_v19, %v3583_v40 }
 0x1b4   : > { %v3586_v27 = vpop.f32.mrf.mxu0  ;;  %v3648_v29 = vpop.f32.mrf.mxu1 }
 0x1b5   : > { %v2339_v24 = vadd.f32 %v3585_v47, %v4674_v18  ;;  %v3649_v50 = vadd.f32 %v3648_v29, %v3647_v55 }
 0x1b6   : > { %v3587_v31 = vpop.f32.mrf.mxu0  ;;  %v3650_v32 = vpop.f32.mrf.mxu1 }
 0x1b8   : > { %v3589_v16 = vpop.f32.mrf.mxu0  ;;  %v3651_v36 = vpop.f32.mrf.mxu1 }
 0x1ba   : > { %v3590_v46 = vpop.f32.mrf.mxu0  ;;  %v3653_v33 = vpop.f32.mrf.mxu1 }
 0x1bb   : > { %v3591_v58 = vadd.f32 %v3590_v46, %v3589_v16 }
 0x1bc   : > { %v3592_v41 = vpop.f32.mrf.mxu0  ;;  %v3654_v38 = vpop.f32.mrf.mxu1 }
 0x1bd   : > { %v2347_v4 = vadd.f32 %v3591_v58, %v4680_v42  ;;  %v3655_v61 = vadd.f32 %v3654_v38, %v3653_v33  ;;  %v4842_v58 = vld [vmem:[#allocation13_spill] sm:$0xff] }
 0x1be   : > { %v3593_v22 = vpop.f32.mrf.mxu0  ;;  %v4721_v44 = vpop.f32.mrf.mxu1 }
 0x1c0   : > { %v4723_v0 = vpop.f32.mrf.mxu0  ;;  %v4725_v7 = vpop.f32.mrf.mxu1 }
 0x1c1   : > { %v3658_v46 = vadd.f32 %v4725_v7, %v4721_v44  ;;  %v2444_v7 = vadd.f32 %v3655_v61, %v2347_v4 }
 0x1c2   : > { %v4727_v45 = vpop.f32.mrf.mxu0  ;;  %v4729_v48 = vpop.f32.mrf.mxu1 }
 0x1c3   : > { %4832 = vst [vmem:[#allocation22_spill] sm:$0xff] %v4727_v45  ;;  %4833 = vst [vmem:[#allocation23_spill] sm:$0xff] %v4729_v48  ;;  %v3652_v45 = vadd.f32 %v3651_v36, %v3650_v32  ;;  %v2436_v36 = vadd.f32 %v3649_v50, %v2339_v24  ;;  %v4845_v24 = vld [vmem:[#allocation16_spill] sm:$0xff] }
 0x1c4   : > { %v3598_v15 = vpop.f32.mrf.mxu0  ;;  %v4731_v51 = vpop.f32.mrf.mxu1 }
 0x1c5   : > { %4834 = vst [vmem:[#allocation24_spill] sm:$0xff] %v4731_v51  ;;  %v3588_v51 = vadd.f32 %v3587_v31, %v3586_v27 }
 0x1c6   : > { %v3599_v56 = vpop.f32.mrf.mxu0  ;;  %v3662_v57 = vpop.f32.mrf.mxu1 }
 0x1c7   : > { %v3600_v19 = vadd.f32 %v3599_v56, %v3598_v15  ;;  %v4841_v15 = vld [vmem:[#allocation12_spill] sm:$0xff] }
 0x1c8   : > { %v3601_v9 = vpop.f32.mrf.mxu0  ;;  %v3663_v37 = vpop.f32.mrf.mxu1 }
 0x1ca   : > { %v3602_v39 = vpop.f32.mrf.mxu0  ;;  %v3665_v28 = vpop.f32.mrf.mxu1 }
 0x1cb   : > { %v3603_v27 = vadd.f32 %v3602_v39, %v3601_v9  ;;  %v4844_v9 = vld [vmem:[#allocation15_spill] sm:$0xff] }
 0x1cc   : > { %v3604_v49 = vpop.f32.mrf.mxu0  ;;  %v3666_v62 = vpop.f32.mrf.mxu1 }
 0x1cd   : > { %v2363_v33 = vadd.f32 %v3603_v27, %v4842_v58  ;;  %v3667_v38 = vadd.f32 %v3666_v62, %v3665_v28  ;;  %v4848_v28 = vld [vmem:[#allocation23_spill] sm:$0xff]  ;;  %v4849_v62 = vld [vmem:[#allocation24_spill] sm:$0xff] }
 0x1ce   : > { %v3605_v63 = vpop.f32.mrf.mxu0  ;;  %v3668_v3 = vpop.f32.mrf.mxu1 }
 0x1cf   : > { %v3606_v31 = vadd.f32 %v3605_v63, %v3604_v49 }
 0x1d0   : > { %v3607_v6 = vpop.f32.mrf.mxu0  ;;  %v3669_v53 = vpop.f32.mrf.mxu1 }
 0x1d2   : > { %v3608_v60 = vpop.f32.mrf.mxu0  ;;  %v3671_v5 = vpop.f32.mrf.mxu1 }
 0x1d3   : > { %v3609_v18 = vadd.f32 %v3608_v60, %v3607_v6  ;;  %v4847_v6 = vld [vmem:[#allocation11_spill] sm:$0xff] }
 0x1d4   : > { %v3610_v11 = vpop.f32.mrf.mxu0  ;;  %v3672_v8 = vpop.f32.mrf.mxu1 }
 0x1d5   : > { %v3673_v50 = vadd.f32 %v3672_v8, %v3671_v5 }
 0x1d6   : > { %v3611_v23 = vpop.f32.mrf.mxu0  ;;  %v3674_v59 = vpop.f32.mrf.mxu1 }
 0x1d7   : > { %v3612_v47 = vadd.f32 %v3611_v23, %v3610_v11  ;;  %v3661_v11 = vadd.f32 %v4849_v62, %v4848_v28 }
 0x1d8   : > { %v3613_v2 = vpop.f32.mrf.mxu0  ;;  %v3675_v12 = vpop.f32.mrf.mxu1 }
 0x1d9   : > { %v3676_v39 = vadd.f32 %v3675_v12, %v3674_v59 }
 0x1da   : > { %v3614_v13 = vpop.f32.mrf.mxu0  ;;  %v3677_v26 = vpop.f32.mrf.mxu1 }
 0x1db   : > { %v3615_v29 = vadd.f32 %v3614_v13, %v3613_v2 }
 0x1dc   : > { %v3616_v14 = vpop.f32.mrf.mxu0  ;;  %v3678_v21 = vpop.f32.mrf.mxu1 }
 0x1dd   : > { %v3679_v63 = vadd.f32 %v3678_v21, %v3677_v26 }
 0x1de   : > { %v3617_v25 = vpop.f32.mrf.mxu0  ;;  %v4733_v1 = vpop.f32.mrf.mxu1 }
 0x1df   : > { %4835 = vst [vmem:[#allocation25_spill] sm:$0xff] %v4733_v1  ;;  %v2344_v1 = vadd.f32 %v3588_v51, %v4677_v17  ;;  %v4843_v51 = vld [vmem:[#allocation14_spill] sm:$0xff] }
 0x1e0   : > { %v4735_v34 = vpop.f32.mrf.mxu0  ;;  %v4737_v52 = vpop.f32.mrf.mxu1  ;;  %v2368_v56 = vadd.f32 %v3606_v31, %v4843_v51 }
 0x1e1   : > { %4836 = vst [vmem:[#allocation26_spill] sm:$0xff] %v4735_v34  ;;  %4837 = vst [vmem:[#allocation27_spill] sm:$0xff] %v4737_v52  ;;  %v3594_v34 = vadd.f32 %v3593_v22, %v3592_v41  ;;  %v2441_v32 = vadd.f32 %v3652_v45, %v2344_v1  ;;  %v4840_v41 = vld [vmem:[#allocation22_spill] sm:$0xff]  ;;  %v2371_v1 = vadd.f32 %v3609_v18, %v4844_v9 }
 0x1e2   : > { %v4739_v48 = vpop.f32.mrf.mxu0  ;;  %v4741_v30 = vpop.f32.mrf.mxu1  ;;  %v3597_v22 = vadd.f32 %v4840_v41, %v4723_v0  ;;  %v2376_v45 = vadd.f32 %v3612_v47, %v4845_v24  ;;  %v4846_v0 = vld [vmem:[#allocation17_spill] sm:$0xff] }
 0x1e3   : > { %4838 = vst [vmem:[#allocation28_spill] sm:$0xff] %v4739_v48  ;;  %4839 = vst [vmem:[#allocation29_spill] sm:$0xff] %v4741_v30  ;;  %v2433_v30 = vadd.f32 %v3646_v10, %v4719_v20  ;;  %v2352_v55 = vadd.f32 %v3594_v34, %v4683_v54  ;;  %v2360_v10 = vadd.f32 %v3600_v19, %v4841_v15 }
 0x1e4   : > { %v3622_v35 = vpop.f32.mrf.mxu0  ;;  %v4744_v43 = vpop.f32.mrf.mxu1  ;;  %v3664_v20 = vadd.f32 %v3663_v37, %v3662_v57  ;;  %v3670_v54 = vadd.f32 %v3669_v53, %v3668_v3  ;;  %v2379_v49 = vadd.f32 %v3615_v29, %v4846_v0  ;;  %v3618_v57 = vadd.f32 %v3617_v25, %v3616_v14  ;;  %v4850_v14 = vld [vmem:[#allocation18_spill] sm:$0xff]  ;;  %v4855_v29 = vld [vmem:[#allocation20_spill] sm:$0xff] }
 0x1e5   : > { %v2355_v60 = vadd.f32 %v3597_v22, %v4847_v6  ;;  %v2449_v23 = vadd.f32 %v3658_v46, %v2352_v55  ;;  %v2460_v19 = vadd.f32 %v3667_v38, %v2363_v33  ;;  %v2468_v26 = vadd.f32 %v3673_v50, %v2371_v1  ;;  %v4856_v22 = vld [vmem:[#allocation21_spill] sm:$0xff] }
 0x1e6   : > { %v3623_v40 = vpop.f32.mrf.mxu0  ;;  %v3686_v52 = vpop.f32.mrf.mxu1  ;;  %v2465_v5 = vadd.f32 %v3670_v54, %v2368_v56  ;;  %v2457_v13 = vadd.f32 %v3664_v20, %v2360_v10  ;;  %v2384_v21 = vadd.f32 %v3618_v57, %v4850_v14  ;;  %v4851_v25 = vld [vmem:[#allocation25_spill] sm:$0xff]  ;;  %v2473_v18 = vadd.f32 %v3676_v39, %v2376_v45  ;;  %v4857_v39 = vld [vmem:[#allocation19_spill] sm:$0xff] }
 0x1e7   : > { %v3624_v3 = vadd.f32 %v3623_v40, %v3622_v35  ;;  %v2476_v35 = vadd.f32 %v3679_v63, %v2379_v49 }
 0x1e8   : > { %v3625_v48 = vpop.f32.mrf.mxu0  ;;  %v3687_v16 = vpop.f32.mrf.mxu1  ;;  %v4852_v4 = vld [vmem:[#allocation27_spill] sm:$0xff]  ;;  %v4853_v47 = vld [vmem:[#allocation26_spill] sm:$0xff] }
 0x1e9   : > { %v3682_v61 = vadd.f32 %v4852_v4, %v4851_v25  ;;  %v3688_v41 = vadd.f32 %v3687_v16, %v3686_v52 }
 0x1ea   : > { %v3626_v17 = vpop.f32.mrf.mxu0  ;;  %v3689_v42 = vpop.f32.mrf.mxu1  ;;  %v4858_v49 = vld [vmem:[#allocation29_spill] sm:$0xff] }
 0x1eb   : > { %v3627_v2 = vadd.f32 %v3626_v17, %v3625_v48  ;;  %v4854_v48 = vld [vmem:[#allocation28_spill] sm:$0xff]  ;;  %v2392_v17 = vadd.f32 %v3624_v3, %v4855_v29  ;;  %v3685_v63 = vadd.f32 %v4744_v43, %v4858_v49 }
 0x1ec   : > { %v3726_v34 = vpop.f32.mrf.mxu0  ;;  %v3690_v44 = vpop.f32.mrf.mxu1  ;;  %v3621_v55 = vadd.f32 %v4854_v48, %v4853_v47 }
 0x1ed   : > { %v2538_v27 = vadd.f32 %v3726_v34, %v2441_v32  ;;  %v2395_v15 = vadd.f32 %v3627_v2, %v4856_v22  ;;  %v3691_v34 = vadd.f32 %v3690_v44, %v3689_v42 }
 0x1ee   : > { %v2529_v37 = vpop.f32.mrf.mxu0  ;;  %v3734_v53 = vpop.f32.mrf.mxu1  ;;  %v2387_v0 = vadd.f32 %v3621_v55, %v4857_v39 }
 0x1ef   : > { %v2530_v59 = vadd.f32 %v2529_v37, %v2433_v30  ;;  %v4770_v10 = vadd.f32 %v3734_v53, %v2473_v18  ;;  %v2695_v1 = vmul.f32 %v2538_v27, %v2538_v27  ;;  %v2489_v53 = vadd.f32 %v3688_v41, %v2392_v17 }
 0x1f0   : > { %v3727_v8 = vpop.f32.mrf.mxu0  ;;  %v2561_v12 = vpop.f32.mrf.mxu1  ;;  %v2492_v2 = vadd.f32 %v3691_v34, %v2395_v15 }
 0x1f1   : > { %v2541_v31 = vadd.f32 %v3727_v8, %v2444_v7  ;;  %v2693_v33 = vmul.f32 %v2530_v59, %v2530_v59  ;;  %v2562_v9 = vadd.f32 %v2561_v12, %v2465_v5  ;;  %v2452_v5 = vadd.f32 %v3661_v11, %v2355_v60 }
 0x1f2   : > { %v2532_v40 = vpop.f32.mrf.mxu0  ;;  %v3735_v32 = vpop.f32.mrf.mxu1 }
 0x1f3   : > { %v3359_v46 = vpack.c.bf16 %v2541_v31, %v2538_v27  ;;  %v2533_v30 = vadd.f32 %v2532_v40, %v2436_v36  ;;  %v4772_v20 = vadd.f32 %v3735_v32, %v2476_v35  ;;  %v2696_v57 = vmul.f32 %v2541_v31, %v2541_v31 }
 0x1f4   : > { %v3730_v58 = vpop.f32.mrf.mxu0  ;;  %v2564_v54 = vpop.f32.mrf.mxu1 }
 0x1f5   : > { %3429 = vst [vmem:[%s4006_s16 + $0x8] sm:$0xff] %v3359_v46   ;;  %v3354_v38 = vpack.c.bf16 %v2533_v30, %v2530_v59  ;;  %v2672_v51 = vadd.f32 %v2533_v30, %v2530_v59  ;;  %v2694_v56 = vmul.f32 %v2533_v30, %v2533_v30  ;;  %v3379_v52 = vpack.c.bf16 %v4772_v20, %v4770_v10 }
 0x1f6   : > { %v2565_v16 = vadd.f32 %v2564_v54, %v2468_v26  ;;  %v2545_v36 = vpop.f32.mrf.mxu0  ;;  %v3738_v45 = vpop.f32.mrf.mxu1  ;;  %v2554_v6 = vadd.f32 %v3730_v58, %v2457_v13  ;;  %v2704_v54 = vmul.f32 %v4772_v20, %v4772_v20 }
 0x1f7   : > { %3355 = vst [vmem:[%s4006_s16] sm:$0xff] %v3354_v38   ;;  %v2673_v50 = vadd.f32 %v2672_v51, %v2538_v27  ;;  %v2709_v24 = vadd.f32 %v2694_v56, %v2693_v33  ;;  %v2546_v7 = vadd.f32 %v2545_v36, %v2449_v23  ;;  %3433 = vst [vmem:[%s4006_s16 + $0x28] sm:$0xff] %v3379_v52  }
 0x1f8   : > { %v3374_v42 = vpack.c.bf16 %v2565_v16, %v2562_v9  ;;  %v3731_v44 = vpop.f32.mrf.mxu0  ;;  %v2577_v62 = vpop.f32.mrf.mxu1  ;;  %v2586_v26 = vadd.f32 %v3738_v45, %v2489_v53  ;;  %v2699_v55 = vmul.f32 %v2554_v6, %v2554_v6  ;;  %v2702_v15 = vmul.f32 %v2565_v16, %v2565_v16 }
 0x1f9   : > { %v2710_v37 = vadd.f32 %v2709_v24, %v2695_v1  ;;  %v2674_v28 = vadd.f32 %v2673_v50, %v2541_v31  ;;  %v2557_v3 = vadd.f32 %v3731_v44, %v2460_v19  ;;  %v2697_v27 = vmul.f32 %v2546_v7, %v2546_v7 }
 0x1fa   : > { %3432 = vst [vmem:[%s4006_s16 + $0x20] sm:$0xff] %v3374_v42   ;;  %v2548_v23 = vpop.f32.mrf.mxu0  ;;  %v3739_v43 = vpop.f32.mrf.mxu1  ;;  %v2481_v31 = vadd.f32 %v3682_v61, %v2384_v21  ;;  %v2484_v19 = vadd.f32 %v3685_v63, %v2387_v0  ;;  %v2701_v61 = vmul.f32 %v2562_v9, %v2562_v9  ;;  %v2703_v38 = vmul.f32 %v4770_v10, %v4770_v10 }
 0x1fb   : > { %v2675_v8 = vadd.f32 %v2674_v28, %v2546_v7  ;;  %v2711_v59 = vadd.f32 %v2710_v37, %v2696_v57  ;;  %v3369_v12 = vpack.c.bf16 %v2557_v3, %v2554_v6  ;;  %v2589_v14 = vadd.f32 %v3739_v43, %v2492_v2 }
 0x1fc   : > { %v2549_v25 = vadd.f32 %v2548_v23, %v2452_v5  ;;  %v2580_v4 = vpop.f32.mrf.mxu1  ;;  %v2578_v11 = vadd.f32 %v2577_v62, %v2481_v31  ;;  %v2700_v32 = vmul.f32 %v2557_v3, %v2557_v3  ;;  %v2707_v45 = vmul.f32 %v2586_v26, %v2586_v26 }
 0x1fd   : > { %v2712_v13 = vadd.f32 %v2711_v59, %v2697_v27  ;;  %3431 = vst [vmem:[%s4006_s16 + $0x18] sm:$0xff] %v3369_v12   ;;  %v3389_v18 = vpack.c.bf16 %v2589_v14, %v2586_v26  ;;  %v2581_v47 = vadd.f32 %v2580_v4, %v2484_v19  ;;  %v2708_v0 = vmul.f32 %v2589_v14, %v2589_v14 }
 0x1fe   : > { %v3364_v35 = vpack.c.bf16 %v2549_v25, %v2546_v7  ;;  %v2676_v60 = vadd.f32 %v2675_v8, %v2549_v25  ;;  %v2698_v40 = vmul.f32 %v2549_v25, %v2549_v25  ;;  %v2705_v36 = vmul.f32 %v2578_v11, %v2578_v11 }
 0x1ff   : > { %3435 = vst [vmem:[%s4006_s16 + $0x38] sm:$0xff] %v3389_v18   ;;  %v3384_v17 = vpack.c.bf16 %v2581_v47, %v2578_v11  ;;  %v2706_v50 = vmul.f32 %v2581_v47, %v2581_v47 }
 0x200   : > { %3430 = vst [vmem:[%s4006_s16 + $0x10] sm:$0xff] %v3364_v35   ;;  %v2677_v48 = vadd.f32 %v2676_v60, %v2554_v6  ;;  %v2713_v29 = vadd.f32 %v2712_v13, %v2698_v40 }
 0x201   : > { %3434 = vst [vmem:[%s4006_s16 + $0x30] sm:$0xff] %v3384_v17  }
 0x202   : > { %v2678_v46 = vadd.f32 %v2677_v48, %v2557_v3  ;;  %v2714_v30 = vadd.f32 %v2713_v29, %v2699_v55 }
 0x204   : > { %v2679_v21 = vadd.f32 %v2678_v46, %v2562_v9  ;;  %v2715_v41 = vadd.f32 %v2714_v30, %v2700_v32 }
 0x206   : > { %v2680_v22 = vadd.f32 %v2679_v21, %v2565_v16  ;;  %v2716_v58 = vadd.f32 %v2715_v41, %v2701_v61 }
 0x208   : > { %v2681_v33 = vadd.f32 %v2680_v22, %v4770_v10  ;;  %v2717_v51 = vadd.f32 %v2716_v58, %v2702_v15 }
 0x20a   : > { %v2682_v56 = vadd.f32 %v2681_v33, %v4772_v20  ;;  %v2718_v34 = vadd.f32 %v2717_v51, %v2703_v38 }
 0x20c   : > { %v2683_v52 = vadd.f32 %v2682_v56, %v2578_v11  ;;  %v2719_v1 = vadd.f32 %v2718_v34, %v2704_v54 }
 0x20e   : > { %v2684_v9 = vadd.f32 %v2683_v52, %v2581_v47  ;;  %v2720_v24 = vadd.f32 %v2719_v1, %v2705_v36 }
 0x210   : > { %v2685_v16 = vadd.f32 %v2684_v9, %v2586_v26  ;;  %v2721_v7 = vadd.f32 %v2720_v24, %v2706_v50 }
 0x212   : > { %v2686_v39 = vadd.f32 %v2685_v16, %v2589_v14  ;;  %v2722_v49 = vadd.f32 %v2721_v7, %v2707_v45 }
 0x214   : > { %v2687_v10 = vrot.slane %v2686_v39, 4  ;;  %v2723_v63 = vadd.f32 %v2722_v49, %v2708_v0 }
 0x216   : > { %v2688_v57 = vadd.f32 %v2687_v10, %v2686_v39  ;;  %v2724_v42 = vrot.slane %v2723_v63, 4 }
 0x218   : > { %v2689_v44 = vrot.slane %v2688_v57, 2  ;;  %v2725_v20 = vadd.f32 %v2724_v42, %v2723_v63 }
 0x21a   : > { %v2690_v37 = vadd.f32 %v2689_v44, %v2688_v57  ;;  %v2726_v6 = vrot.slane %v2725_v20, 2 }
 0x21c   : > { %v2691_v28 = vrot.slane %v2690_v37, 1  ;;  %v2727_v62 = vadd.f32 %v2726_v6, %v2725_v20 }
 0x21e   : > { %v2728_v3 = vrot.slane %v2727_v62, 1  ;;  %v2692_v53 = vadd.f32 %v2691_v28, %v2690_v37 }
 0x220   : > { %v2729_v2 = vadd.f32 %v2728_v3, %v2727_v62 }
 0x222   : > { %v2731_v5 = vsel %vm2730_vm14, %v2692_v53, %v2729_v2 }
 0x223   : > { %2732 = vst [vmem:[%s4018_s7] sm:$0x3] %v2731_v5 }
 0x224 PF: > { %s17_s25 = sadd.s32 1, %s3925_s25   ;;  %s4859_s16 = sld [smem:[#allocation10_spill]] }
 0x225   : > { %p14_p12 = scmp.ge.s32.totalorder %s17_s25, 6   ;;  %s4860_s21 = smov %s3917_s23 }
 0x226   : > { %s4861_s22 = smov %s3921_s24  ;;  %s4862_s23 = smov %s4865_s26 }
 0x227   :  { %16 = sbr.rel (!%p14_p12) target bundleno = 3 (0x3), region = 220 }
 0x22a   : > { %s4863_s24 = smov %s4859_s16 }
 0x22c   :  { %2787 = vsyncmov [#allocation3] }
 0x22f   :  { %s2788_s7 = vpop.sfrf %2787 }
 0x230   :  { %p3111_p13 = scmp.ne.s32.totalorder %s2788_s7, 0 }
 0x232   :  { %2792 = shalt.err (%p3111_p13)  }
 0x233   :  { %2794 = vsyncmov [#allocation3 + $0x1] }
 0x236   :  { %s2795_s8 = vpop.sfrf %2794 }
 0x237   :  { %p3112_p0 = scmp.ne.s32.totalorder %s2795_s8, 0 }
 0x239   :  { %2799 = shalt.err (%p3112_p0)  }
 0x23a   :  { %2801 = vsyncmov [#allocation3 + $0x2] }
 0x23d   :  { %s2802_s15 = vpop.sfrf %2801 }
 0x23e   :  { %p3113_p1 = scmp.ne.s32.totalorder %s2802_s15, 0 }
 0x240   :  { %2806 = shalt.err (%p3113_p1)  }

</bundles_post_ra>
